<compile_context>
chip_gen: v6e
topology: v6e:2x2x1
jax: 0.10.0
libtpu: 0.0.40
codegen_flags: <defaults>
</compile_context>

<pallas_src>
import jax
import jax.numpy as jnp
from jax.experimental import pallas as pl
from jax.experimental.pallas import tpu as pltpu

D_IN = 768
D_HID = 1024
D_OUT = 768


def _round_up(n, m):
    return ((n + m - 1) // m) * m


def _cdiv(a, b):
    return -(-a // b)


def mlp_kernel(x_ref, w1_ref, b1_ref, w2_ref, b2_ref, o_ref):
    # Hot path: two bf16 MXU matmuls (f32 accumulation) + f32 bias adds,
    # fully fused in VMEM.  The x f32->bf16 cast is in-kernel VPU work and is
    # hidden under the MXU (the binding unit at these shapes).
    x = x_ref[...].astype(jnp.bfloat16)                         # (bm, 768)
    h = jnp.dot(x, w1_ref[...], preferred_element_type=jnp.float32)
    h = (h + b1_ref[...]).astype(jnp.bfloat16)                  # (bm, 1024)
    y = jnp.dot(h, w2_ref[...], preferred_element_type=jnp.float32)
    y = y + b2_ref[...]                                         # (bm, 768) f32
    o_ref[...] = y.astype(o_ref.dtype)


def prepare_params(w1, b1, w2, b2):
    """One-time parameter prep: cast weights to bf16 (biases stay f32)."""
    return (w1.astype(jnp.bfloat16), b1.astype(jnp.float32),
            w2.astype(jnp.bfloat16), b2.astype(jnp.float32))


def mlp_forward(x, w1, b1, w2, b2, *, bm=1024, out_dtype=jnp.float32):
    """x: (B, 768) f32.  w1: (768,1024), w2: (1024,768) (ideally bf16 via
    prepare_params), b1: (1,1024) f32, b2: (1,768) f32."""
    B = x.shape[0]

    # Steady-state path: weights already bf16 (prepare_params). Only convert
    # here if the caller handed us f32 weights.
    w1 = w1 if w1.dtype == jnp.bfloat16 else w1.astype(jnp.bfloat16)
    w2 = w2 if w2.dtype == jnp.bfloat16 else w2.astype(jnp.bfloat16)

    # Balanced batch tiling: n_tiles = ceil(B/bm), tile = round_up(B/n_tiles, 8)
    # -> padding waste capped at <8 rows per tile for awkward B.
    n_tiles = max(1, _cdiv(B, bm))
    bm_eff = _round_up(max(_cdiv(B, n_tiles), 1), 8)
    Bp = n_tiles * bm_eff
    x_in = jnp.pad(x, ((0, Bp - B), (0, 0))) if Bp != B else x

    elt_x = jnp.dtype(x_in.dtype).itemsize
    elt_o = jnp.dtype(out_dtype).itemsize

    # VMEM budget from actual buffer sizes (+ headroom), capped for v7x's 64 MiB.
    vmem_bytes = (
        2 * bm_eff * D_IN * elt_x                     # x tile, double-buffered
        + 2 * bm_eff * D_OUT * elt_o                  # out tile, double-buffered
        + (D_IN * D_HID + D_HID * D_OUT) * 2          # resident bf16 weights
        + (D_HID + D_OUT) * 4                         # resident f32 biases
        + bm_eff * D_IN * 2                           # bf16 x cast scratch
        + bm_eff * D_HID * (4 + 2)                    # f32 h + bf16 h scratch
        + (4 << 20)                                   # compiler scratch headroom
    )
    vmem_bytes = min(vmem_bytes, 64 * 1024 * 1024)

    flops = 2 * Bp * (D_IN * D_HID + D_HID * D_OUT)
    bytes_accessed = (
        (D_IN * D_HID + D_HID * D_OUT) * 2            # bf16 weights
        + (D_HID + D_OUT) * 4                         # f32 biases
        + Bp * D_IN * elt_x                           # x
        + Bp * D_OUT * elt_o                          # out
    )

    out = pl.pallas_call(
        mlp_kernel,
        out_shape=jax.ShapeDtypeStruct((Bp, D_OUT), out_dtype),
        grid_spec=pltpu.PrefetchScalarGridSpec(
            num_scalar_prefetch=0,
            grid=(n_tiles,),
            in_specs=[
                # Streaming activation tile (default double-buffered).
                pl.BlockSpec((bm_eff, D_IN), lambda i: (i, 0)),
                # Grid-invariant weights/biases: single-buffered residents.
                pl.BlockSpec((D_IN, D_HID), lambda i: (0, 0),
                             pipeline_mode=pl.Buffered(1)),
                pl.BlockSpec((1, D_HID), lambda i: (0, 0),
                             pipeline_mode=pl.Buffered(1)),
                pl.BlockSpec((D_HID, D_OUT), lambda i: (0, 0),
                             pipeline_mode=pl.Buffered(1)),
                pl.BlockSpec((1, D_OUT), lambda i: (0, 0),
                             pipeline_mode=pl.Buffered(1)),
            ],
            out_specs=pl.BlockSpec((bm_eff, D_OUT), lambda i: (i, 0)),
        ),
        compiler_params=pltpu.CompilerParams(
            dimension_semantics=("parallel",),   # shard batch tiles across TCs
            vmem_limit_bytes=vmem_bytes,
        ),
        cost_estimate=pl.CostEstimate(
            flops=flops, transcendentals=0, bytes_accessed=bytes_accessed),
    )(x_in, w1, b1, w2, b2)

    return out[:B] if Bp != B else out


def init_params(key):
    """Deterministic init mimicking nn.Linear's uniform(-1/sqrt(fan_in), ...)."""
    k1, k2, k3, k4 = jax.random.split(key, 4)
    lim1 = 1.0 / jnp.sqrt(jnp.float32(D_IN))
    lim2 = 1.0 / jnp.sqrt(jnp.float32(D_HID))
    # Stored as (in, out) for the kernel (transpose of PyTorch's (out, in)).
    w1 = jax.random.uniform(k1, (D_IN, D_HID), jnp.float32, -lim1, lim1)
    b1 = jax.random.uniform(k2, (1, D_HID), jnp.float32, -lim1, lim1)
    w2 = jax.random.uniform(k3, (D_HID, D_OUT), jnp.float32, -lim2, lim2)
    b2 = jax.random.uniform(k4, (1, D_OUT), jnp.float32, -lim2, lim2)
    return w1, b1, w2, b2


if __name__ == "__main__":
    key = jax.random.PRNGKey(0)
    kx, kp = jax.random.split(key)

    B = 32  # small demo batch; wrapper balances/pads tiles for any B
    x = jax.random.normal(kx, (B, D_IN), dtype=jnp.float32)
    w1, b1, w2, b2 = init_params(kp)

    # One-time param prep (bf16 weights) so calls pay no convert passes.
    w1p, b1p, w2p, b2p = prepare_params(w1, b1, w2, b2)

    out = mlp_forward(x, w1p, b1p, w2p, b2p)
    out = jax.block_until_ready(out)
    assert out.shape == (B, D_OUT)
    assert out.dtype == jnp.float32

    # Reference mirroring the bf16 matmul datapath (f32 accumulation).
    xb = x.astype(jnp.bfloat16).astype(jnp.float32)
    w1b = w1.astype(jnp.bfloat16).astype(jnp.float32)
    w2b = w2.astype(jnp.bfloat16).astype(jnp.float32)
    h_ref = xb @ w1b + b1
    h_ref = h_ref.astype(jnp.bfloat16).astype(jnp.float32)
    ref = h_ref @ w2b + b2
    assert jnp.allclose(out, ref, atol=2e-2, rtol=2e-2)

    # Loose sanity check against the full-f32 forward (bf16 rounding error).
    ref_f32 = (x @ w1 + b1) @ w2 + b2
    assert jnp.allclose(out, ref_f32, atol=1e-1, rtol=1e-1)

    # Exercise an awkward, multi-tile batch (balanced tiling + pad/slice path).
    B2 = 300
    x2 = jax.random.normal(kx, (B2, D_IN), dtype=jnp.float32)
    out2 = jax.block_until_ready(mlp_forward(x2, w1p, b1p, w2p, b2p, bm=256))
    x2b = x2.astype(jnp.bfloat16).astype(jnp.float32)
    h2 = (x2b @ w1b + b1).astype(jnp.bfloat16).astype(jnp.float32)
    ref2 = h2 @ w2b + b2
    assert out2.shape == (B2, D_OUT)
    assert jnp.allclose(out2, ref2, atol=2e-2, rtol=2e-2)

    print("KERNEL_OK")
</pallas_src>

<mosaic_0001>
module attributes {stable_mosaic.version = 11 : i64} {
  func.func @mlp_kernel(%arg0: i32, %arg1: memref<32x768xf32, #tpu.memory_space<vmem>>, %arg2: memref<768x1024xbf16, #tpu.memory_space<vmem>>, %arg3: memref<1x1024xf32, #tpu.memory_space<vmem>>, %arg4: memref<1024x768xbf16, #tpu.memory_space<vmem>>, %arg5: memref<1x768xf32, #tpu.memory_space<vmem>>, %arg6: memref<32x768xf32, #tpu.memory_space<vmem>>) attributes {dimension_semantics = [#tpu.dimension_semantics<parallel>], iteration_bounds = array<i64: 1>, scalar_prefetch = 0 : i64, scratch_operands = 0 : i64, tpu.core_type = #tpu.core_type<tc>, window_params = [{transform_indices = @transform_0, window_bounds = array<i64: 32, 768>}, {pipeline_mode = #tpu.pipeline_mode<synchronous>, transform_indices = @transform_1, window_bounds = array<i64: 768, 1024>}, {pipeline_mode = #tpu.pipeline_mode<synchronous>, transform_indices = @transform_2, window_bounds = array<i64: 1, 1024>}, {pipeline_mode = #tpu.pipeline_mode<synchronous>, transform_indices = @transform_3, window_bounds = array<i64: 1024, 768>}, {pipeline_mode = #tpu.pipeline_mode<synchronous>, transform_indices = @transform_4, window_bounds = array<i64: 1, 768>}, {transform_indices = @transform_5, window_bounds = array<i64: 32, 768>}]} {
    %c0 = arith.constant 0 : index
    %c0_0 = arith.constant 0 : index
    %0 = vector.load %arg1[%c0, %c0_0] : memref<32x768xf32, #tpu.memory_space<vmem>>, vector<32x768xf32>
    %1 = arith.truncf %0 : vector<32x768xf32> to vector<32x768xbf16>
    %c0_1 = arith.constant 0 : index
    %c0_2 = arith.constant 0 : index
    %2 = vector.load %arg2[%c0_1, %c0_2] : memref<768x1024xbf16, #tpu.memory_space<vmem>>, vector<768x1024xbf16>
    %cst = arith.constant dense<0.000000e+00> : vector<32x1024xf32>
    %3 = tpu.matmul %1, %2, %cst {dimension_numbers = #tpu.dot_dimension_numbers<[1], [0], [0], [1], [0, 0, 1, 1], [], []>} : vector<32x768xbf16>, vector<768x1024xbf16>, vector<32x1024xf32> -> vector<32x1024xf32>
    %c0_3 = arith.constant 0 : index
    %c0_4 = arith.constant 0 : index
    %4 = vector.load %arg3[%c0_3, %c0_4] : memref<1x1024xf32, #tpu.memory_space<vmem>>, vector<1x1024xf32>
    %5 = vector.broadcast %4 : vector<1x1024xf32> to vector<32x1024xf32>
    %6 = arith.addf %3, %5 : vector<32x1024xf32>
    %7 = arith.truncf %6 : vector<32x1024xf32> to vector<32x1024xbf16>
    %c0_5 = arith.constant 0 : index
    %c0_6 = arith.constant 0 : index
    %8 = vector.load %arg4[%c0_5, %c0_6] : memref<1024x768xbf16, #tpu.memory_space<vmem>>, vector<1024x768xbf16>
    %cst_7 = arith.constant dense<0.000000e+00> : vector<32x768xf32>
    %9 = tpu.matmul %7, %8, %cst_7 {dimension_numbers = #tpu.dot_dimension_numbers<[1], [0], [0], [1], [0, 0, 1, 1], [], []>} : vector<32x1024xbf16>, vector<1024x768xbf16>, vector<32x768xf32> -> vector<32x768xf32>
    %c0_8 = arith.constant 0 : index
    %c0_9 = arith.constant 0 : index
    %10 = vector.load %arg5[%c0_8, %c0_9] : memref<1x768xf32, #tpu.memory_space<vmem>>, vector<1x768xf32>
    %11 = vector.broadcast %10 : vector<1x768xf32> to vector<32x768xf32>
    %12 = arith.addf %9, %11 : vector<32x768xf32>
    %c0_10 = arith.constant 0 : index
    %c0_11 = arith.constant 0 : index
    %13 = vector.load %arg6[%c0_10, %c0_11] : memref<32x768xf32, #tpu.memory_space<vmem>>, vector<32x768xf32>
    tpu.vector_store %arg6[%c0_10, %c0_11], %12 {strides = array<i32>} : memref<32x768xf32, #tpu.memory_space<vmem>>, vector<32x768xf32>,
    return
  }
  func.func @transform_0(%arg0: i32) -> (i32, i32) {
    %c0_i32 = arith.constant 0 : i32
    %c0_i32_0 = arith.constant 0 : i32
    return %arg0, %c0_i32 : i32, i32
  }
  func.func @transform_1(%arg0: i32) -> (i32, i32) {
    %c0_i32 = arith.constant 0 : i32
    %c0_i32_0 = arith.constant 0 : i32
    %c0_i32_1 = arith.constant 0 : i32
    return %c0_i32, %c0_i32_0 : i32, i32
  }
  func.func @transform_2(%arg0: i32) -> (i32, i32) {
    %c0_i32 = arith.constant 0 : i32
    %c0_i32_0 = arith.constant 0 : i32
    %c0_i32_1 = arith.constant 0 : i32
    return %c0_i32, %c0_i32_0 : i32, i32
  }
  func.func @transform_3(%arg0: i32) -> (i32, i32) {
    %c0_i32 = arith.constant 0 : i32
    %c0_i32_0 = arith.constant 0 : i32
    %c0_i32_1 = arith.constant 0 : i32
    return %c0_i32, %c0_i32_0 : i32, i32
  }
  func.func @transform_4(%arg0: i32) -> (i32, i32) {
    %c0_i32 = arith.constant 0 : i32
    %c0_i32_0 = arith.constant 0 : i32
    %c0_i32_1 = arith.constant 0 : i32
    return %c0_i32, %c0_i32_0 : i32, i32
  }
  func.func @transform_5(%arg0: i32) -> (i32, i32) {
    %c0_i32 = arith.constant 0 : i32
    %c0_i32_0 = arith.constant 0 : i32
    return %arg0, %c0_i32 : i32, i32
  }
}

</mosaic_0001>

<bundles_post_ra>
// kernel: tpu_custom_call.1
= control target key start
LH: loop header
LB: loop body
LE: loop exit
PB: predicated region body
PF: predicated region fallthrough
CT: control target
= control target key end

     0   :  { %10 = vsyncpa [#allocation3], 0  ;;  %s8026_s0 = inlined_call_operand.hbm [shape: f32[32,768], index: 0, kind: input, shape index: {}]   ;;  %s8027_s1 = inlined_call_operand.hbm [shape: bf16[768,1024], index: 1, kind: input, shape index: {}]   ;;  %s8028_s2 = inlined_call_operand.hbm [shape: f32[1,1024], index: 2, kind: input, shape index: {}]   ;;  %s8029_s3 = inlined_call_operand.hbm [shape: bf16[1024,768], index: 3, kind: input, shape index: {}]   ;;  %s8030_s4 = inlined_call_operand.hbm [shape: f32[1,768], index: 4, kind: input, shape index: {}]   ;;  %s8031_s5 = inlined_call_operand.hbm [shape: f32[32,768], index: 5, kind: output, shape index: {}]  }
   0x1   :  { %11 = vsyncpa [#allocation6], 0 }
   0x2   :  { %12 = vsyncpa [#allocation9], 0 }
   0x3   :  { %13 = vsyncpa [#allocation4], 0  ;;  %s7619_s18 = smov [#allocation5]  }
   0x4   :  { %s31_s19 = sshll.u32 %s7619_s18, 4  ;;  %s32_s19 = int_to_ptr.vmem [resolvable:$true] %s31_s19 }
   0x5   :  { %s7499_s20 = scalar_lea.vmem %s32_s19, 49152  ;;  %p7504_p1 = scmp.lt.s32.totalorder %s32_s19, %s32_s19 }
   0x6   :  { %p7500_p0 = scmp.ne.s32.totalorder %s32_s19, %s7499_s20  ;;  %p7505_p2 = scmp.lt.s32.totalorder %s7499_s20, %s7499_s20 }
   0x8   :  { %p7506_p3 = por %p7505_p2, %p7504_p1 }
   0xa   :  { %p7507_p4 = pnand %p7506_p3, %p7500_p0 }
   0xc   :  { %7510 = shalt.err (!%p7507_p4)
}
   0xd   :  { %s7620_s21 = smov 512   ;;  %s7621_s22 = smov 32  }
   0xe   :  { %37 = dma.hbm_to_vmem [thread:$0]  %s8027_s1, 49152, %s32_s19, [#allocation6], %s7620_s21, %s7620_s21, %s7621_s22  }
   0xf   :  { %s7622_s25 = smov [#allocation8]  }
  0x10   :  { %s53_s26 = sshll.u32 %s7622_s25, 4  ;;  %s54_s26 = int_to_ptr.vmem [resolvable:$true] %s53_s26 }
  0x11   :  { %s7519_s27 = scalar_lea.vmem %s54_s26, 49152  ;;  %p7524_p6 = scmp.lt.s32.totalorder %s54_s26, %s54_s26 }
  0x12   :  { %p7520_p5 = scmp.ne.s32.totalorder %s54_s26, %s7519_s27  ;;  %p7525_p7 = scmp.lt.s32.totalorder %s7519_s27, %s7519_s27 }
  0x14   :  { %p7526_p8 = por %p7525_p7, %p7524_p6 }
  0x16   :  { %p7527_p9 = pnand %p7526_p8, %p7520_p5 }
  0x18   :  { %7530 = shalt.err (!%p7527_p9)
}
  0x19   :  { %s7623_s28 = smov 384   ;;  %s7624_s29 = smov 24  }
  0x1a   :  { %59 = dma.hbm_to_vmem [thread:$0]  %s8029_s3, 49152, %s54_s26, [#allocation9], %s7623_s28, %s7623_s28, %s7624_s29  }
  0x1b   :  { %s7625_s7 = smov [#allocation2]  }
  0x1c   :  { %s19_s8 = sshll.u32 %s7625_s7, 4  ;;  %s20_s8 = int_to_ptr.vmem [resolvable:$true] %s19_s8 }
  0x1d   :  { %s7539_s1 = scalar_lea.vmem %s20_s8, 3072  ;;  %p7544_p11 = scmp.lt.s32.totalorder %s20_s8, %s20_s8 }
  0x1e   :  { %p7540_p10 = scmp.ne.s32.totalorder %s20_s8, %s7539_s1  ;;  %p7545_p12 = scmp.lt.s32.totalorder %s7539_s1, %s7539_s1 }
  0x20   :  { %p7546_p13 = por %p7545_p12, %p7544_p11 }
  0x22   :  { %p7547_p0 = pnand %p7546_p13, %p7540_p10 }
  0x24   :  { %7550 = shalt.err (!%p7547_p0)
}
  0x25   :  { %s7626_s9 = smov 768   ;;  %s7627_s10 = smov 48  }
  0x26   :  { %25 = dma.hbm_to_vmem [thread:$0]  %s8026_s0, 3072, %s20_s8, [#allocation3], %s7626_s9, %s7626_s9, %s7627_s10  }
  0x27   :  { %s7628_s3 = smov [#allocation7]   ;;  %s7629_s14 = smov [#allocation10]  }
  0x28   :  { %s44_s13 = sshll.u32 %s7628_s3, 4  ;;  %s66_s15 = sshll.u32 %s7629_s14, 4  ;;  %s45_s13 = int_to_ptr.vmem [resolvable:$true] %s44_s13  ;;  %s67_s15 = int_to_ptr.vmem [resolvable:$true] %s66_s15 }
  0x29   :  { %s7559_s16 = scalar_lea.vmem %s45_s13, 128  ;;  %p7564_p2 = scmp.lt.s32.totalorder %s45_s13, %s45_s13 }
  0x2a   :  { %p7560_p1 = scmp.ne.s32.totalorder %s45_s13, %s7559_s16  ;;  %p7565_p3 = scmp.lt.s32.totalorder %s7559_s16, %s7559_s16 }
  0x2c   :  { %p7566_p4 = por %p7565_p3, %p7564_p2 }
  0x2e   :  { %p7567_p5 = pnand %p7566_p4, %p7560_p1 }
  0x30   :  { %7570 = shalt.err (!%p7567_p5)
}
  0x31   :  { %47 = dma.hbm_to_vmem [thread:$0]  %s8028_s2, 128, %s45_s13, [#allocation6]  }
  0x32   :  { %s7579_s19 = scalar_lea.vmem %s67_s15, 96  ;;  %p7584_p7 = scmp.lt.s32.totalorder %s67_s15, %s67_s15 }
  0x33   :  { %p7580_p6 = scmp.ne.s32.totalorder %s67_s15, %s7579_s19  ;;  %p7585_p8 = scmp.lt.s32.totalorder %s7579_s19, %s7579_s19 }
  0x35   :  { %p7586_p9 = por %p7585_p8, %p7584_p7 }
  0x37   :  { %p7587_p10 = pnand %p7586_p9, %p7580_p6 }
  0x39   :  { %7590 = shalt.err (!%p7587_p10)
}
  0x3a   :  { %69 = dma.hbm_to_vmem [thread:$0]  %s8030_s4, 96, %s67_s15, [#allocation9]  }
  0x3b   :  { %7611 = dma.done.wait [#allocation3], 3072  }
  0x3c   :  { %7612 = vsyncadd [#allocation3], 4294964224 }
  0x3d   :  { %7613 = dma.done.wait [#allocation6], 49280  }
  0x3e   :  { %7614 = vsyncadd [#allocation6], 4294918016 }
  0x3f   :  { %7615 = dma.done.wait [#allocation9], 49248  }
  0x40   :  { %7616 = vsyncadd [#allocation9], 4294918048  ;;  %v177_v0 = vld [vmem:[#allocation5 + $0x1c0] sm:$0xff]  ;;  %v86_v54 = vld [vmem:[#allocation2 + $0x8] sm:$0xff]  ;;  %s7630_s2 = smov [#allocation11]  }
  0x41   :  { %v181_v1 = vld [vmem:[#allocation5 + $0x1e0] sm:$0xff]  ;;  %v92_v55 = vld [vmem:[#allocation2 + $0x38] sm:$0xff]  ;;  %v94_v60 = vld [vmem:[#allocation2 + $0x48] sm:$0xff]  ;;  %s6120_s4 = sshll.u32 %s7630_s2, 4  ;;  %s6121_s4 = int_to_ptr.vmem [resolvable:$true] %s6120_s4 }
  0x42   :  { %v305_v2 = vld [vmem:[#allocation5 + $0x5c0] sm:$0xff]  ;;  %v6191_v3 = vcombine.high %v177_v0, %v181_v1  ;;  %v6190_v5 = vcombine.low %v177_v0, %v181_v1  ;;  %v7679_v58 = vpack.c.bf16 %v92_v55, %v86_v54  ;;  %v88_v59 = vld [vmem:[#allocation2 + $0x18] sm:$0xff]  ;;  %s7591_s21 = scalar_lea.vmem %s6121_s4, 3072  ;;  %p7596_p12 = scmp.lt.s32.totalorder %s6121_s4, %s6121_s4 }
  0x43   :  { %v309_v4 = vld [vmem:[#allocation5 + $0x5e0] sm:$0xff]  ;;  %v7681_v63 = vpack.c.bf16 %v94_v60, %v88_v59  ;;  %p7592_p11 = scmp.ne.s32.totalorder %s6121_s4, %s7591_s21  ;;  %p7597_p13 = scmp.lt.s32.totalorder %s7591_s21, %s7591_s21 }
  0x44   :  { %v169_v6 = vld [vmem:[#allocation5 + $0x180] sm:$0xff]  ;;  %v6319_v8 = vcombine.high %v305_v2, %v309_v4  ;;  %v6318_v9 = vcombine.low %v305_v2, %v309_v4  ;;  %2467 = vmatprep.subr.bf16.mxu0 %v6191_v3  ;;  %2499 = vmatprep.mubr.bf16.mxu0 %v7679_v58 }
  0x45   :  { %v173_v7 = vld [vmem:[#allocation5 + $0x1a0] sm:$0xff]  ;;  %2468 = vmatpush1.bf16.msra.mxu0 %v6190_v5  ;;  %2552 = vmatprep.mubr.bf16.mxu1 %v7681_v63  ;;  %p7598_p0 = por %p7597_p13, %p7596_p12 }
  0x46   :  { %v6183_v10 = vcombine.high %v169_v6, %v173_v7  ;;  %v297_v11 = vld [vmem:[#allocation5 + $0x580] sm:$0xff]  ;;  %2520 = vmatprep.subr.bf16.mxu1 %v6319_v8  ;;  %v6182_v18 = vcombine.low %v169_v6, %v173_v7 }
  0x47   :  { %v301_v12 = vld [vmem:[#allocation5 + $0x5a0] sm:$0xff]  ;;  %2521 = vmatpush1.bf16.msra.mxu1 %v6318_v9  ;;  %p7599_p1 = pnand %p7598_p0, %p7592_p11 }
  0x48   :  { %v161_v13 = vld [vmem:[#allocation5 + $0x140] sm:$0xff]  ;;  %v6311_v14 = vcombine.high %v297_v11, %v301_v12  ;;  %2469 = vmatprep.subr.bf16.mxu0 %v6183_v10  ;;  %v6310_v19 = vcombine.low %v297_v11, %v301_v12 }
  0x49   :  { %v165_v15 = vld [vmem:[#allocation5 + $0x160] sm:$0xff]  ;;  %2470 = vmatpush1.bf16.msra.mxu0 %v6182_v18 }
  0x4a   :  { %v289_v16 = vld [vmem:[#allocation5 + $0x540] sm:$0xff]  ;;  %v6175_v20 = vcombine.high %v161_v13, %v165_v15  ;;  %2522 = vmatprep.subr.bf16.mxu1 %v6311_v14  ;;  %v6174_v26 = vcombine.low %v161_v13, %v165_v15 }
  0x4b   :  { %v293_v17 = vld [vmem:[#allocation5 + $0x560] sm:$0xff]  ;;  %2523 = vmatpush1.bf16.msra.mxu1 %v6310_v19 }
  0x4c   :  { %v6303_v21 = vcombine.high %v289_v16, %v293_v17  ;;  %v153_v22 = vld [vmem:[#allocation5 + $0x100] sm:$0xff]  ;;  %2471 = vmatprep.subr.bf16.mxu0 %v6175_v20  ;;  %v6302_v27 = vcombine.low %v289_v16, %v293_v17 }
  0x4d   :  { %v157_v23 = vld [vmem:[#allocation5 + $0x120] sm:$0xff]  ;;  %2472 = vmatpush1.bf16.msra.mxu0 %v6174_v26 }
  0x4e   :  { %v281_v24 = vld [vmem:[#allocation5 + $0x500] sm:$0xff]  ;;  %v6167_v28 = vcombine.high %v153_v22, %v157_v23  ;;  %2524 = vmatprep.subr.bf16.mxu1 %v6303_v21  ;;  %v6166_v34 = vcombine.low %v153_v22, %v157_v23 }
  0x4f   :  { %v285_v25 = vld [vmem:[#allocation5 + $0x520] sm:$0xff]  ;;  %2525 = vmatpush1.bf16.msra.mxu1 %v6302_v27 }
  0x50   :  { %v6295_v29 = vcombine.high %v281_v24, %v285_v25  ;;  %v145_v30 = vld [vmem:[#allocation5 + $0xc0] sm:$0xff]  ;;  %2473 = vmatprep.subr.bf16.mxu0 %v6167_v28  ;;  %v6294_v35 = vcombine.low %v281_v24, %v285_v25 }
  0x51   :  { %v149_v31 = vld [vmem:[#allocation5 + $0xe0] sm:$0xff]  ;;  %2474 = vmatpush1.bf16.msra.mxu0 %v6166_v34 }
  0x52   :  { %v273_v32 = vld [vmem:[#allocation5 + $0x4c0] sm:$0xff]  ;;  %v6159_v36 = vcombine.high %v145_v30, %v149_v31  ;;  %2526 = vmatprep.subr.bf16.mxu1 %v6295_v29  ;;  %v6158_v42 = vcombine.low %v145_v30, %v149_v31 }
  0x53   :  { %v277_v33 = vld [vmem:[#allocation5 + $0x4e0] sm:$0xff]  ;;  %2527 = vmatpush1.bf16.msra.mxu1 %v6294_v35 }
  0x54   :  { %v6287_v37 = vcombine.high %v273_v32, %v277_v33  ;;  %v137_v38 = vld [vmem:[#allocation5 + $0x80] sm:$0xff]  ;;  %2475 = vmatprep.subr.bf16.mxu0 %v6159_v36  ;;  %v6286_v43 = vcombine.low %v273_v32, %v277_v33 }
  0x55   :  { %v141_v39 = vld [vmem:[#allocation5 + $0xa0] sm:$0xff]  ;;  %2476 = vmatpush1.bf16.msra.mxu0 %v6158_v42 }
  0x56   :  { %v265_v40 = vld [vmem:[#allocation5 + $0x480] sm:$0xff]  ;;  %v6151_v44 = vcombine.high %v137_v38, %v141_v39  ;;  %2528 = vmatprep.subr.bf16.mxu1 %v6287_v37  ;;  %v6150_v50 = vcombine.low %v137_v38, %v141_v39 }
  0x57   :  { %v269_v41 = vld [vmem:[#allocation5 + $0x4a0] sm:$0xff]  ;;  %2529 = vmatpush1.bf16.msra.mxu1 %v6286_v43 }
  0x58   :  { %v6279_v45 = vcombine.high %v265_v40, %v269_v41  ;;  %v129_v46 = vld [vmem:[#allocation5 + $0x40] sm:$0xff]  ;;  %2477 = vmatprep.subr.bf16.mxu0 %v6151_v44  ;;  %v6278_v51 = vcombine.low %v265_v40, %v269_v41 }
  0x59   :  { %v133_v47 = vld [vmem:[#allocation5 + $0x60] sm:$0xff]  ;;  %2478 = vmatpush1.bf16.msra.mxu0 %v6150_v50 }
  0x5a   :  { %v257_v48 = vld [vmem:[#allocation5 + $0x440] sm:$0xff]  ;;  %v6143_v52 = vcombine.high %v129_v46, %v133_v47  ;;  %2530 = vmatprep.subr.bf16.mxu1 %v6279_v45  ;;  %v6142_v0 = vcombine.low %v129_v46, %v133_v47 }
  0x5b   :  { %v261_v49 = vld [vmem:[#allocation5 + $0x460] sm:$0xff]  ;;  %2531 = vmatpush1.bf16.msra.mxu1 %v6278_v51 }
  0x5c   :  { %v121_v53 = vld [vmem:[#allocation5] sm:$0xff]  ;;  %v6271_v56 = vcombine.high %v257_v48, %v261_v49  ;;  %2479 = vmatprep.subr.bf16.mxu0 %v6143_v52  ;;  %v6270_v1 = vcombine.low %v257_v48, %v261_v49 }
  0x5d   :  { %v125_v57 = vld [vmem:[#allocation5 + $0x20] sm:$0xff]  ;;  %2480 = vmatpush1.bf16.msra.mxu0 %v6142_v0 }
  0x5e   :  { %v249_v61 = vld [vmem:[#allocation5 + $0x400] sm:$0xff]  ;;  %v6135_v2 = vcombine.high %v121_v53, %v125_v57  ;;  %2532 = vmatprep.subr.bf16.mxu1 %v6271_v56  ;;  %v6134_v8 = vcombine.low %v121_v53, %v125_v57 }
  0x5f   :  { %v253_v62 = vld [vmem:[#allocation5 + $0x420] sm:$0xff]  ;;  %2533 = vmatpush1.bf16.msra.mxu1 %v6270_v1 }
  0x60   :  { %v6263_v3 = vcombine.high %v249_v61, %v253_v62  ;;  %v241_v4 = vld [vmem:[#allocation5 + $0x3c0] sm:$0xff]  ;;  %2481 = vmatprep.subr.bf16.mxu0 %v6135_v2  ;;  %v6262_v9 = vcombine.low %v249_v61, %v253_v62 }
  0x61   :  { %v245_v5 = vld [vmem:[#allocation5 + $0x3e0] sm:$0xff]  ;;  %2482 = vmatpush1.bf16.msra.mxu0 %v6134_v8  ;;  %v178_v8 = vld [vmem:[#allocation5 + $0x1c8] sm:$0xff] }
  0x62   :  { %v369_v6 = vld [vmem:[#allocation5 + $0x7c0] sm:$0xff]  ;;  %v6255_v10 = vcombine.high %v241_v4, %v245_v5  ;;  %2534 = vmatprep.subr.bf16.mxu1 %v6263_v3  ;;  %v6254_v16 = vcombine.low %v241_v4, %v245_v5 }
  0x63   :  { %v373_v7 = vld [vmem:[#allocation5 + $0x7e0] sm:$0xff]  ;;  %2535 = vmatpush1.bf16.msra.mxu1 %v6262_v9  ;;  %v182_v9 = vld [vmem:[#allocation5 + $0x1e8] sm:$0xff] }
  0x64   :  { %v6383_v11 = vcombine.high %v369_v6, %v373_v7  ;;  %v233_v12 = vld [vmem:[#allocation5 + $0x380] sm:$0xff]  ;;  %2483 = vmatprep.subr.bf16.mxu0 %v6255_v10  ;;  %v6382_v17 = vcombine.low %v369_v6, %v373_v7 }
  0x65   :  { %v237_v13 = vld [vmem:[#allocation5 + $0x3a0] sm:$0xff]  ;;  %2484 = vmatpush2.bf16.msra.mxu0 %v6254_v16 }
  0x66   :  { %v361_v14 = vld [vmem:[#allocation5 + $0x780] sm:$0xff]  ;;  %v6247_v18 = vcombine.high %v233_v12, %v237_v13  ;;  %2536 = vmatprep.subr.bf16.mxu1 %v6383_v11  ;;  %v6246_v24 = vcombine.low %v233_v12, %v237_v13  ;;  %v91_v12 = vld [vmem:[#allocation2 + $0x30] sm:$0xff] }
  0x67   :  { %v365_v15 = vld [vmem:[#allocation5 + $0x7a0] sm:$0xff]  ;;  %2537 = vmatpush2.bf16.msra.mxu1 %v6382_v17  ;;  %v6193_v17 = vcombine.high %v178_v8, %v182_v9 }
  0x68   :  { %v6375_v19 = vcombine.high %v361_v14, %v365_v15  ;;  %v225_v20 = vld [vmem:[#allocation5 + $0x340] sm:$0xff]  ;;  %2485 = vmatprep.subr.bf16.mxu0 %v6247_v18  ;;  %v6374_v25 = vcombine.low %v361_v14, %v365_v15  ;;  %v87_v14 = vld [vmem:[#allocation2 + $0x10] sm:$0xff] }
  0x69   :  { %v229_v21 = vld [vmem:[#allocation5 + $0x360] sm:$0xff]  ;;  %2486 = vmatpush2.bf16.msra.mxu0 %v6246_v24  ;;  %v104_v24 = vld [vmem:[#allocation2 + $0x98] sm:$0xff] }
  0x6a   :  { %v353_v22 = vld [vmem:[#allocation5 + $0x740] sm:$0xff]  ;;  %v6239_v26 = vcombine.high %v225_v20, %v229_v21  ;;  %2538 = vmatprep.subr.bf16.mxu1 %v6375_v19  ;;  %v6238_v32 = vcombine.low %v225_v20, %v229_v21  ;;  %v170_v20 = vld [vmem:[#allocation5 + $0x188] sm:$0xff] }
  0x6b   :  { %v357_v23 = vld [vmem:[#allocation5 + $0x760] sm:$0xff]  ;;  %2539 = vmatpush2.bf16.msra.mxu1 %v6374_v25 }
  0x6c   :  { %v6367_v27 = vcombine.high %v353_v22, %v357_v23  ;;  %v217_v28 = vld [vmem:[#allocation5 + $0x300] sm:$0xff]  ;;  %2487 = vmatprep.subr.bf16.mxu0 %v6239_v26  ;;  %v6366_v33 = vcombine.low %v353_v22, %v357_v23  ;;  %v174_v22 = vld [vmem:[#allocation5 + $0x1a8] sm:$0xff] }
  0x6d   :  { %v221_v29 = vld [vmem:[#allocation5 + $0x320] sm:$0xff]  ;;  %2488 = vmatpush2.bf16.msra.mxu0 %v6238_v32  ;;  %v98_v23 = vld [vmem:[#allocation2 + $0x68] sm:$0xff] }
  0x6e   :  { %v345_v30 = vld [vmem:[#allocation5 + $0x700] sm:$0xff]  ;;  %v6231_v34 = vcombine.high %v217_v28, %v221_v29  ;;  %2540 = vmatprep.subr.bf16.mxu1 %v6367_v27  ;;  %v6230_v40 = vcombine.low %v217_v28, %v221_v29  ;;  %v100_v27 = vld [vmem:[#allocation2 + $0x78] sm:$0xff]  ;;  %v106_v28 = vld [vmem:[#allocation2 + $0xa8] sm:$0xff]  ;;  %v6192_v29 = vcombine.low %v178_v8, %v182_v9 }
  0x6f   :  { %v349_v31 = vld [vmem:[#allocation5 + $0x720] sm:$0xff]  ;;  %2541 = vmatpush2.bf16.msra.mxu1 %v6366_v33  ;;  %v142_v8 = vld [vmem:[#allocation5 + $0xa8] sm:$0xff] }
  0x70   :  { %v6359_v35 = vcombine.high %v345_v30, %v349_v31  ;;  %v209_v36 = vld [vmem:[#allocation5 + $0x2c0] sm:$0xff]  ;;  %2489 = vmatprep.subr.bf16.mxu0 %v6231_v34  ;;  %v6358_v41 = vcombine.low %v345_v30, %v349_v31  ;;  %v6185_v31 = vcombine.high %v170_v20, %v174_v22  ;;  %v7689_v34 = vpack.c.bf16 %v104_v24, %v98_v23  ;;  %v122_v23 = vld [vmem:[#allocation5 + $0x8] sm:$0xff] }
  0x71   :  { %v213_v37 = vld [vmem:[#allocation5 + $0x2e0] sm:$0xff]  ;;  %2490 = vmatpush2.bf16.msra.mxu0 %v6230_v40  ;;  %v103_v40 = vld [vmem:[#allocation2 + $0x90] sm:$0xff] }
  0x72   :  { %v337_v38 = vld [vmem:[#allocation5 + $0x6c0] sm:$0xff]  ;;  %v6223_v42 = vcombine.high %v209_v36, %v213_v37  ;;  %2542 = vmatprep.subr.bf16.mxu1 %v6359_v35  ;;  %v6222_v48 = vcombine.low %v209_v36, %v213_v37  ;;  %v162_v35 = vld [vmem:[#allocation5 + $0x148] sm:$0xff]  ;;  %v7692_v37 = vpack.c.bf16 %v106_v28, %v100_v27 }
  0x73   :  { %v341_v39 = vld [vmem:[#allocation5 + $0x6e0] sm:$0xff]  ;;  %2543 = vmatpush2.bf16.msra.mxu1 %v6358_v41  ;;  %v166_v36 = vld [vmem:[#allocation5 + $0x168] sm:$0xff]  ;;  %v6184_v41 = vcombine.low %v170_v20, %v174_v22 }
  0x74   :  { %v6351_v43 = vcombine.high %v337_v38, %v341_v39  ;;  %v201_v44 = vld [vmem:[#allocation5 + $0x280] sm:$0xff]  ;;  %2491 = vmatprep.subr.bf16.mxu0 %v6223_v42  ;;  %v6350_v49 = vcombine.low %v337_v38, %v341_v39 }
  0x75   :  { %v205_v45 = vld [vmem:[#allocation5 + $0x2a0] sm:$0xff]  ;;  %2492 = vmatpush2.bf16.msra.mxu0 %v6222_v48  ;;  %v154_v48 = vld [vmem:[#allocation5 + $0x108] sm:$0xff] }
  0x76   :  { %v329_v46 = vld [vmem:[#allocation5 + $0x680] sm:$0xff]  ;;  %v6215_v50 = vcombine.high %v201_v44, %v205_v45  ;;  %2544 = vmatprep.subr.bf16.mxu1 %v6351_v43  ;;  %v6214_v56 = vcombine.low %v201_v44, %v205_v45  ;;  %v99_v43 = vld [vmem:[#allocation2 + $0x70] sm:$0xff]  ;;  %v6177_v45 = vcombine.high %v162_v35, %v166_v36 }
  0x77   :  { %v333_v47 = vld [vmem:[#allocation5 + $0x6a0] sm:$0xff]  ;;  %2545 = vmatpush2.bf16.msra.mxu1 %v6350_v49  ;;  %v158_v49 = vld [vmem:[#allocation5 + $0x128] sm:$0xff] }
  0x78   :  { %v6343_v51 = vcombine.high %v329_v46, %v333_v47  ;;  %v193_v52 = vld [vmem:[#allocation5 + $0x240] sm:$0xff]  ;;  %2493 = vmatprep.subr.bf16.mxu0 %v6215_v50  ;;  %v6342_v57 = vcombine.low %v329_v46, %v333_v47 }
  0x79   :  { %v197_v53 = vld [vmem:[#allocation5 + $0x260] sm:$0xff]  ;;  %2494 = vmatpush2.bf16.msra.mxu0 %v6214_v56 }
  0x7a   :  { %v321_v54 = vld [vmem:[#allocation5 + $0x640] sm:$0xff]  ;;  %v6207_v59 = vcombine.high %v193_v52, %v197_v53  ;;  %2546 = vmatprep.subr.bf16.mxu1 %v6343_v51  ;;  %v6206_v2 = vcombine.low %v193_v52, %v197_v53  ;;  %v90_v51 = vld [vmem:[#allocation2 + $0x28] sm:$0xff]  ;;  %v96_v52 = vld [vmem:[#allocation2 + $0x58] sm:$0xff] }
  0x7b   :  { %v325_v55 = vld [vmem:[#allocation5 + $0x660] sm:$0xff]  ;;  %2547 = vmatpush2.bf16.msra.mxu1 %v6342_v57  ;;  %v6169_v57 = vcombine.high %v154_v48, %v158_v49 }
  0x7c   :  { %v6335_v60 = vcombine.high %v321_v54, %v325_v55  ;;  %v185_v61 = vld [vmem:[#allocation5 + $0x200] sm:$0xff]  ;;  %2495 = vmatprep.subr.bf16.mxu0 %v6207_v59  ;;  %v6334_v3 = vcombine.low %v321_v54, %v325_v55  ;;  %v6176_v55 = vcombine.low %v162_v35, %v166_v36  ;;  %v246_v35 = vld [vmem:[#allocation5 + $0x3e8] sm:$0xff] }
  0x7d   :  { %v189_v62 = vld [vmem:[#allocation5 + $0x220] sm:$0xff]  ;;  %2496 = vmatpush2.bf16.msra.mxu0 %v6206_v2  ;;  %v6168_v2 = vcombine.low %v154_v48, %v158_v49 }
  0x7e   :  { %v313_v0 = vld [vmem:[#allocation5 + $0x600] sm:$0xff]  ;;  %v6199_v4 = vcombine.high %v185_v61, %v189_v62  ;;  %2548 = vmatprep.subr.bf16.mxu1 %v6335_v60  ;;  %v6198_v10 = vcombine.low %v185_v61, %v189_v62  ;;  %v7701_v61 = vpack.c.bf16 %v96_v52, %v90_v51  ;;  %v146_v62 = vld [vmem:[#allocation5 + $0xc8] sm:$0xff] }
  0x7f   :  { %v317_v1 = vld [vmem:[#allocation5 + $0x620] sm:$0xff]  ;;  %2549 = vmatpush2.bf16.msra.mxu1 %v6334_v3  ;;  %v226_v51 = vld [vmem:[#allocation5 + $0x348] sm:$0xff] }
  0x80   :  { %v6327_v5 = vcombine.high %v313_v0, %v317_v1  ;;  %v433_v6 = vld [vmem:[#allocation5 + $0x9c0] sm:$0xff]  ;;  %2497 = vmatprep.subr.bf16.mxu0 %v6199_v4  ;;  %v6326_v13 = vcombine.low %v313_v0, %v317_v1  ;;  %v150_v0 = vld [vmem:[#allocation5 + $0xe8] sm:$0xff] }
  0x81   :  { %v437_v7 = vld [vmem:[#allocation5 + $0x9e0] sm:$0xff]  ;;  %2498 = vmatpush2.bf16.msra.mxu0 %v6198_v10  ;;  %v6160_v10 = vcombine.low %v146_v62, %v150_v0 }
  0x82   :  { %v85_v11 = vld [vmem:[#allocation2] sm:$0xff]  ;;  %v6447_v16 = vcombine.high %v433_v6, %v437_v7  ;;  %2550 = vmatprep.subr.bf16.mxu1 %v6327_v5  ;;  %v6446_v26 = vcombine.low %v433_v6, %v437_v7  ;;  %v138_v6 = vld [vmem:[#allocation5 + $0x88] sm:$0xff]  ;;  %v6161_v7 = vcombine.high %v146_v62, %v150_v0 }
  0x83   :  { %v93_v15 = vld [vmem:[#allocation2 + $0x40] sm:$0xff]  ;;  %v7685_v21 = vpack.c.bf16 %v91_v12, %v85_v11  ;;  %2551 = vmatpush2.bf16.msra.mxu1 %v6326_v13  ;;  %v218_v62 = vld [vmem:[#allocation5 + $0x308] sm:$0xff] }
  0x84   :  { %v425_v18 = vld [vmem:[#allocation5 + $0x980] sm:$0xff]  ;;  %v7687_v25 = vpack.c.bf16 %v93_v15, %v87_v14  ;;  %2573 = vmatprep.subr.bf16.mxu0 %v6447_v16  ;;  %2626 = vmatprep.subr.bf16.mxu1 %v6193_v17  ;;  %v130_v14 = vld [vmem:[#allocation5 + $0x48] sm:$0xff]  ;;  %v6153_v15 = vcombine.high %v138_v6, %v142_v8 }
  0x85   :  { %v429_v19 = vld [vmem:[#allocation5 + $0x9a0] sm:$0xff]  ;;  %2500 = vmatmul.mubr.bf16.vlgmr.msra.gmra.mxu0 %v7685_v21  ;;  %v134_v16 = vld [vmem:[#allocation5 + $0x68] sm:$0xff] }
  0x86   :  { %v6439_v30 = vcombine.high %v425_v18, %v429_v19  ;;  %v417_v32 = vld [vmem:[#allocation5 + $0x940] sm:$0xff]  ;;  %2553 = vmatmul.mubr.bf16.vlgmr.msra.gmra.mxu1 %v7687_v25  ;;  %2574 = vmatpush1.bf16.msra.mxu0 %v6446_v26  ;;  %v6438_v38 = vcombine.low %v425_v18, %v429_v19  ;;  %v6152_v18 = vcombine.low %v138_v6, %v142_v8  ;;  %v126_v26 = vld [vmem:[#allocation5 + $0x28] sm:$0xff] }
  0x87   :  { %v421_v33 = vld [vmem:[#allocation5 + $0x960] sm:$0xff]  ;;  %2627 = vmatpush1.bf16.msra.mxu1 %v6192_v29  ;;  %2509 = vmatprep.mubr.bf16.mxu0 %v7689_v34  ;;  %v6145_v24 = vcombine.high %v130_v14, %v134_v16  ;;  %v6144_v28 = vcombine.low %v130_v14, %v134_v16 }
  0x88   :  { %v97_v39 = vld [vmem:[#allocation2 + $0x60] sm:$0xff]  ;;  %2575 = vmatprep.subr.bf16.mxu0 %v6439_v30  ;;  %v6431_v42 = vcombine.high %v417_v32, %v421_v33  ;;  %2628 = vmatprep.subr.bf16.mxu1 %v6185_v31  ;;  %v6430_v53 = vcombine.low %v417_v32, %v421_v33  ;;  %v242_v32 = vld [vmem:[#allocation5 + $0x3c8] sm:$0xff]  ;;  %v6137_v33 = vcombine.high %v122_v23, %v126_v26 }
  0x89   :  { %v105_v44 = vld [vmem:[#allocation2 + $0xa0] sm:$0xff]  ;;  %v7696_v50 = vpack.c.bf16 %v103_v40, %v97_v39  ;;  %2562 = vmatprep.mubr.bf16.mxu1 %v7692_v37 }
  0x8a   :  { %v409_v46 = vld [vmem:[#allocation5 + $0x900] sm:$0xff]  ;;  %2576 = vmatpush1.bf16.msra.mxu0 %v6438_v38  ;;  %v7699_v54 = vpack.c.bf16 %v105_v44, %v99_v43  ;;  %v6136_v38 = vcombine.low %v122_v23, %v126_v26  ;;  %v6257_v43 = vcombine.high %v242_v32, %v246_v35  ;;  %v238_v44 = vld [vmem:[#allocation5 + $0x3a8] sm:$0xff] }
  0x8b   :  { %v413_v47 = vld [vmem:[#allocation5 + $0x920] sm:$0xff]  ;;  %2629 = vmatpush1.bf16.msra.mxu1 %v6184_v41  ;;  %2577 = vmatprep.subr.bf16.mxu0 %v6431_v42  ;;  %v234_v42 = vld [vmem:[#allocation5 + $0x388] sm:$0xff] }
  0x8c   :  { %v6423_v56 = vcombine.high %v409_v46, %v413_v47  ;;  %2630 = vmatprep.subr.bf16.mxu1 %v6177_v45  ;;  %v401_v59 = vld [vmem:[#allocation5 + $0x8c0] sm:$0xff]  ;;  %v6422_v1 = vcombine.low %v409_v46, %v413_v47  ;;  %v6256_v46 = vcombine.low %v242_v32, %v246_v35  ;;  %v6249_v52 = vcombine.high %v234_v42, %v238_v44 }
  0x8d   :  { %v405_v60 = vld [vmem:[#allocation5 + $0x8e0] sm:$0xff]  ;;  %2510 = vmatmul.mubr.bf16.gmra.mxu0 %v7696_v50 }
  0x8e   :  { %2578 = vmatpush1.bf16.msra.mxu0 %v6430_v53  ;;  %2563 = vmatmul.mubr.bf16.gmra.mxu1 %v7699_v54  ;;  %v6415_v3 = vcombine.high %v401_v59, %v405_v60  ;;  %v393_v4 = vld [vmem:[#allocation5 + $0x880] sm:$0xff]  ;;  %v6414_v9 = vcombine.low %v401_v59, %v405_v60  ;;  %v230_v53 = vld [vmem:[#allocation5 + $0x368] sm:$0xff] }
  0x8f   :  { %2631 = vmatpush1.bf16.msra.mxu1 %v6176_v55  ;;  %2579 = vmatprep.subr.bf16.mxu0 %v6423_v56  ;;  %v397_v5 = vld [vmem:[#allocation5 + $0x8a0] sm:$0xff]  ;;  %v6248_v56 = vcombine.low %v234_v42, %v238_v44  ;;  %v6241_v0 = vcombine.high %v226_v51, %v230_v53  ;;  %v310_v42 = vld [vmem:[#allocation5 + $0x5e8] sm:$0xff] }
  0x90   :  { %2632 = vmatprep.subr.bf16.mxu1 %v6169_v57  ;;  %2605 = vmatprep.mubr.bf16.mxu0 %v7701_v61  ;;  %v6407_v11 = vcombine.high %v393_v4, %v397_v5  ;;  %v385_v12 = vld [vmem:[#allocation5 + $0x840] sm:$0xff]  ;;  %v6406_v17 = vcombine.low %v393_v4, %v397_v5 }
  0x91   :  { %2658 = vmatprep.mubr.bf16.mxu1 %v7679_v58  ;;  %v389_v13 = vld [vmem:[#allocation5 + $0x860] sm:$0xff] }
  0x92   :  { %2580 = vmatpush1.bf16.msra.mxu0 %v6422_v1  ;;  %v6399_v19 = vcombine.high %v385_v12, %v389_v13  ;;  %v377_v20 = vld [vmem:[#allocation5 + $0x800] sm:$0xff]  ;;  %v6398_v27 = vcombine.low %v385_v12, %v389_v13  ;;  %v222_v1 = vld [vmem:[#allocation5 + $0x328] sm:$0xff] }
  0x93   :  { %2633 = vmatpush1.bf16.msra.mxu1 %v6168_v2  ;;  %2581 = vmatprep.subr.bf16.mxu0 %v6415_v3  ;;  %v381_v22 = vld [vmem:[#allocation5 + $0x820] sm:$0xff]  ;;  %v6240_v3 = vcombine.low %v226_v51, %v230_v53  ;;  %v6233_v8 = vcombine.high %v218_v62, %v222_v1  ;;  %v302_v51 = vld [vmem:[#allocation5 + $0x5a8] sm:$0xff] }
  0x94   :  { %2634 = vmatprep.subr.bf16.mxu1 %v6161_v7  ;;  %v6391_v29 = vcombine.high %v377_v20, %v381_v22  ;;  %v497_v30 = vld [vmem:[#allocation5 + $0xbc0] sm:$0xff]  ;;  %v6390_v36 = vcombine.low %v377_v20, %v381_v22  ;;  %v210_v7 = vld [vmem:[#allocation5 + $0x2c8] sm:$0xff] }
  0x95   :  { %v501_v31 = vld [vmem:[#allocation5 + $0xbe0] sm:$0xff] }
  0x96   :  { %2582 = vmatpush1.bf16.msra.mxu0 %v6414_v9  ;;  %v6511_v39 = vcombine.high %v497_v30, %v501_v31  ;;  %v489_v40 = vld [vmem:[#allocation5 + $0xb80] sm:$0xff]  ;;  %v6510_v45 = vcombine.low %v497_v30, %v501_v31  ;;  %v214_v9 = vld [vmem:[#allocation5 + $0x2e8] sm:$0xff] }
  0x97   :  { %2635 = vmatpush1.bf16.msra.mxu1 %v6160_v10  ;;  %2583 = vmatprep.subr.bf16.mxu0 %v6407_v11  ;;  %v493_v41 = vld [vmem:[#allocation5 + $0xba0] sm:$0xff]  ;;  %v6232_v11 = vcombine.low %v218_v62, %v222_v1  ;;  %v6225_v16 = vcombine.high %v210_v7, %v214_v9 }
  0x98   :  { %2636 = vmatprep.subr.bf16.mxu1 %v6153_v15  ;;  %v6503_v47 = vcombine.high %v489_v40, %v493_v41  ;;  %v481_v48 = vld [vmem:[#allocation5 + $0xb40] sm:$0xff]  ;;  %v6502_v55 = vcombine.low %v489_v40, %v493_v41  ;;  %v202_v15 = vld [vmem:[#allocation5 + $0x288] sm:$0xff] }
  0x99   :  { %v485_v49 = vld [vmem:[#allocation5 + $0xb60] sm:$0xff]  ;;  %v306_v41 = vld [vmem:[#allocation5 + $0x5c8] sm:$0xff] }
  0x9a   :  { %2584 = vmatpush1.bf16.msra.mxu0 %v6406_v17  ;;  %v6495_v57 = vcombine.high %v481_v48, %v485_v49  ;;  %v473_v59 = vld [vmem:[#allocation5 + $0xb00] sm:$0xff]  ;;  %v6494_v2 = vcombine.low %v481_v48, %v485_v49  ;;  %v206_v17 = vld [vmem:[#allocation5 + $0x2a8] sm:$0xff]  ;;  %v6321_v53 = vcombine.high %v306_v41, %v310_v42 }
  0x9b   :  { %2637 = vmatpush1.bf16.msra.mxu1 %v6152_v18  ;;  %2585 = vmatprep.subr.bf16.mxu0 %v6399_v19  ;;  %v477_v60 = vld [vmem:[#allocation5 + $0xb20] sm:$0xff]  ;;  %v6224_v19 = vcombine.low %v210_v7, %v214_v9  ;;  %v6217_v26 = vcombine.high %v202_v15, %v206_v17  ;;  %v298_v49 = vld [vmem:[#allocation5 + $0x588] sm:$0xff] }
  0x9c   :  { %2638 = vmatprep.subr.bf16.mxu1 %v6145_v24  ;;  %v6487_v4 = vcombine.high %v473_v59, %v477_v60  ;;  %v465_v5 = vld [vmem:[#allocation5 + $0xac0] sm:$0xff]  ;;  %v6486_v10 = vcombine.low %v473_v59, %v477_v60  ;;  %v194_v24 = vld [vmem:[#allocation5 + $0x248] sm:$0xff]  ;;  %v108_v60 = vld [vmem:[#allocation2 + $0xb8] sm:$0xff] }
  0x9d   :  { %v469_v6 = vld [vmem:[#allocation5 + $0xae0] sm:$0xff]  ;;  %v418_v9 = vld [vmem:[#allocation5 + $0x948] sm:$0xff] }
  0x9e   :  { %2586 = vmatpush1.bf16.msra.mxu0 %v6398_v27  ;;  %v6479_v12 = vcombine.high %v465_v5, %v469_v6  ;;  %v457_v13 = vld [vmem:[#allocation5 + $0xa80] sm:$0xff]  ;;  %v6478_v18 = vcombine.low %v465_v5, %v469_v6  ;;  %v198_v27 = vld [vmem:[#allocation5 + $0x268] sm:$0xff] }
  0x9f   :  { %2639 = vmatpush1.bf16.msra.mxu1 %v6144_v28  ;;  %2587 = vmatprep.subr.bf16.mxu0 %v6391_v29  ;;  %v461_v14 = vld [vmem:[#allocation5 + $0xaa0] sm:$0xff]  ;;  %v6216_v29 = vcombine.low %v202_v15, %v206_v17  ;;  %v6209_v35 = vcombine.high %v194_v24, %v198_v27  ;;  %v286_v15 = vld [vmem:[#allocation5 + $0x528] sm:$0xff] }
  0xa0   :  { %2640 = vmatprep.subr.bf16.mxu1 %v6137_v33  ;;  %v6471_v20 = vcombine.high %v457_v13, %v461_v14  ;;  %v449_v22 = vld [vmem:[#allocation5 + $0xa40] sm:$0xff]  ;;  %v6470_v28 = vcombine.low %v457_v13, %v461_v14  ;;  %v186_v33 = vld [vmem:[#allocation5 + $0x208] sm:$0xff] }
  0xa1   :  { %v453_v23 = vld [vmem:[#allocation5 + $0xa60] sm:$0xff]  ;;  %v282_v14 = vld [vmem:[#allocation5 + $0x508] sm:$0xff] }
  0xa2   :  { %2588 = vmatpush1.bf16.msra.mxu0 %v6390_v36  ;;  %v6463_v30 = vcombine.high %v449_v22, %v453_v23  ;;  %v441_v31 = vld [vmem:[#allocation5 + $0xa00] sm:$0xff]  ;;  %v190_v36 = vld [vmem:[#allocation5 + $0x228] sm:$0xff] }
  0xa3   :  { %2641 = vmatpush1.bf16.msra.mxu1 %v6136_v38  ;;  %2589 = vmatprep.subr.bf16.mxu0 %v6511_v39  ;;  %v445_v32 = vld [vmem:[#allocation5 + $0xa20] sm:$0xff]  ;;  %v6462_v38 = vcombine.low %v449_v22, %v453_v23  ;;  %v6208_v39 = vcombine.low %v194_v24, %v198_v27  ;;  %v6201_v44 = vcombine.high %v186_v33, %v190_v36  ;;  %v274_v24 = vld [vmem:[#allocation5 + $0x4c8] sm:$0xff] }
  0xa4   :  { %2642 = vmatprep.subr.bf16.mxu1 %v6257_v43  ;;  %v6455_v40 = vcombine.high %v441_v31, %v445_v32  ;;  %v434_v43 = vld [vmem:[#allocation5 + $0x9c8] sm:$0xff]  ;;  %v6454_v48 = vcombine.low %v441_v31, %v445_v32  ;;  %v101_v7 = vld [vmem:[#allocation2 + $0x80] sm:$0xff]  ;;  %v6297_v23 = vcombine.high %v282_v14, %v286_v15 }
  0xa5   :  { %v402_v27 = vld [vmem:[#allocation5 + $0x8c8] sm:$0xff] }
  0xa6   :  { %2590 = vmatpush2.bf16.msra.mxu0 %v6510_v45  ;;  %v89_v45 = vld [vmem:[#allocation2 + $0x20] sm:$0xff] }
  0xa7   :  { %2643 = vmatpush2.bf16.msra.mxu1 %v6256_v46  ;;  %2591 = vmatprep.subr.bf16.mxu0 %v6503_v47  ;;  %v95_v46 = vld [vmem:[#allocation2 + $0x50] sm:$0xff]  ;;  %v438_v47 = vld [vmem:[#allocation5 + $0x9e8] sm:$0xff] }
  0xa8   :  { %2644 = vmatprep.subr.bf16.mxu1 %v6249_v52  ;;  %v6200_v52 = vcombine.low %v186_v33, %v190_v36  ;;  %v6449_v59 = vcombine.high %v434_v43, %v438_v47  ;;  %v7707_v62 = vpack.c.bf16 %v95_v46, %v89_v45  ;;  %v6448_v1 = vcombine.low %v434_v43, %v438_v47  ;;  %v266_v33 = vld [vmem:[#allocation5 + $0x488] sm:$0xff] }
  0xa9   :  { %v394_v36 = vld [vmem:[#allocation5 + $0x888] sm:$0xff] }
  0xaa   :  { %2592 = vmatpush2.bf16.msra.mxu0 %v6502_v55  ;;  %v426_v55 = vld [vmem:[#allocation5 + $0x988] sm:$0xff] }
  0xab   :  { %2645 = vmatpush2.bf16.msra.mxu1 %v6248_v56  ;;  %2593 = vmatprep.subr.bf16.mxu0 %v6495_v57  ;;  %v430_v56 = vld [vmem:[#allocation5 + $0x9a8] sm:$0xff] }
  0xac   :  { %2646 = vmatprep.subr.bf16.mxu1 %v6241_v0  ;;  %v102_v57 = vld [vmem:[#allocation2 + $0x88] sm:$0xff]  ;;  %v6320_v0 = vcombine.low %v306_v41, %v310_v42  ;;  %v6441_v5 = vcombine.high %v426_v55, %v430_v56 }
  0xad   :  { %v7709_v6 = vpack.c.bf16 %v108_v60, %v102_v57  ;;  %v258_v43 = vld [vmem:[#allocation5 + $0x448] sm:$0xff] }
  0xae   :  { %2594 = vmatpush2.bf16.msra.mxu0 %v6494_v2  ;;  %v6313_v2 = vcombine.high %v298_v49, %v302_v51  ;;  %v386_v45 = vld [vmem:[#allocation5 + $0x848] sm:$0xff] }
  0xaf   :  { %2647 = vmatpush2.bf16.msra.mxu1 %v6240_v3  ;;  %2595 = vmatprep.subr.bf16.mxu0 %v6487_v4  ;;  %v290_v3 = vld [vmem:[#allocation5 + $0x548] sm:$0xff] }
  0xb0   :  { %2648 = vmatprep.subr.bf16.mxu1 %v6233_v8  ;;  %v294_v4 = vld [vmem:[#allocation5 + $0x568] sm:$0xff]  ;;  %v107_v8 = vld [vmem:[#allocation2 + $0xb0] sm:$0xff] }
  0xb1   :  { %v6305_v13 = vcombine.high %v290_v3, %v294_v4  ;;  %v390_v47 = vld [vmem:[#allocation5 + $0x868] sm:$0xff] }
  0xb2   :  { %2596 = vmatpush2.bf16.msra.mxu0 %v6486_v10  ;;  %v422_v10 = vld [vmem:[#allocation5 + $0x968] sm:$0xff]  ;;  %v6400_v60 = vcombine.low %v386_v45, %v390_v47 }
  0xb3   :  { %2649 = vmatpush2.bf16.msra.mxu1 %v6232_v11  ;;  %2597 = vmatprep.subr.bf16.mxu0 %v6479_v12  ;;  %v6312_v11 = vcombine.low %v298_v49, %v302_v51  ;;  %v6440_v12 = vcombine.low %v426_v55, %v430_v56  ;;  %v6433_v17 = vcombine.high %v418_v9, %v422_v10  ;;  %v378_v55 = vld [vmem:[#allocation5 + $0x808] sm:$0xff] }
  0xb4   :  { %2650 = vmatprep.subr.bf16.mxu1 %v6225_v16  ;;  %v410_v16 = vld [vmem:[#allocation5 + $0x908] sm:$0xff]  ;;  %v6432_v22 = vcombine.low %v418_v9, %v422_v10  ;;  %v6401_v56 = vcombine.high %v386_v45, %v390_v47 }
  0xb5   :  { %v382_v57 = vld [vmem:[#allocation5 + $0x828] sm:$0xff] }
  0xb6   :  { %2598 = vmatpush2.bf16.msra.mxu0 %v6478_v18  ;;  %v414_v18 = vld [vmem:[#allocation5 + $0x928] sm:$0xff] }
  0xb7   :  { %2651 = vmatpush2.bf16.msra.mxu1 %v6224_v19  ;;  %2599 = vmatprep.subr.bf16.mxu0 %v6471_v20  ;;  %v7714_v19 = vpack.c.bf16 %v107_v8, %v101_v7  ;;  %v6304_v20 = vcombine.low %v290_v3, %v294_v4  ;;  %v6424_v31 = vcombine.low %v410_v16, %v414_v18  ;;  %v498_v3 = vld [vmem:[#allocation5 + $0xbc8] sm:$0xff] }
  0xb8   :  { %2652 = vmatprep.subr.bf16.mxu1 %v6217_v26  ;;  %v278_v26 = vld [vmem:[#allocation5 + $0x4e8] sm:$0xff]  ;;  %v6393_v4 = vcombine.high %v378_v55, %v382_v57  ;;  %v6392_v8 = vcombine.low %v378_v55, %v382_v57 }
  0xb9   :  { %v6289_v32 = vcombine.high %v274_v24, %v278_v26  ;;  %v362_v10 = vld [vmem:[#allocation5 + $0x788] sm:$0xff] }
  0xba   :  { %2600 = vmatpush2.bf16.msra.mxu0 %v6470_v28  ;;  %v6425_v28 = vcombine.high %v410_v16, %v414_v18  ;;  %v354_v18 = vld [vmem:[#allocation5 + $0x748] sm:$0xff] }
  0xbb   :  { %2653 = vmatpush2.bf16.msra.mxu1 %v6216_v29  ;;  %2601 = vmatprep.subr.bf16.mxu0 %v6463_v30  ;;  %v406_v29 = vld [vmem:[#allocation5 + $0x8e8] sm:$0xff]  ;;  %v6296_v30 = vcombine.low %v282_v14, %v286_v15 }
  0xbc   :  { %2654 = vmatprep.subr.bf16.mxu1 %v6209_v35  ;;  %v270_v35 = vld [vmem:[#allocation5 + $0x4a8] sm:$0xff]  ;;  %v6416_v41 = vcombine.low %v402_v27, %v406_v29 }
  0xbd   :  { %v6281_v42 = vcombine.high %v266_v33, %v270_v35  ;;  %v494_v14 = vld [vmem:[#allocation5 + $0xba8] sm:$0xff] }
  0xbe   :  { %2602 = vmatpush2.bf16.msra.mxu0 %v6462_v38  ;;  %v6417_v38 = vcombine.high %v402_v27, %v406_v29  ;;  %v346_v29 = vld [vmem:[#allocation5 + $0x708] sm:$0xff] }
  0xbf   :  { %2655 = vmatpush2.bf16.msra.mxu1 %v6208_v39  ;;  %2603 = vmatprep.subr.bf16.mxu0 %v6455_v40  ;;  %v398_v39 = vld [vmem:[#allocation5 + $0x8a8] sm:$0xff]  ;;  %v6288_v40 = vcombine.low %v274_v24, %v278_v26 }
  0xc0   :  { %2656 = vmatprep.subr.bf16.mxu1 %v6201_v44  ;;  %v262_v44 = vld [vmem:[#allocation5 + $0x468] sm:$0xff]  ;;  %v6409_v46 = vcombine.high %v394_v36, %v398_v39  ;;  %v6408_v49 = vcombine.low %v394_v36, %v398_v39 }
  0xc1   :  { %v6273_v51 = vcombine.high %v258_v43, %v262_v44  ;;  %v486_v24 = vld [vmem:[#allocation5 + $0xb68] sm:$0xff] }
  0xc2   :  { %2604 = vmatpush2.bf16.msra.mxu0 %v6454_v48  ;;  %v6280_v48 = vcombine.low %v266_v33, %v270_v35  ;;  %v478_v33 = vld [vmem:[#allocation5 + $0xb28] sm:$0xff] }
  0xc3   :  { %2657 = vmatpush2.bf16.msra.mxu1 %v6200_v52  ;;  %2679 = vmatprep.subr.bf16.mxu0 %v6321_v53  ;;  %v250_v52 = vld [vmem:[#allocation5 + $0x408] sm:$0xff] }
  0xc4   :  { %2732 = vmatprep.subr.bf16.mxu1 %v6449_v59  ;;  %v254_v53 = vld [vmem:[#allocation5 + $0x428] sm:$0xff]  ;;  %v6272_v59 = vcombine.low %v258_v43, %v262_v44 }
  0xc5   :  { %2606 = vmatmul.mubr.bf16.vlgmr.msra.gmra.mxu0 %v7707_v62  ;;  %v6264_v7 = vcombine.low %v250_v52, %v254_v53  ;;  %v338_v39 = vld [vmem:[#allocation5 + $0x6c8] sm:$0xff] }
  0xc6   :  { %2659 = vmatmul.mubr.bf16.vlgmr.msra.gmra.mxu1 %v7685_v21  ;;  %2680 = vmatpush1.bf16.msra.mxu0 %v6320_v0  ;;  %v6265_v0 = vcombine.high %v250_v52, %v254_v53  ;;  %v470_v43 = vld [vmem:[#allocation5 + $0xae8] sm:$0xff] }
  0xc7   :  { %2733 = vmatpush1.bf16.msra.mxu1 %v6448_v1  ;;  %2681 = vmatprep.subr.bf16.mxu0 %v6313_v2  ;;  %v370_v1 = vld [vmem:[#allocation5 + $0x7c8] sm:$0xff] }
  0xc8   :  { %2734 = vmatprep.subr.bf16.mxu1 %v6441_v5  ;;  %2615 = vmatprep.mubr.bf16.mxu0 %v7709_v6  ;;  %v374_v2 = vld [vmem:[#allocation5 + $0x7e8] sm:$0xff] }
  0xc9   :  { %2668 = vmatprep.mubr.bf16.mxu1 %v7689_v34  ;;  %v502_v5 = vld [vmem:[#allocation5 + $0xbe8] sm:$0xff]  ;;  %v6385_v9 = vcombine.high %v370_v1, %v374_v2  ;;  %v6384_v15 = vcombine.low %v370_v1, %v374_v2 }
  0xca   :  { %2682 = vmatpush1.bf16.msra.mxu0 %v6312_v11  ;;  %v366_v11 = vld [vmem:[#allocation5 + $0x7a8] sm:$0xff]  ;;  %v6512_v16 = vcombine.low %v498_v3, %v502_v5 }
  0xcb   :  { %2735 = vmatpush1.bf16.msra.mxu1 %v6440_v12  ;;  %2683 = vmatprep.subr.bf16.mxu0 %v6305_v13  ;;  %v490_v12 = vld [vmem:[#allocation5 + $0xb88] sm:$0xff]  ;;  %v6513_v13 = vcombine.high %v498_v3, %v502_v5  ;;  %v6376_v26 = vcombine.low %v362_v10, %v366_v11 }
  0xcc   :  { %2736 = vmatprep.subr.bf16.mxu1 %v6433_v17  ;;  %v6377_v17 = vcombine.high %v362_v10, %v366_v11  ;;  %v6504_v27 = vcombine.low %v490_v12, %v494_v14  ;;  %v330_v47 = vld [vmem:[#allocation5 + $0x688] sm:$0xff] }
  0xcd   :  { %2616 = vmatmul.mubr.bf16.gmra.mxu0 %v7714_v19  ;;  %v462_v52 = vld [vmem:[#allocation5 + $0xaa8] sm:$0xff] }
  0xce   :  { %2684 = vmatpush1.bf16.msra.mxu0 %v6304_v20  ;;  %2669 = vmatmul.mubr.bf16.gmra.mxu1 %v7696_v50  ;;  %v358_v20 = vld [vmem:[#allocation5 + $0x768] sm:$0xff] }
  0xcf   :  { %2737 = vmatpush1.bf16.msra.mxu1 %v6432_v22  ;;  %2685 = vmatprep.subr.bf16.mxu0 %v6297_v23  ;;  %v482_v22 = vld [vmem:[#allocation5 + $0xb48] sm:$0xff]  ;;  %v6505_v23 = vcombine.high %v490_v12, %v494_v14  ;;  %v6368_v35 = vcombine.low %v354_v18, %v358_v20  ;;  %v179_v14 = vld [vmem:[#allocation5 + $0x1d0] sm:$0xff] }
  0xd0   :  { %2738 = vmatprep.subr.bf16.mxu1 %v6425_v28  ;;  %2711 = vmatprep.mubr.bf16.mxu0 %v7681_v63  ;;  %v6369_v28 = vcombine.high %v354_v18, %v358_v20  ;;  %v6496_v36 = vcombine.low %v482_v22, %v486_v24  ;;  %v322_v57 = vld [vmem:[#allocation5 + $0x648] sm:$0xff]  ;;  %v311_v18 = vld [vmem:[#allocation5 + $0x5f0] sm:$0xff] }
  0xd1   :  { %2764 = vmatprep.mubr.bf16.mxu1 %v7701_v61  ;;  %v454_v1 = vld [vmem:[#allocation5 + $0xa68] sm:$0xff] }
  0xd2   :  { %2686 = vmatpush1.bf16.msra.mxu0 %v6296_v30  ;;  %v350_v30 = vld [vmem:[#allocation5 + $0x728] sm:$0xff] }
  0xd3   :  { %2739 = vmatpush1.bf16.msra.mxu1 %v6424_v31  ;;  %2687 = vmatprep.subr.bf16.mxu0 %v6289_v32  ;;  %v474_v31 = vld [vmem:[#allocation5 + $0xb08] sm:$0xff]  ;;  %v6497_v32 = vcombine.high %v482_v22, %v486_v24  ;;  %v6360_v44 = vcombine.low %v346_v29, %v350_v30  ;;  %v171_v24 = vld [vmem:[#allocation5 + $0x190] sm:$0xff] }
  0xd4   :  { %2740 = vmatprep.subr.bf16.mxu1 %v6417_v38  ;;  %v6361_v38 = vcombine.high %v346_v29, %v350_v30  ;;  %v6488_v45 = vcombine.low %v474_v31, %v478_v33  ;;  %v314_v5 = vld [vmem:[#allocation5 + $0x608] sm:$0xff]  ;;  %v303_v29 = vld [vmem:[#allocation5 + $0x5b0] sm:$0xff] }
  0xd5   :  { %v446_v10 = vld [vmem:[#allocation5 + $0xa28] sm:$0xff] }
  0xd6   :  { %2688 = vmatpush1.bf16.msra.mxu0 %v6288_v40  ;;  %v342_v40 = vld [vmem:[#allocation5 + $0x6e8] sm:$0xff] }
  0xd7   :  { %2741 = vmatpush1.bf16.msra.mxu1 %v6416_v41  ;;  %2689 = vmatprep.subr.bf16.mxu0 %v6281_v42  ;;  %v466_v41 = vld [vmem:[#allocation5 + $0xac8] sm:$0xff]  ;;  %v6489_v42 = vcombine.high %v474_v31, %v478_v33  ;;  %v6352_v53 = vcombine.low %v338_v39, %v342_v40  ;;  %v163_v33 = vld [vmem:[#allocation5 + $0x150] sm:$0xff] }
  0xd8   :  { %2742 = vmatprep.subr.bf16.mxu1 %v6409_v46  ;;  %v6353_v46 = vcombine.high %v338_v39, %v342_v40  ;;  %v6480_v55 = vcombine.low %v466_v41, %v470_v43  ;;  %v295_v39 = vld [vmem:[#allocation5 + $0x570] sm:$0xff] }
  0xda   :  { %2690 = vmatpush1.bf16.msra.mxu0 %v6280_v48  ;;  %v334_v48 = vld [vmem:[#allocation5 + $0x6a8] sm:$0xff] }
  0xdb   :  { %2743 = vmatpush1.bf16.msra.mxu1 %v6408_v49  ;;  %2691 = vmatprep.subr.bf16.mxu0 %v6273_v51  ;;  %v458_v49 = vld [vmem:[#allocation5 + $0xa88] sm:$0xff]  ;;  %v6481_v51 = vcombine.high %v466_v41, %v470_v43  ;;  %v6344_v2 = vcombine.low %v330_v47, %v334_v48  ;;  %v155_v43 = vld [vmem:[#allocation5 + $0x110] sm:$0xff] }
  0xdc   :  { %2744 = vmatprep.subr.bf16.mxu1 %v6401_v56  ;;  %v6345_v56 = vcombine.high %v330_v47, %v334_v48  ;;  %v6472_v3 = vcombine.low %v458_v49, %v462_v52  ;;  %v287_v47 = vld [vmem:[#allocation5 + $0x530] sm:$0xff] }
  0xde   :  { %2692 = vmatpush1.bf16.msra.mxu0 %v6272_v59  ;;  %v326_v59 = vld [vmem:[#allocation5 + $0x668] sm:$0xff] }
  0xdf   :  { %2745 = vmatpush1.bf16.msra.mxu1 %v6400_v60  ;;  %2693 = vmatprep.subr.bf16.mxu0 %v6265_v0  ;;  %v450_v60 = vld [vmem:[#allocation5 + $0xa48] sm:$0xff]  ;;  %v6473_v0 = vcombine.high %v458_v49, %v462_v52  ;;  %v6336_v11 = vcombine.low %v322_v57, %v326_v59  ;;  %v147_v52 = vld [vmem:[#allocation5 + $0xd0] sm:$0xff] }
  0xe0   :  { %2746 = vmatprep.subr.bf16.mxu1 %v6393_v4  ;;  %v6337_v4 = vcombine.high %v322_v57, %v326_v59  ;;  %v6464_v12 = vcombine.low %v450_v60, %v454_v1  ;;  %v279_v57 = vld [vmem:[#allocation5 + $0x4f0] sm:$0xff] }
  0xe2   :  { %2694 = vmatpush1.bf16.msra.mxu0 %v6264_v7  ;;  %v318_v7 = vld [vmem:[#allocation5 + $0x628] sm:$0xff] }
  0xe3   :  { %2747 = vmatpush1.bf16.msra.mxu1 %v6392_v8  ;;  %2695 = vmatprep.subr.bf16.mxu0 %v6385_v9  ;;  %v442_v8 = vld [vmem:[#allocation5 + $0xa08] sm:$0xff]  ;;  %v6465_v9 = vcombine.high %v450_v60, %v454_v1  ;;  %v6328_v20 = vcombine.low %v314_v5, %v318_v7  ;;  %v139_v1 = vld [vmem:[#allocation5 + $0x90] sm:$0xff] }
  0xe4   :  { %2748 = vmatprep.subr.bf16.mxu1 %v6513_v13  ;;  %v6329_v13 = vcombine.high %v314_v5, %v318_v7  ;;  %v6456_v22 = vcombine.low %v442_v8, %v446_v10  ;;  %v271_v5 = vld [vmem:[#allocation5 + $0x4b0] sm:$0xff] }
  0xe6   :  { %2696 = vmatpush2.bf16.msra.mxu0 %v6384_v15  ;;  %v183_v15 = vld [vmem:[#allocation5 + $0x1f0] sm:$0xff] }
  0xe7   :  { %2749 = vmatpush2.bf16.msra.mxu1 %v6512_v16  ;;  %2697 = vmatprep.subr.bf16.mxu0 %v6377_v17  ;;  %v307_v16 = vld [vmem:[#allocation5 + $0x5d0] sm:$0xff]  ;;  %v6457_v17 = vcombine.high %v442_v8, %v446_v10  ;;  %v6194_v30 = vcombine.low %v179_v14, %v183_v15 }
  0xe8   :  { %2750 = vmatprep.subr.bf16.mxu1 %v6505_v23  ;;  %v6195_v23 = vcombine.high %v179_v14, %v183_v15  ;;  %v6322_v31 = vcombine.low %v307_v16, %v311_v18  ;;  %v131_v10 = vld [vmem:[#allocation5 + $0x50] sm:$0xff] }
  0xe9   :  { %v263_v14 = vld [vmem:[#allocation5 + $0x470] sm:$0xff] }
  0xea   :  { %2698 = vmatpush2.bf16.msra.mxu0 %v6376_v26  ;;  %v175_v26 = vld [vmem:[#allocation5 + $0x1b0] sm:$0xff] }
  0xeb   :  { %2751 = vmatpush2.bf16.msra.mxu1 %v6504_v27  ;;  %2699 = vmatprep.subr.bf16.mxu0 %v6369_v28  ;;  %v299_v27 = vld [vmem:[#allocation5 + $0x590] sm:$0xff]  ;;  %v6323_v28 = vcombine.high %v307_v16, %v311_v18  ;;  %v6186_v40 = vcombine.low %v171_v24, %v175_v26 }
  0xec   :  { %2752 = vmatprep.subr.bf16.mxu1 %v6497_v32  ;;  %v6187_v32 = vcombine.high %v171_v24, %v175_v26  ;;  %v6314_v41 = vcombine.low %v299_v27, %v303_v29  ;;  %v123_v18 = vld [vmem:[#allocation5 + $0x10] sm:$0xff] }
  0xed   :  { %v255_v24 = vld [vmem:[#allocation5 + $0x430] sm:$0xff] }
  0xee   :  { %2700 = vmatpush2.bf16.msra.mxu0 %v6368_v35  ;;  %v167_v35 = vld [vmem:[#allocation5 + $0x170] sm:$0xff] }
  0xef   :  { %2753 = vmatpush2.bf16.msra.mxu1 %v6496_v36  ;;  %2701 = vmatprep.subr.bf16.mxu0 %v6361_v38  ;;  %v291_v36 = vld [vmem:[#allocation5 + $0x550] sm:$0xff]  ;;  %v6315_v38 = vcombine.high %v299_v27, %v303_v29  ;;  %v6178_v48 = vcombine.low %v163_v33, %v167_v35 }
  0xf0   :  { %2754 = vmatprep.subr.bf16.mxu1 %v6489_v42  ;;  %v6179_v42 = vcombine.high %v163_v33, %v167_v35  ;;  %v6306_v49 = vcombine.low %v291_v36, %v295_v39  ;;  %v243_v29 = vld [vmem:[#allocation5 + $0x3d0] sm:$0xff] }
  0xf1   :  { %v375_v33 = vld [vmem:[#allocation5 + $0x7f0] sm:$0xff] }
  0xf2   :  { %2702 = vmatpush2.bf16.msra.mxu0 %v6360_v44  ;;  %v159_v44 = vld [vmem:[#allocation5 + $0x130] sm:$0xff] }
  0xf3   :  { %2755 = vmatpush2.bf16.msra.mxu1 %v6488_v45  ;;  %2703 = vmatprep.subr.bf16.mxu0 %v6353_v46  ;;  %v283_v45 = vld [vmem:[#allocation5 + $0x510] sm:$0xff]  ;;  %v6307_v46 = vcombine.high %v291_v36, %v295_v39  ;;  %v6170_v59 = vcombine.low %v155_v43, %v159_v44 }
  0xf4   :  { %2756 = vmatprep.subr.bf16.mxu1 %v6481_v51  ;;  %v6171_v51 = vcombine.high %v155_v43, %v159_v44  ;;  %v6298_v60 = vcombine.low %v283_v45, %v287_v47  ;;  %v235_v39 = vld [vmem:[#allocation5 + $0x390] sm:$0xff] }
  0xf5   :  { %v367_v43 = vld [vmem:[#allocation5 + $0x7b0] sm:$0xff] }
  0xf6   :  { %2704 = vmatpush2.bf16.msra.mxu0 %v6352_v53  ;;  %v151_v53 = vld [vmem:[#allocation5 + $0xf0] sm:$0xff] }
  0xf7   :  { %2757 = vmatpush2.bf16.msra.mxu1 %v6480_v55  ;;  %2705 = vmatprep.subr.bf16.mxu0 %v6345_v56  ;;  %v275_v55 = vld [vmem:[#allocation5 + $0x4d0] sm:$0xff]  ;;  %v6299_v56 = vcombine.high %v283_v45, %v287_v47  ;;  %v6162_v7 = vcombine.low %v147_v52, %v151_v53 }
  0xf8   :  { %2758 = vmatprep.subr.bf16.mxu1 %v6473_v0  ;;  %v6163_v0 = vcombine.high %v147_v52, %v151_v53  ;;  %v6290_v8 = vcombine.low %v275_v55, %v279_v57  ;;  %v227_v47 = vld [vmem:[#allocation5 + $0x350] sm:$0xff] }
  0xf9   :  { %v359_v52 = vld [vmem:[#allocation5 + $0x770] sm:$0xff] }
  0xfa   :  { %2706 = vmatpush2.bf16.msra.mxu0 %v6344_v2  ;;  %v143_v2 = vld [vmem:[#allocation5 + $0xb0] sm:$0xff] }
  0xfb   :  { %2759 = vmatpush2.bf16.msra.mxu1 %v6472_v3  ;;  %2707 = vmatprep.subr.bf16.mxu0 %v6337_v4  ;;  %v267_v3 = vld [vmem:[#allocation5 + $0x490] sm:$0xff]  ;;  %v6291_v4 = vcombine.high %v275_v55, %v279_v57  ;;  %v6154_v15 = vcombine.low %v139_v1, %v143_v2 }
  0xfc   :  { %2760 = vmatprep.subr.bf16.mxu1 %v6465_v9  ;;  %v6155_v9 = vcombine.high %v139_v1, %v143_v2  ;;  %v6282_v16 = vcombine.low %v267_v3, %v271_v5  ;;  %v219_v57 = vld [vmem:[#allocation5 + $0x310] sm:$0xff] }
  0xfd   :  { %v351_v1 = vld [vmem:[#allocation5 + $0x730] sm:$0xff] }
  0xfe   :  { %2708 = vmatpush2.bf16.msra.mxu0 %v6336_v11  ;;  %v135_v11 = vld [vmem:[#allocation5 + $0x70] sm:$0xff] }
  0xff   :  { %2761 = vmatpush2.bf16.msra.mxu1 %v6464_v12  ;;  %2709 = vmatprep.subr.bf16.mxu0 %v6329_v13  ;;  %v259_v12 = vld [vmem:[#allocation5 + $0x450] sm:$0xff]  ;;  %v6283_v13 = vcombine.high %v267_v3, %v271_v5  ;;  %v6146_v26 = vcombine.low %v131_v10, %v135_v11 }
 0x100   :  { %2762 = vmatprep.subr.bf16.mxu1 %v6457_v17  ;;  %v6147_v17 = vcombine.high %v131_v10, %v135_v11  ;;  %v6274_v27 = vcombine.low %v259_v12, %v263_v14  ;;  %v211_v5 = vld [vmem:[#allocation5 + $0x2d0] sm:$0xff] }
 0x101   :  { %v343_v10 = vld [vmem:[#allocation5 + $0x6f0] sm:$0xff] }
 0x102   :  { %2710 = vmatpush2.bf16.msra.mxu0 %v6328_v20  ;;  %v127_v20 = vld [vmem:[#allocation5 + $0x30] sm:$0xff] }
 0x103   :  { %2763 = vmatpush2.bf16.msra.mxu1 %v6456_v22  ;;  %2785 = vmatprep.subr.bf16.mxu0 %v6195_v23  ;;  %v251_v22 = vld [vmem:[#allocation5 + $0x410] sm:$0xff]  ;;  %v6275_v23 = vcombine.high %v259_v12, %v263_v14  ;;  %v6138_v35 = vcombine.low %v123_v18, %v127_v20 }
 0x104   :  { %2838 = vmatprep.subr.bf16.mxu1 %v6323_v28  ;;  %v6139_v28 = vcombine.high %v123_v18, %v127_v20  ;;  %v6266_v36 = vcombine.low %v251_v22, %v255_v24  ;;  %v203_v14 = vld [vmem:[#allocation5 + $0x290] sm:$0xff] }
 0x105   :  { %2712 = vmatmul.mubr.bf16.vlgmr.msra.gmra.mxu0 %v7687_v25  ;;  %v335_v18 = vld [vmem:[#allocation5 + $0x6b0] sm:$0xff] }
 0x106   :  { %2765 = vmatmul.mubr.bf16.vlgmr.msra.gmra.mxu1 %v7707_v62  ;;  %2786 = vmatpush1.bf16.msra.mxu0 %v6194_v30  ;;  %v247_v30 = vld [vmem:[#allocation5 + $0x3f0] sm:$0xff] }
 0x107   :  { %2839 = vmatpush1.bf16.msra.mxu1 %v6322_v31  ;;  %2787 = vmatprep.subr.bf16.mxu0 %v6187_v32  ;;  %v371_v31 = vld [vmem:[#allocation5 + $0x7d0] sm:$0xff]  ;;  %v6267_v32 = vcombine.high %v251_v22, %v255_v24  ;;  %v6258_v44 = vcombine.low %v243_v29, %v247_v30 }
 0x108   :  { %2840 = vmatprep.subr.bf16.mxu1 %v6315_v38  ;;  %2721 = vmatprep.mubr.bf16.mxu0 %v7692_v37  ;;  %v6259_v38 = vcombine.high %v243_v29, %v247_v30  ;;  %v6386_v45 = vcombine.low %v371_v31, %v375_v33  ;;  %v195_v24 = vld [vmem:[#allocation5 + $0x250] sm:$0xff] }
 0x109   :  { %2774 = vmatprep.mubr.bf16.mxu1 %v7709_v6  ;;  %v327_v29 = vld [vmem:[#allocation5 + $0x670] sm:$0xff] }
 0x10a   :  { %2788 = vmatpush1.bf16.msra.mxu0 %v6186_v40  ;;  %v239_v40 = vld [vmem:[#allocation5 + $0x3b0] sm:$0xff] }
 0x10b   :  { %2841 = vmatpush1.bf16.msra.mxu1 %v6314_v41  ;;  %2789 = vmatprep.subr.bf16.mxu0 %v6179_v42  ;;  %v363_v41 = vld [vmem:[#allocation5 + $0x790] sm:$0xff]  ;;  %v6387_v42 = vcombine.high %v371_v31, %v375_v33  ;;  %v6250_v53 = vcombine.low %v235_v39, %v239_v40  ;;  %v507_v31 = vlaneseq }
 0x10c   :  { %2842 = vmatprep.subr.bf16.mxu1 %v6307_v46  ;;  %v6251_v46 = vcombine.high %v235_v39, %v239_v40  ;;  %v6378_v55 = vcombine.low %v363_v41, %v367_v43  ;;  %v319_v40 = vld [vmem:[#allocation5 + $0x630] sm:$0xff] }
 0x10d   :  { %2722 = vmatmul.mubr.bf16.gmra.mxu0 %v7699_v54 }
 0x10e   :  { %2790 = vmatpush1.bf16.msra.mxu0 %v6178_v48  ;;  %2775 = vmatmul.mubr.bf16.gmra.mxu1 %v7714_v19  ;;  %v231_v48 = vld [vmem:[#allocation5 + $0x370] sm:$0xff] }
 0x10f   :  { %2843 = vmatpush1.bf16.msra.mxu1 %v6306_v49  ;;  %2791 = vmatprep.subr.bf16.mxu0 %v6171_v51  ;;  %v355_v49 = vld [vmem:[#allocation5 + $0x750] sm:$0xff]  ;;  %v6379_v51 = vcombine.high %v363_v41, %v367_v43  ;;  %v6242_v2 = vcombine.low %v227_v47, %v231_v48 }
 0x110   :  { %2844 = vmatprep.subr.bf16.mxu1 %v6299_v56  ;;  %2817 = vmatprep.mubr.bf16.mxu0 %v7679_v58  ;;  %v6243_v56 = vcombine.high %v227_v47, %v231_v48  ;;  %v6370_v3 = vcombine.low %v355_v49, %v359_v52  ;;  %v180_v47 = vld [vmem:[#allocation5 + $0x1d8] sm:$0xff] }
 0x111   :  { %2870 = vmatprep.mubr.bf16.mxu1 %v7681_v63 }
 0x112   :  { %2792 = vmatpush1.bf16.msra.mxu0 %v6170_v59  ;;  %v223_v59 = vld [vmem:[#allocation5 + $0x330] sm:$0xff] }
 0x113   :  { %2845 = vmatpush1.bf16.msra.mxu1 %v6298_v60  ;;  %2793 = vmatprep.subr.bf16.mxu0 %v6163_v0  ;;  %v347_v60 = vld [vmem:[#allocation5 + $0x710] sm:$0xff]  ;;  %v6371_v0 = vcombine.high %v355_v49, %v359_v52  ;;  %v6234_v11 = vcombine.low %v219_v57, %v223_v59  ;;  %v184_v49 = vld [vmem:[#allocation5 + $0x1f8] sm:$0xff] }
 0x114   :  { %2846 = vmatprep.subr.bf16.mxu1 %v6291_v4  ;;  %v6235_v4 = vcombine.high %v219_v57, %v223_v59  ;;  %v6362_v12 = vcombine.low %v347_v60, %v351_v1  ;;  %v427_v57 = vld [vmem:[#allocation5 + $0x990] sm:$0xff] }
 0x115   :  { %v431_v59 = vld [vmem:[#allocation5 + $0x9b0] sm:$0xff] }
 0x116   :  { %2794 = vmatpush1.bf16.msra.mxu0 %v6162_v7  ;;  %v215_v7 = vld [vmem:[#allocation5 + $0x2f0] sm:$0xff] }
 0x117   :  { %2847 = vmatpush1.bf16.msra.mxu1 %v6290_v8  ;;  %2795 = vmatprep.subr.bf16.mxu0 %v6155_v9  ;;  %v339_v8 = vld [vmem:[#allocation5 + $0x6d0] sm:$0xff]  ;;  %v6363_v9 = vcombine.high %v347_v60, %v351_v1  ;;  %v6226_v20 = vcombine.low %v211_v5, %v215_v7  ;;  %v172_v60 = vld [vmem:[#allocation5 + $0x198] sm:$0xff] }
 0x118   :  { %2848 = vmatprep.subr.bf16.mxu1 %v6283_v13  ;;  %v6227_v13 = vcombine.high %v211_v5, %v215_v7  ;;  %v6354_v22 = vcombine.low %v339_v8, %v343_v10  ;;  %v176_v1 = vld [vmem:[#allocation5 + $0x1b8] sm:$0xff]  ;;  %v6443_v5 = vcombine.high %v427_v57, %v431_v59 }
 0x119   :  { %v6189_v7 = vcombine.high %v172_v60, %v176_v1 }
 0x11a   :  { %2796 = vmatpush1.bf16.msra.mxu0 %v6154_v15  ;;  %v207_v15 = vld [vmem:[#allocation5 + $0x2b0] sm:$0xff] }
 0x11b   :  { %2849 = vmatpush1.bf16.msra.mxu1 %v6282_v16  ;;  %2797 = vmatprep.subr.bf16.mxu0 %v6147_v17  ;;  %v331_v16 = vld [vmem:[#allocation5 + $0x690] sm:$0xff]  ;;  %v6355_v17 = vcombine.high %v339_v8, %v343_v10  ;;  %v6218_v30 = vcombine.low %v203_v14, %v207_v15 }
 0x11c   :  { %2850 = vmatprep.subr.bf16.mxu1 %v6275_v23  ;;  %v6219_v23 = vcombine.high %v203_v14, %v207_v15  ;;  %v419_v8 = vld [vmem:[#allocation5 + $0x950] sm:$0xff]  ;;  %v6442_v15 = vcombine.low %v427_v57, %v431_v59 }
 0x11e   :  { %2798 = vmatpush1.bf16.msra.mxu0 %v6146_v26  ;;  %v199_v26 = vld [vmem:[#allocation5 + $0x270] sm:$0xff] }
 0x11f   :  { %2851 = vmatpush1.bf16.msra.mxu1 %v6274_v27  ;;  %2799 = vmatprep.subr.bf16.mxu0 %v6139_v28  ;;  %v323_v27 = vld [vmem:[#allocation5 + $0x650] sm:$0xff]  ;;  %v6347_v28 = vcombine.high %v331_v16, %v335_v18  ;;  %v6211_v33 = vcombine.high %v195_v24, %v199_v26  ;;  %v6210_v41 = vcombine.low %v195_v24, %v199_v26 }
 0x120   :  { %2852 = vmatprep.subr.bf16.mxu1 %v6267_v32  ;;  %v6346_v32 = vcombine.low %v331_v16, %v335_v18  ;;  %v6339_v39 = vcombine.high %v323_v27, %v327_v29  ;;  %v6338_v43 = vcombine.low %v323_v27, %v327_v29  ;;  %v411_v24 = vld [vmem:[#allocation5 + $0x910] sm:$0xff]  ;;  %v160_v29 = vld [vmem:[#allocation5 + $0x138] sm:$0xff] }
 0x121   :  { %v415_v26 = vld [vmem:[#allocation5 + $0x930] sm:$0xff] }
 0x122   :  { %2800 = vmatpush1.bf16.msra.mxu0 %v6138_v35  ;;  %v187_v35 = vld [vmem:[#allocation5 + $0x210] sm:$0xff] }
 0x123   :  { %2853 = vmatpush1.bf16.msra.mxu1 %v6266_v36  ;;  %2801 = vmatprep.subr.bf16.mxu0 %v6259_v38  ;;  %v191_v36 = vld [vmem:[#allocation5 + $0x230] sm:$0xff] }
 0x124   :  { %2854 = vmatprep.subr.bf16.mxu1 %v6387_v42  ;;  %v315_v38 = vld [vmem:[#allocation5 + $0x610] sm:$0xff]  ;;  %v7729_v42 = vshrl.u32 %v507_v31, 7  ;;  %v6202_v52 = vcombine.low %v187_v35, %v191_v36 }
 0x125   :  { %v6331_v48 = vcombine.high %v315_v38, %v319_v40 }
 0x126   :  { %2802 = vmatpush2.bf16.msra.mxu0 %v6258_v44  ;;  %v6203_v44 = vcombine.high %v187_v35, %v191_v36 }
 0x127   :  { %2855 = vmatpush2.bf16.msra.mxu1 %v6386_v45  ;;  %2803 = vmatprep.subr.bf16.mxu0 %v6251_v46  ;;  %v435_v45 = vld [vmem:[#allocation5 + $0x9d0] sm:$0xff] }
 0x128   :  { %2856 = vmatprep.subr.bf16.mxu1 %v6379_v51  ;;  %v439_v46 = vld [vmem:[#allocation5 + $0x9f0] sm:$0xff]  ;;  %v7731_v51 = vld [vmem:[#allocation7] sm:$0xff] }
 0x12a   :  { %2804 = vmatpush2.bf16.msra.mxu0 %v6250_v53  ;;  %v509_v53 = vsub.s32 0, %v7729_v42 }
 0x12b   :  { %2857 = vmatpush2.bf16.msra.mxu1 %v6378_v55  ;;  %2805 = vmatprep.subr.bf16.mxu0 %v6243_v56  ;;  %v6330_v55 = vcombine.low %v315_v38, %v319_v40  ;;  %v6451_v56 = vcombine.high %v435_v45, %v439_v46  ;;  %v6427_v38 = vcombine.high %v411_v24, %v415_v26 }
 0x12c   :  { %2858 = vmatprep.subr.bf16.mxu1 %v6371_v0  ;;  %v6197_v0 = vcombine.high %v180_v47, %v184_v49 }
 0x12e   :  { %2806 = vmatpush2.bf16.msra.mxu0 %v6242_v2  ;;  %v7737_v2 = vrot.slane %v7731_v51, %v509_v53 }
 0x12f   :  { %2859 = vmatpush2.bf16.msra.mxu1 %v6370_v3  ;;  %2807 = vmatprep.subr.bf16.mxu0 %v6235_v4  ;;  %v6450_v3 = vcombine.low %v435_v45, %v439_v46  ;;  %v6196_v4 = vcombine.low %v180_v47, %v184_v49  ;;  %v148_v45 = vld [vmem:[#allocation5 + $0xd8] sm:$0xff]  ;;  %v6426_v49 = vcombine.low %v411_v24, %v415_v26  ;;  %v391_v24 = vld [vmem:[#allocation5 + $0x870] sm:$0xff] }
 0x130   :  { %2860 = vmatprep.subr.bf16.mxu1 %v6363_v9  ;;  %v423_v9 = vld [vmem:[#allocation5 + $0x970] sm:$0xff]  ;;  %v152_v46 = vld [vmem:[#allocation5 + $0xf8] sm:$0xff] }
 0x131   :  { %v6435_v18 = vcombine.high %v419_v8, %v423_v9 }
 0x132   :  { %2808 = vmatpush2.bf16.msra.mxu0 %v6234_v11  ;;  %v164_v11 = vld [vmem:[#allocation5 + $0x158] sm:$0xff] }
 0x133   :  { %2861 = vmatpush2.bf16.msra.mxu1 %v6362_v12  ;;  %2809 = vmatprep.subr.bf16.mxu0 %v6227_v13  ;;  %v168_v12 = vld [vmem:[#allocation5 + $0x178] sm:$0xff] }
 0x134   :  { %2862 = vmatprep.subr.bf16.mxu1 %v6355_v17  ;;  %v6188_v17 = vcombine.low %v172_v60, %v176_v1  ;;  %v6180_v36 = vcombine.low %v164_v11, %v168_v12  ;;  %v6165_v60 = vcombine.high %v148_v45, %v152_v46  ;;  %v399_v1 = vld [vmem:[#allocation5 + $0x8b0] sm:$0xff] }
 0x136   :  { %2810 = vmatpush2.bf16.msra.mxu0 %v6226_v20 }
 0x137   :  { %2863 = vmatpush2.bf16.msra.mxu1 %v6354_v22  ;;  %2811 = vmatprep.subr.bf16.mxu0 %v6219_v23  ;;  %v6181_v23 = vcombine.high %v164_v11, %v168_v12 }
 0x138   :  { %2864 = vmatprep.subr.bf16.mxu1 %v6347_v28  ;;  %v156_v28 = vld [vmem:[#allocation5 + $0x118] sm:$0xff] }
 0x13a   :  { %2812 = vmatpush2.bf16.msra.mxu0 %v6218_v30  ;;  %v513_v30 = vsub.s32 1, %v7729_v42 }
 0x13b   :  { %2865 = vmatpush2.bf16.msra.mxu1 %v6346_v32  ;;  %2813 = vmatprep.subr.bf16.mxu0 %v6211_v33  ;;  %v6434_v33 = vcombine.low %v419_v8, %v423_v9  ;;  %v144_v8 = vld [vmem:[#allocation5 + $0xb8] sm:$0xff] }
 0x13c   :  { %2866 = vmatprep.subr.bf16.mxu1 %v6339_v39 }
 0x13e   :  { %2814 = vmatpush2.bf16.msra.mxu0 %v6210_v41  ;;  %v6173_v41 = vcombine.high %v156_v28, %v160_v29 }
 0x13f   :  { %2867 = vmatpush2.bf16.msra.mxu1 %v6338_v43  ;;  %2815 = vmatprep.subr.bf16.mxu0 %v6203_v44  ;;  %v403_v43 = vld [vmem:[#allocation5 + $0x8d0] sm:$0xff] }
 0x140   :  { %2868 = vmatprep.subr.bf16.mxu1 %v6331_v48  ;;  %v407_v44 = vld [vmem:[#allocation5 + $0x8f0] sm:$0xff]  ;;  %v7762_v48 = vrot.slane %v7731_v51, %v513_v30 }
 0x141   :  { %v6419_v57 = vcombine.high %v403_v43, %v407_v44 }
 0x142   :  { %2816 = vmatpush2.bf16.msra.mxu0 %v6202_v52 }
 0x143   :  { %2869 = vmatpush2.bf16.msra.mxu1 %v6330_v55  ;;  %2891 = vmatprep.subr.bf16.mxu0 %v6451_v56  ;;  %v6172_v56 = vcombine.low %v156_v28, %v160_v29  ;;  %v132_v28 = vld [vmem:[#allocation5 + $0x58] sm:$0xff] }
 0x144   :  { %2944 = vmatprep.subr.bf16.mxu1 %v6197_v0  ;;  %v395_v0 = vld [vmem:[#allocation5 + $0x890] sm:$0xff]  ;;  %v136_v29 = vld [vmem:[#allocation5 + $0x78] sm:$0xff] }
 0x145   :  { %v2501_v10 = vpop.f32.mrf.mxu0  ;;  %2818 = vmatmul.mubr.bf16.vlgmr.msra.gmra.mxu0 %v7685_v21 }
 0x146   :  { %v2502_v13 = vadd.f32 %v2501_v10, %v7737_v2  ;;  %v2554_v14 = vpop.f32.mrf.mxu1  ;;  %2871 = vmatmul.mubr.bf16.vlgmr.msra.gmra.mxu1 %v7687_v25  ;;  %2892 = vmatpush1.bf16.msra.mxu0 %v6450_v3  ;;  %v6418_v10 = vcombine.low %v403_v43, %v407_v44  ;;  %v124_v43 = vld [vmem:[#allocation5 + $0x18] sm:$0xff] }
 0x147   :  { %2945 = vmatpush1.bf16.msra.mxu1 %v6196_v4  ;;  %v7742_v16 = vpop.f32.mrf.mxu0  ;;  %2893 = vmatprep.subr.bf16.mxu0 %v6443_v5  ;;  %v128_v44 = vld [vmem:[#allocation5 + $0x38] sm:$0xff] }
 0x148   :  { %v7744_v20 = vadd.f32 %v2554_v14, %v2502_v13  ;;  %v7746_v22 = vpop.f32.mrf.mxu1  ;;  %2946 = vmatprep.subr.bf16.mxu1 %v6189_v7  ;;  %2827 = vmatprep.mubr.bf16.mxu0 %v7689_v34  ;;  %v140_v7 = vld [vmem:[#allocation5 + $0x98] sm:$0xff]  ;;  %v6164_v14 = vcombine.low %v148_v45, %v152_v46  ;;  %v6148_v46 = vcombine.low %v132_v28, %v136_v29 }
 0x149   :  { %v2505_v27 = vpop.f32.mrf.mxu0  ;;  %2880 = vmatprep.mubr.bf16.mxu1 %v7692_v37 }
 0x14a   :  { %v2506_v31 = vadd.f32 %v2505_v27, %v7737_v2  ;;  %v2558_v32 = vpop.f32.mrf.mxu1  ;;  %2894 = vmatpush1.bf16.msra.mxu0 %v6442_v15  ;;  %v6411_v15 = vcombine.high %v395_v0, %v399_v1 }
 0x14b   :  { %2947 = vmatpush1.bf16.msra.mxu1 %v6188_v17  ;;  %v7752_v35 = vpop.f32.mrf.mxu0  ;;  %2895 = vmatprep.subr.bf16.mxu0 %v6435_v18  ;;  %v6157_v18 = vcombine.high %v140_v7, %v144_v8 }
 0x14c   :  { %v7754_v39 = vadd.f32 %v2558_v32, %v2506_v31  ;;  %v7756_v40 = vpop.f32.mrf.mxu1  ;;  %2948 = vmatprep.subr.bf16.mxu1 %v6181_v23  ;;  %v387_v23 = vld [vmem:[#allocation5 + $0x850] sm:$0xff]  ;;  %v6156_v32 = vcombine.low %v140_v7, %v144_v8  ;;  %v236_v7 = vld [vmem:[#allocation5 + $0x398] sm:$0xff] }
 0x14d   :  { %v2511_v47 = vpop.f32.mrf.mxu0  ;;  %2828 = vmatmul.mubr.bf16.gmra.mxu0 %v7696_v50  ;;  %v6402_v45 = vcombine.low %v387_v23, %v391_v24  ;;  %v240_v8 = vld [vmem:[#allocation5 + $0x3b8] sm:$0xff] }
 0x14e   :  { %2896 = vmatpush1.bf16.msra.mxu0 %v6434_v33  ;;  %v2512_v52 = vadd.f32 %v2511_v47, %v7737_v2  ;;  %v2564_v55 = vpop.f32.mrf.mxu1  ;;  %2881 = vmatmul.mubr.bf16.gmra.mxu1 %v7699_v54  ;;  %v6403_v33 = vcombine.high %v387_v23, %v391_v24  ;;  %v6252_v24 = vcombine.low %v236_v7, %v240_v8 }
 0x14f   :  { %2949 = vmatpush1.bf16.msra.mxu1 %v6180_v36  ;;  %2897 = vmatprep.subr.bf16.mxu0 %v6427_v38  ;;  %v2513_v59 = vpop.f32.mrf.mxu0  ;;  %v6149_v36 = vcombine.high %v132_v28, %v136_v29  ;;  %v379_v38 = vld [vmem:[#allocation5 + $0x810] sm:$0xff] }
 0x150   :  { %2950 = vmatprep.subr.bf16.mxu1 %v6173_v41  ;;  %v2514_v3 = vadd.f32 %v2513_v59, %v7762_v48  ;;  %v7767_v4 = vadd.f32 %v2564_v55, %v2512_v52  ;;  %v2566_v5 = vpop.f32.mrf.mxu1  ;;  %2923 = vmatprep.mubr.bf16.mxu0 %v7701_v61  ;;  %v383_v41 = vld [vmem:[#allocation5 + $0x830] sm:$0xff] }
 0x151   :  { %v2515_v9 = vpop.f32.mrf.mxu0  ;;  %2976 = vmatprep.mubr.bf16.mxu1 %v7679_v58  ;;  %v6395_v47 = vcombine.high %v379_v38, %v383_v41  ;;  %v499_v52 = vld [vmem:[#allocation5 + $0xbd0] sm:$0xff]  ;;  %v6394_v59 = vcombine.low %v379_v38, %v383_v41 }
 0x152   :  { %2898 = vmatpush1.bf16.msra.mxu0 %v6426_v49  ;;  %v2516_v11 = vadd.f32 %v2515_v9, %v7737_v2  ;;  %v7772_v12 = vadd.f32 %v2566_v5, %v2514_v3  ;;  %v2568_v13 = vpop.f32.mrf.mxu1  ;;  %v6410_v2 = vcombine.low %v395_v0, %v399_v1  ;;  %v6141_v49 = vcombine.high %v124_v43, %v128_v44  ;;  %v503_v55 = vld [vmem:[#allocation5 + $0xbf0] sm:$0xff] }
 0x153   :  { %2951 = vmatpush1.bf16.msra.mxu1 %v6172_v56  ;;  %2899 = vmatprep.subr.bf16.mxu0 %v6419_v57  ;;  %v2517_v17 = vpop.f32.mrf.mxu0  ;;  %v244_v56 = vld [vmem:[#allocation5 + $0x3d8] sm:$0xff]  ;;  %v6515_v0 = vcombine.high %v499_v52, %v503_v55  ;;  %v491_v3 = vld [vmem:[#allocation5 + $0xb90] sm:$0xff]  ;;  %v6514_v9 = vcombine.low %v499_v52, %v503_v55 }
 0x154   :  { %2952 = vmatprep.subr.bf16.mxu1 %v6165_v60  ;;  %v2518_v26 = vadd.f32 %v2517_v17, %v7762_v48  ;;  %v7775_v27 = vadd.f32 %v2568_v13, %v2516_v11  ;;  %v2570_v58 = vpop.f32.mrf.mxu1  ;;  %v248_v57 = vld [vmem:[#allocation5 + $0x3f8] sm:$0xff]  ;;  %v6140_v60 = vcombine.low %v124_v43, %v128_v44  ;;  %v495_v5 = vld [vmem:[#allocation5 + $0xbb0] sm:$0xff]  ;;  %v6253_v13 = vcombine.high %v236_v7, %v240_v8 }
 0x155   :  { %v6261_v1 = vcombine.high %v244_v56, %v248_v57  ;;  %v6507_v11 = vcombine.high %v491_v3, %v495_v5  ;;  %v228_v17 = vld [vmem:[#allocation5 + $0x358] sm:$0xff]  ;;  %v6506_v23 = vcombine.low %v491_v3, %v495_v5  ;;  %v475_v28 = vld [vmem:[#allocation5 + $0xb10] sm:$0xff] }
 0x156   :  { %2900 = vmatpush1.bf16.msra.mxu0 %v6418_v10  ;;  %v7777_v31 = vadd.f32 %v2570_v58, %v2518_v26  ;;  %v6260_v10 = vcombine.low %v244_v56, %v248_v57  ;;  %v479_v29 = vld [vmem:[#allocation5 + $0xb30] sm:$0xff] }
 0x157   :  { %2953 = vmatpush1.bf16.msra.mxu1 %v6164_v14  ;;  %2901 = vmatprep.subr.bf16.mxu0 %v6411_v15  ;;  %v483_v14 = vld [vmem:[#allocation5 + $0xb50] sm:$0xff]  ;;  %v6491_v38 = vcombine.high %v475_v28, %v479_v29 }
 0x158   :  { %2954 = vmatprep.subr.bf16.mxu1 %v6157_v18  ;;  %v487_v15 = vld [vmem:[#allocation5 + $0xb70] sm:$0xff]  ;;  %v232_v18 = vld [vmem:[#allocation5 + $0x378] sm:$0xff] }
 0x159   :  { %v6499_v26 = vcombine.high %v483_v14, %v487_v15  ;;  %v6245_v58 = vcombine.high %v228_v17, %v232_v18  ;;  %v467_v43 = vld [vmem:[#allocation5 + $0xad0] sm:$0xff] }
 0x15a   :  { %2902 = vmatpush1.bf16.msra.mxu0 %v6410_v2  ;;  %v220_v2 = vld [vmem:[#allocation5 + $0x318] sm:$0xff]  ;;  %v471_v44 = vld [vmem:[#allocation5 + $0xaf0] sm:$0xff] }
 0x15b   :  { %2955 = vmatpush1.bf16.msra.mxu1 %v6156_v32  ;;  %2903 = vmatprep.subr.bf16.mxu0 %v6403_v33  ;;  %v224_v32 = vld [vmem:[#allocation5 + $0x338] sm:$0xff]  ;;  %v6498_v33 = vcombine.low %v483_v14, %v487_v15  ;;  %v6483_v52 = vcombine.high %v467_v43, %v471_v44  ;;  %v459_v56 = vld [vmem:[#allocation5 + $0xa90] sm:$0xff] }
 0x15c   :  { %2956 = vmatprep.subr.bf16.mxu1 %v6149_v36  ;;  %v6244_v36 = vcombine.low %v228_v17, %v232_v18  ;;  %v6237_v41 = vcombine.high %v220_v2, %v224_v32  ;;  %v463_v57 = vld [vmem:[#allocation5 + $0xab0] sm:$0xff] }
 0x15d   :  { %v6475_v3 = vcombine.high %v459_v56, %v463_v57  ;;  %v451_v7 = vld [vmem:[#allocation5 + $0xa50] sm:$0xff] }
 0x15e   :  { %2904 = vmatpush1.bf16.msra.mxu0 %v6402_v45  ;;  %v212_v45 = vld [vmem:[#allocation5 + $0x2d8] sm:$0xff]  ;;  %v455_v8 = vld [vmem:[#allocation5 + $0xa70] sm:$0xff] }
 0x15f   :  { %2957 = vmatpush1.bf16.msra.mxu1 %v6148_v46  ;;  %2905 = vmatprep.subr.bf16.mxu0 %v6395_v47  ;;  %v216_v46 = vld [vmem:[#allocation5 + $0x2f8] sm:$0xff]  ;;  %v6490_v47 = vcombine.low %v475_v28, %v479_v29  ;;  %v6467_v14 = vcombine.high %v451_v7, %v455_v8  ;;  %v443_v17 = vld [vmem:[#allocation5 + $0xa10] sm:$0xff] }
 0x160   :  { %2958 = vmatprep.subr.bf16.mxu1 %v6141_v49  ;;  %v6236_v49 = vcombine.low %v220_v2, %v224_v32  ;;  %v6229_v55 = vcombine.high %v212_v45, %v216_v46  ;;  %v447_v18 = vld [vmem:[#allocation5 + $0xa30] sm:$0xff]  ;;  %v308_v2 = vld [vmem:[#allocation5 + $0x5d8] sm:$0xff] }
 0x161   :  { %v6459_v28 = vcombine.high %v443_v17, %v447_v18  ;;  %v312_v32 = vld [vmem:[#allocation5 + $0x5f8] sm:$0xff] }
 0x162   :  { %2906 = vmatpush1.bf16.msra.mxu0 %v6394_v59  ;;  %v204_v59 = vld [vmem:[#allocation5 + $0x298] sm:$0xff] }
 0x163   :  { %2959 = vmatpush1.bf16.msra.mxu1 %v6140_v60  ;;  %2907 = vmatprep.subr.bf16.mxu0 %v6515_v0  ;;  %v208_v60 = vld [vmem:[#allocation5 + $0x2b8] sm:$0xff]  ;;  %v6482_v0 = vcombine.low %v467_v43, %v471_v44  ;;  %v6325_v43 = vcombine.high %v308_v2, %v312_v32 }
 0x164   :  { %2960 = vmatprep.subr.bf16.mxu1 %v6261_v1  ;;  %v6228_v1 = vcombine.low %v212_v45, %v216_v46  ;;  %v6221_v5 = vcombine.high %v204_v59, %v208_v60  ;;  %v300_v45 = vld [vmem:[#allocation5 + $0x598] sm:$0xff] }
 0x165   :  { %v304_v46 = vld [vmem:[#allocation5 + $0x5b8] sm:$0xff] }
 0x166   :  { %2908 = vmatpush2.bf16.msra.mxu0 %v6514_v9  ;;  %v196_v9 = vld [vmem:[#allocation5 + $0x258] sm:$0xff] }
 0x167   :  { %2961 = vmatpush2.bf16.msra.mxu1 %v6260_v10  ;;  %2909 = vmatprep.subr.bf16.mxu0 %v6507_v11  ;;  %v200_v10 = vld [vmem:[#allocation5 + $0x278] sm:$0xff]  ;;  %v6474_v11 = vcombine.low %v459_v56, %v463_v57  ;;  %v6317_v56 = vcombine.high %v300_v45, %v304_v46 }
 0x168   :  { %2962 = vmatprep.subr.bf16.mxu1 %v6253_v13  ;;  %v6220_v13 = vcombine.low %v204_v59, %v208_v60  ;;  %v6213_v15 = vcombine.high %v196_v9, %v200_v10  ;;  %v292_v59 = vld [vmem:[#allocation5 + $0x558] sm:$0xff] }
 0x169   :  { %v296_v60 = vld [vmem:[#allocation5 + $0x578] sm:$0xff] }
 0x16a   :  { %2910 = vmatpush2.bf16.msra.mxu0 %v6506_v23  ;;  %v188_v23 = vld [vmem:[#allocation5 + $0x218] sm:$0xff] }
 0x16b   :  { %2963 = vmatpush2.bf16.msra.mxu1 %v6252_v24  ;;  %2911 = vmatprep.subr.bf16.mxu0 %v6499_v26  ;;  %v192_v24 = vld [vmem:[#allocation5 + $0x238] sm:$0xff]  ;;  %v6466_v26 = vcombine.low %v451_v7, %v455_v8  ;;  %v6316_v7 = vcombine.low %v300_v45, %v304_v46 }
 0x16c   :  { %2964 = vmatprep.subr.bf16.mxu1 %v6245_v58  ;;  %v6212_v58 = vcombine.low %v196_v9, %v200_v10  ;;  %v6205_v29 = vcombine.high %v188_v23, %v192_v24  ;;  %v6309_v10 = vcombine.high %v292_v59, %v296_v60  ;;  %v268_v46 = vld [vmem:[#allocation5 + $0x498] sm:$0xff] }
 0x16e   :  { %2912 = vmatpush2.bf16.msra.mxu0 %v6498_v33  ;;  %v436_v33 = vld [vmem:[#allocation5 + $0x9d8] sm:$0xff] }
 0x16f   :  { %2965 = vmatpush2.bf16.msra.mxu1 %v6244_v36  ;;  %2913 = vmatprep.subr.bf16.mxu0 %v6491_v38  ;;  %v440_v36 = vld [vmem:[#allocation5 + $0x9f8] sm:$0xff]  ;;  %v6458_v38 = vcombine.low %v443_v17, %v447_v18 }
 0x170   :  { %2966 = vmatprep.subr.bf16.mxu1 %v6237_v41  ;;  %v6204_v41 = vcombine.low %v188_v23, %v192_v24  ;;  %v6453_v44 = vcombine.high %v436_v33, %v440_v36  ;;  %v412_v17 = vld [vmem:[#allocation5 + $0x918] sm:$0xff] }
 0x171   :  { %v416_v18 = vld [vmem:[#allocation5 + $0x938] sm:$0xff] }
 0x172   :  { %2914 = vmatpush2.bf16.msra.mxu0 %v6490_v47  ;;  %v428_v47 = vld [vmem:[#allocation5 + $0x998] sm:$0xff] }
 0x173   :  { %2967 = vmatpush2.bf16.msra.mxu1 %v6236_v49  ;;  %2915 = vmatprep.subr.bf16.mxu0 %v6483_v52  ;;  %v432_v49 = vld [vmem:[#allocation5 + $0x9b8] sm:$0xff]  ;;  %v6324_v52 = vcombine.low %v308_v2, %v312_v32 }
 0x174   :  { %2968 = vmatprep.subr.bf16.mxu1 %v6229_v55  ;;  %v6452_v55 = vcombine.low %v436_v33, %v440_v36  ;;  %v6445_v57 = vcombine.high %v428_v47, %v432_v49  ;;  %v6444_v9 = vcombine.low %v428_v47, %v432_v49  ;;  %v280_v2 = vld [vmem:[#allocation5 + $0x4f8] sm:$0xff] }
 0x175   :  { %v408_v33 = vld [vmem:[#allocation5 + $0x8f8] sm:$0xff] }
 0x176   :  { %2916 = vmatpush2.bf16.msra.mxu0 %v6482_v0  ;;  %v272_v47 = vld [vmem:[#allocation5 + $0x4b8] sm:$0xff] }
 0x177   :  { %2969 = vmatpush2.bf16.msra.mxu1 %v6228_v1  ;;  %2917 = vmatprep.subr.bf16.mxu0 %v6475_v3  ;;  %v420_v1 = vld [vmem:[#allocation5 + $0x958] sm:$0xff] }
 0x178   :  { %2970 = vmatprep.subr.bf16.mxu1 %v6221_v5  ;;  %v424_v3 = vld [vmem:[#allocation5 + $0x978] sm:$0xff] }
 0x179   :  { %v6436_v24 = vcombine.low %v420_v1, %v424_v3 }
 0x17a   :  { %2918 = vmatpush2.bf16.msra.mxu0 %v6474_v11  ;;  %v6437_v11 = vcombine.high %v420_v1, %v424_v3  ;;  %v264_v1 = vld [vmem:[#allocation5 + $0x478] sm:$0xff] }
 0x17b   :  { %2971 = vmatpush2.bf16.msra.mxu1 %v6220_v13  ;;  %2919 = vmatprep.subr.bf16.mxu0 %v6467_v14  ;;  %v284_v13 = vld [vmem:[#allocation5 + $0x518] sm:$0xff] }
 0x17c   :  { %2972 = vmatprep.subr.bf16.mxu1 %v6213_v15  ;;  %v288_v14 = vld [vmem:[#allocation5 + $0x538] sm:$0xff] }
 0x17d   :  { %v6300_v36 = vcombine.low %v284_v13, %v288_v14  ;;  %v388_v3 = vld [vmem:[#allocation5 + $0x858] sm:$0xff] }
 0x17e   :  { %2920 = vmatpush2.bf16.msra.mxu0 %v6466_v26  ;;  %v6301_v26 = vcombine.high %v284_v13, %v288_v14  ;;  %v256_v13 = vld [vmem:[#allocation5 + $0x438] sm:$0xff] }
 0x17f   :  { %2973 = vmatpush2.bf16.msra.mxu1 %v6212_v58  ;;  %2921 = vmatprep.subr.bf16.mxu0 %v6459_v28  ;;  %v6429_v28 = vcombine.high %v412_v17, %v416_v18  ;;  %v380_v14 = vld [vmem:[#allocation5 + $0x818] sm:$0xff] }
 0x180   :  { %2974 = vmatprep.subr.bf16.mxu1 %v6205_v29  ;;  %v276_v29 = vld [vmem:[#allocation5 + $0x4d8] sm:$0xff] }
 0x182   :  { %2922 = vmatpush2.bf16.msra.mxu0 %v6458_v38 }
 0x183   :  { %2975 = vmatpush2.bf16.msra.mxu1 %v6204_v41  ;;  %2997 = vmatprep.subr.bf16.mxu0 %v6325_v43  ;;  %v6428_v41 = vcombine.low %v412_v17, %v416_v18  ;;  %v6293_v43 = vcombine.high %v276_v29, %v280_v2 }
 0x184   :  { %3050 = vmatprep.subr.bf16.mxu1 %v6453_v44 }
 0x185   :  { %v2607_v0 = vpop.f32.mrf.mxu0  ;;  %2924 = vmatmul.mubr.bf16.vlgmr.msra.gmra.mxu0 %v7707_v62 }
 0x186   :  { %v2608_v5 = vadd.f32 %v2607_v0, %v7744_v20  ;;  %2977 = vmatmul.mubr.bf16.vlgmr.msra.gmra.mxu1 %v7685_v21  ;;  %2998 = vmatpush1.bf16.msra.mxu0 %v6324_v52  ;;  %v6308_v20 = vcombine.low %v292_v59, %v296_v60  ;;  %v396_v52 = vld [vmem:[#allocation5 + $0x898] sm:$0xff] }
 0x187   :  { %3051 = vmatpush1.bf16.msra.mxu1 %v6452_v55  ;;  %v7782_v8 = vpop.f32.mrf.mxu0  ;;  %2999 = vmatprep.subr.bf16.mxu0 %v6317_v56  ;;  %v6292_v55 = vcombine.low %v276_v29, %v280_v2  ;;  %v260_v0 = vld [vmem:[#allocation5 + $0x458] sm:$0xff] }
 0x188   :  { %3052 = vmatprep.subr.bf16.mxu1 %v6445_v57  ;;  %2933 = vmatprep.mubr.bf16.mxu0 %v7709_v6 }
 0x189   :  { %v2611_v15 = vpop.f32.mrf.mxu0  ;;  %2986 = vmatprep.mubr.bf16.mxu1 %v7689_v34  ;;  %v404_v34 = vld [vmem:[#allocation5 + $0x8d8] sm:$0xff] }
 0x18a   :  { %v2612_v21 = vadd.f32 %v2611_v15, %v7754_v39  ;;  %3000 = vmatpush1.bf16.msra.mxu0 %v6316_v7  ;;  %v6421_v45 = vcombine.high %v404_v34, %v408_v33  ;;  %v6420_v57 = vcombine.low %v404_v34, %v408_v33  ;;  %v6276_v15 = vcombine.low %v260_v0, %v264_v1  ;;  %v364_v33 = vld [vmem:[#allocation5 + $0x798] sm:$0xff] }
 0x18b   :  { %3053 = vmatpush1.bf16.msra.mxu1 %v6444_v9  ;;  %v7787_v23 = vpop.f32.mrf.mxu0  ;;  %3001 = vmatprep.subr.bf16.mxu0 %v6309_v10  ;;  %v6277_v9 = vcombine.high %v260_v0, %v264_v1  ;;  %v7803_v0 = vpop.f32.mrf.mxu1 }
 0x18c   :  { %v7789_v58 = vpack.c.bf16 %v2612_v21, %v2608_v5  ;;  %3054 = vmatprep.subr.bf16.mxu1 %v6437_v11  ;;  %v392_v5 = vld [vmem:[#allocation5 + $0x878] sm:$0xff] }
 0x18d   :  { %v2617_v32 = vpop.f32.mrf.mxu0  ;;  %2934 = vmatmul.mubr.bf16.gmra.mxu0 %v7714_v19  ;;  %v6405_v10 = vcombine.high %v388_v3, %v392_v5  ;;  %v252_v11 = vld [vmem:[#allocation5 + $0x418] sm:$0xff]  ;;  %v6404_v17 = vcombine.low %v388_v3, %v392_v5 }
 0x18e   :  { %v2618_v39 = vadd.f32 %v2617_v32, %v7767_v4  ;;  %3002 = vmatpush1.bf16.msra.mxu0 %v6308_v20  ;;  %2987 = vmatmul.mubr.bf16.gmra.mxu1 %v7696_v50  ;;  %v400_v4 = vld [vmem:[#allocation5 + $0x8b8] sm:$0xff]  ;;  %v6269_v18 = vcombine.high %v252_v11, %v256_v13  ;;  %v6268_v29 = vcombine.low %v252_v11, %v256_v13  ;;  %v7805_v13 = vpop.f32.mrf.mxu1 }
 0x18f   :  { %3055 = vmatpush1.bf16.msra.mxu1 %v6436_v24  ;;  %v2619_v38 = vpop.f32.mrf.mxu0  ;;  %3003 = vmatprep.subr.bf16.mxu0 %v6301_v26  ;;  %v6412_v7 = vcombine.low %v396_v52, %v400_v4  ;;  %v372_v20 = vld [vmem:[#allocation5 + $0x7d8] sm:$0xff] }
 0x190   :  { %v2620_v44 = vadd.f32 %v2619_v38, %v7772_v12  ;;  %3056 = vmatprep.subr.bf16.mxu1 %v6429_v28  ;;  %3029 = vmatprep.mubr.bf16.mxu0 %v7681_v63  ;;  %v6285_v12 = vcombine.high %v268_v46, %v272_v47  ;;  %v6413_v63 = vcombine.high %v396_v52, %v400_v4  ;;  %v376_v24 = vld [vmem:[#allocation5 + $0x7f8] sm:$0xff] }
 0x191   :  { %v2621_v49 = vpop.f32.mrf.mxu0  ;;  %3082 = vmatprep.mubr.bf16.mxu1 %v7701_v61  ;;  %v500_v26 = vld [vmem:[#allocation5 + $0xbd8] sm:$0xff]  ;;  %v6389_v32 = vcombine.high %v372_v20, %v376_v24 }
 0x192   :  { %v2622_v50 = vadd.f32 %v2621_v49, %v7775_v27  ;;  %3004 = vmatpush1.bf16.msra.mxu0 %v6300_v36  ;;  %v6284_v27 = vcombine.low %v268_v46, %v272_v47  ;;  %v504_v28 = vld [vmem:[#allocation5 + $0xbf8] sm:$0xff] }
 0x193   :  { %3057 = vmatpush1.bf16.msra.mxu1 %v6428_v41  ;;  %v2623_v56 = vpop.f32.mrf.mxu0  ;;  %3005 = vmatprep.subr.bf16.mxu0 %v6293_v43  ;;  %v6517_v34 = vcombine.high %v500_v26, %v504_v28  ;;  %v492_v36 = vld [vmem:[#allocation5 + $0xb98] sm:$0xff]  ;;  %v6388_v41 = vcombine.low %v372_v20, %v376_v24  ;;  %v6516_v43 = vcombine.low %v500_v26, %v504_v28  ;;  %v7807_v26 = vpop.f32.mrf.mxu1 }
 0x194   :  { %v7798_v59 = vpack.c.bf16 %v2622_v50, %v2618_v39  ;;  %v2624_v60 = vadd.f32 %v2623_v56, %v7777_v31  ;;  %3058 = vmatprep.subr.bf16.mxu1 %v6421_v45  ;;  %v384_v31 = vld [vmem:[#allocation5 + $0x838] sm:$0xff] }
 0x195   :  { %v6397_v21 = vcombine.high %v380_v14, %v384_v31  ;;  %v6396_v2 = vcombine.low %v380_v14, %v384_v31  ;;  %v368_v39 = vld [vmem:[#allocation5 + $0x7b8] sm:$0xff] }
 0x196   :  { %v7801_v61 = vpack.c.bf16 %v2624_v60, %v2620_v44  ;;  %3006 = vmatpush1.bf16.msra.mxu0 %v6292_v55  ;;  %v496_v38 = vld [vmem:[#allocation5 + $0xbb8] sm:$0xff]  ;;  %v6381_v44 = vcombine.high %v364_v33, %v368_v39  ;;  %v6380_v4 = vcombine.low %v364_v33, %v368_v39 }
 0x197   :  { %3059 = vmatpush1.bf16.msra.mxu1 %v6420_v57  ;;  %3007 = vmatprep.subr.bf16.mxu0 %v6285_v12  ;;  %v6509_v45 = vcombine.high %v492_v36, %v496_v38  ;;  %v356_v46 = vld [vmem:[#allocation5 + $0x758] sm:$0xff]  ;;  %v6508_v50 = vcombine.low %v492_v36, %v496_v38  ;;  %v7809_v38 = vpop.f32.mrf.mxu1 }
 0x198   :  { %3060 = vmatprep.subr.bf16.mxu1 %v6413_v63  ;;  %v360_v47 = vld [vmem:[#allocation5 + $0x778] sm:$0xff] }
 0x199   :  { %v484_v49 = vld [vmem:[#allocation5 + $0xb58] sm:$0xff]  ;;  %v6373_v55 = vcombine.high %v356_v46, %v360_v47  ;;  %v6372_v1 = vcombine.low %v356_v46, %v360_v47 }
 0x19a   :  { %3008 = vmatpush1.bf16.msra.mxu0 %v6284_v27  ;;  %v488_v52 = vld [vmem:[#allocation5 + $0xb78] sm:$0xff] }
 0x19b   :  { %3061 = vmatpush1.bf16.msra.mxu1 %v6412_v7  ;;  %3009 = vmatprep.subr.bf16.mxu0 %v6277_v9  ;;  %v6501_v56 = vcombine.high %v484_v49, %v488_v52  ;;  %v348_v57 = vld [vmem:[#allocation5 + $0x718] sm:$0xff]  ;;  %v6500_v3 = vcombine.low %v484_v49, %v488_v52 }
 0x19c   :  { %3062 = vmatprep.subr.bf16.mxu1 %v6405_v10  ;;  %v352_v12 = vld [vmem:[#allocation5 + $0x738] sm:$0xff] }
 0x19d   :  { %v476_v60 = vld [vmem:[#allocation5 + $0xb18] sm:$0xff]  ;;  %v6365_v5 = vcombine.high %v348_v57, %v352_v12  ;;  %v6364_v14 = vcombine.low %v348_v57, %v352_v12 }
 0x19e   :  { %3010 = vmatpush1.bf16.msra.mxu0 %v6276_v15  ;;  %v480_v63 = vld [vmem:[#allocation5 + $0xb38] sm:$0xff] }
 0x19f   :  { %3063 = vmatpush1.bf16.msra.mxu1 %v6404_v17  ;;  %3011 = vmatprep.subr.bf16.mxu0 %v6269_v18  ;;  %v6493_v27 = vcombine.high %v476_v60, %v480_v63  ;;  %v340_v7 = vld [vmem:[#allocation5 + $0x6d8] sm:$0xff]  ;;  %v6492_v31 = vcombine.low %v476_v60, %v480_v63  ;;  %v517_v60 = vsub.s32 2, %v7729_v42 }
 0x1a0   :  { %3064 = vmatprep.subr.bf16.mxu1 %v6397_v21  ;;  %v344_v9 = vld [vmem:[#allocation5 + $0x6f8] sm:$0xff] }
 0x1a1   :  { %v468_v10 = vld [vmem:[#allocation5 + $0xad8] sm:$0xff]  ;;  %v6357_v15 = vcombine.high %v340_v7, %v344_v9  ;;  %v6356_v28 = vcombine.low %v340_v7, %v344_v9  ;;  %v2508_v9 = vadd.f32 %v7752_v35, %v7762_v48 }
 0x1a2   :  { %3012 = vmatpush1.bf16.msra.mxu0 %v6268_v29  ;;  %v472_v11 = vld [vmem:[#allocation5 + $0xaf8] sm:$0xff] }
 0x1a3   :  { %3065 = vmatpush1.bf16.msra.mxu1 %v6396_v2  ;;  %3013 = vmatprep.subr.bf16.mxu0 %v6389_v32  ;;  %v6485_v17 = vcombine.high %v468_v10, %v472_v11  ;;  %v332_v18 = vld [vmem:[#allocation5 + $0x698] sm:$0xff]  ;;  %v6484_v29 = vcombine.low %v468_v10, %v472_v11  ;;  %v7824_v10 = vrot.slane %v7731_v51, %v517_v60 }
 0x1a4   :  { %3066 = vmatprep.subr.bf16.mxu1 %v6517_v34  ;;  %v336_v21 = vld [vmem:[#allocation5 + $0x6b8] sm:$0xff] }
 0x1a5   :  { %v460_v20 = vld [vmem:[#allocation5 + $0xa98] sm:$0xff]  ;;  %v6349_v2 = vcombine.high %v332_v18, %v336_v21 }
 0x1a6   :  { %3014 = vmatpush2.bf16.msra.mxu0 %v6388_v41  ;;  %v464_v24 = vld [vmem:[#allocation5 + $0xab8] sm:$0xff]  ;;  %v6348_v41 = vcombine.low %v332_v18, %v336_v21  ;;  %v6925_v18 = vld [vmem:[#allocation8 + $0x424] ss:$24 sps:$4 sm:$0xff]  }
 0x1a7   :  { %3067 = vmatpush2.bf16.msra.mxu1 %v6516_v43  ;;  %3015 = vmatprep.subr.bf16.mxu0 %v6381_v44  ;;  %v6477_v32 = vcombine.high %v460_v20, %v464_v24  ;;  %v324_v34 = vld [vmem:[#allocation5 + $0x658] sm:$0xff]  ;;  %v6476_v43 = vcombine.low %v460_v20, %v464_v24  ;;  %v2561_v20 = vadd.f32 %v7756_v40, %v2508_v9 }
 0x1a8   :  { %3068 = vmatprep.subr.bf16.mxu1 %v6509_v45  ;;  %v328_v33 = vld [vmem:[#allocation5 + $0x678] sm:$0xff]  ;;  %v7811_v45 = vpop.f32.mrf.mxu1  ;;  %v2665_v40 = vadd.f32 %v7807_v26, %v7824_v10 }
 0x1a9   :  { %v452_v39 = vld [vmem:[#allocation5 + $0xa58] sm:$0xff]  ;;  %v6341_v44 = vcombine.high %v324_v34, %v328_v33 }
 0x1aa   :  { %3016 = vmatpush2.bf16.msra.mxu0 %v6380_v4  ;;  %v456_v36 = vld [vmem:[#allocation5 + $0xa78] sm:$0xff]  ;;  %v7813_v57 = vpop.f32.mrf.mxu1 }
 0x1ab   :  { %3069 = vmatpush2.bf16.msra.mxu1 %v6508_v50  ;;  %3017 = vmatprep.subr.bf16.mxu0 %v6373_v55  ;;  %v6469_v46 = vcombine.high %v452_v39, %v456_v36  ;;  %v316_v47 = vld [vmem:[#allocation5 + $0x618] sm:$0xff]  ;;  %v6340_v50 = vcombine.low %v324_v34, %v328_v33  ;;  %v6468_v55 = vcombine.low %v452_v39, %v456_v36 }
 0x1ac   :  { %3070 = vmatprep.subr.bf16.mxu1 %v6501_v56  ;;  %v320_v49 = vld [vmem:[#allocation5 + $0x638] sm:$0xff] }
 0x1ad   :  { %v444_v52 = vld [vmem:[#allocation5 + $0xa18] sm:$0xff]  ;;  %v6333_v56 = vcombine.high %v316_v47, %v320_v49  ;;  %v6332_v63 = vcombine.low %v316_v47, %v320_v49 }
 0x1ae   :  { %3018 = vmatpush2.bf16.msra.mxu0 %v6372_v1  ;;  %v448_v4 = vld [vmem:[#allocation5 + $0xa38] sm:$0xff]  ;;  %v521_v1 = vsub.s32 3, %v7729_v42 }
 0x1af   :  { %3071 = vmatpush2.bf16.msra.mxu1 %v6500_v3  ;;  %3019 = vmatprep.subr.bf16.mxu0 %v6365_v5  ;;  %v6461_v12 = vcombine.high %v444_v52, %v448_v4  ;;  %v6460_v3 = vcombine.low %v444_v52, %v448_v4  ;;  %v6916_v5 = vld [vmem:[#allocation8 + $0x154] ss:$24 sps:$4 sm:$0xff]   ;;  %v6914_v11 = vld [vmem:[#allocation8 + $0x150] ss:$24 sps:$4 sm:$0xff]  }
 0x1b0   :  { %3072 = vmatprep.subr.bf16.mxu1 %v6493_v27  ;;  %v7817_v27 = vpop.f32.mrf.mxu1  ;;  %v6919_v7 = vld [vmem:[#allocation8 + $0x454] ss:$24 sps:$4 sm:$0xff]   ;;  %v6926_v26 = vld [vmem:[#allocation8 + $0xf0] ss:$24 sps:$4 sm:$0xff]  }
 0x1b2   :  { %3020 = vmatpush2.bf16.msra.mxu0 %v6364_v14  ;;  %v2504_v14 = vadd.f32 %v7742_v16, %v7762_v48  ;;  %v7833_v35 = vpop.f32.mrf.mxu1  ;;  %v2661_v16 = vadd.f32 %v7803_v0, %v7824_v10  ;;  %v2614_v0 = vadd.f32 %v7787_v23, %v2561_v20 }
 0x1b3   :  { %3073 = vmatpush2.bf16.msra.mxu1 %v6492_v31  ;;  %3021 = vmatprep.subr.bf16.mxu0 %v6357_v15  ;;  %v7831_v31 = vrot.slane %v7731_v51, %v521_v1  ;;  %v6917_v15 = vld [vmem:[#allocation8 + $0x450] ss:$24 sps:$4 sm:$0xff]   ;;  %v6920_v51 = vld [vmem:[#allocation8 + $0x120] ss:$24 sps:$4 sm:$0xff]  }
 0x1b4   :  { %3074 = vmatprep.subr.bf16.mxu1 %v6485_v17  ;;  %v6922_v17 = vld [vmem:[#allocation8 + $0x124] ss:$24 sps:$4 sm:$0xff]   ;;  %v2557_v24 = vadd.f32 %v7746_v22, %v2504_v14 }
 0x1b5   :  { %v2667_v33 = vadd.f32 %v7809_v38, %v7831_v31  ;;  %v2671_v38 = vadd.f32 %v7811_v45, %v7824_v10  ;;  %v2675_v45 = vadd.f32 %v7817_v27, %v7824_v10  ;;  %v6946_v27 = vld [vmem:[#allocation8 + $0x64] ss:$24 sps:$4 sm:$0xff]  }
 0x1b6   :  { %3022 = vmatpush2.bf16.msra.mxu0 %v6356_v28  ;;  %v2663_v28 = vadd.f32 %v7805_v13, %v7831_v31  ;;  %v2610_v13 = vadd.f32 %v7782_v8, %v2557_v24  ;;  %v6937_v8 = vld [vmem:[#allocation8 + $0x3c4] ss:$24 sps:$4 sm:$0xff]   ;;  %v6952_v24 = vld [vmem:[#allocation8 + $0x34] ss:$24 sps:$4 sm:$0xff]  }
 0x1b7   :  { %3075 = vmatpush2.bf16.msra.mxu1 %v6484_v29  ;;  %3023 = vmatprep.subr.bf16.mxu0 %v6349_v2  ;;  %v6923_v2 = vld [vmem:[#allocation8 + $0x420] ss:$24 sps:$4 sm:$0xff]  }
 0x1b8   :  { %3076 = vmatprep.subr.bf16.mxu1 %v6477_v32 }
 0x1ba   :  { %3024 = vmatpush2.bf16.msra.mxu0 %v6348_v41 }
 0x1bb   :  { %3077 = vmatpush2.bf16.msra.mxu1 %v6476_v43  ;;  %3025 = vmatprep.subr.bf16.mxu0 %v6341_v44  ;;  %v6929_v43 = vld [vmem:[#allocation8 + $0x3f0] ss:$24 sps:$4 sm:$0xff]   ;;  %v6934_v44 = vld [vmem:[#allocation8 + $0xc4] ss:$24 sps:$4 sm:$0xff]  }
 0x1bc   :  { %3078 = vmatprep.subr.bf16.mxu1 %v6469_v46 }
 0x1be   :  { %3026 = vmatpush2.bf16.msra.mxu0 %v6340_v50 }
 0x1bf   :  { %3079 = vmatpush2.bf16.msra.mxu1 %v6468_v55  ;;  %3027 = vmatprep.subr.bf16.mxu0 %v6333_v56 }
 0x1c0   :  { %3080 = vmatprep.subr.bf16.mxu1 %v6461_v12  ;;  %v6932_v12 = vld [vmem:[#allocation8 + $0xc0] ss:$24 sps:$4 sm:$0xff]  }
 0x1c2   :  { %3028 = vmatpush2.bf16.msra.mxu0 %v6332_v63 }
 0x1c3   :  { %3081 = vmatpush2.bf16.msra.mxu1 %v6460_v3  ;;  %5455 = vmatprep.subr.bf16.mxu0 %v6916_v5  ;;  %v6935_v3 = vld [vmem:[#allocation8 + $0x3c0] ss:$24 sps:$4 sm:$0xff]   ;;  %v6940_v5 = vld [vmem:[#allocation8 + $0x94] ss:$24 sps:$4 sm:$0xff]  }
 0x1c4   :  { %5508 = vmatprep.subr.bf16.mxu1 %v6919_v7 }
 0x1c5   :  { %v2713_v21 = vpop.f32.mrf.mxu0  ;;  %3030 = vmatmul.mubr.bf16.vlgmr.msra.gmra.mxu0 %v7687_v25  ;;  %v6928_v25 = vld [vmem:[#allocation8 + $0xf4] ss:$24 sps:$4 sm:$0xff]  }
 0x1c6   :  { %v2766_v48 = vpop.f32.mrf.mxu1  ;;  %3083 = vmatmul.mubr.bf16.vlgmr.msra.gmra.mxu1 %v7707_v62  ;;  %5456 = vmatpush1.bf16.msra.mxu0 %v6914_v11  ;;  %v2714_v32 = vadd.f32 %v2713_v21, %v2661_v16  ;;  %v6931_v62 = vld [vmem:[#allocation8 + $0x3f4] ss:$24 sps:$4 sm:$0xff]   ;;  %v6941_v21 = vld [vmem:[#allocation8 + $0x390] ss:$24 sps:$4 sm:$0xff]   ;;  %v6949_v16 = vld [vmem:[#allocation8 + $0x364] ss:$24 sps:$4 sm:$0xff]  }
 0x1c7   :  { %5509 = vmatpush1.bf16.msra.mxu1 %v6917_v15  ;;  %v2715_v29 = vpop.f32.mrf.mxu0  ;;  %5457 = vmatprep.subr.bf16.mxu0 %v6922_v17  ;;  %v6943_v11 = vld [vmem:[#allocation8 + $0x394] ss:$24 sps:$4 sm:$0xff]  }
 0x1c8   :  { %v2768_v34 = vpop.f32.mrf.mxu1  ;;  %5510 = vmatprep.subr.bf16.mxu1 %v6925_v18  ;;  %3039 = vmatprep.mubr.bf16.mxu0 %v7692_v37  ;;  %v2716_v39 = vadd.f32 %v2715_v29, %v2663_v28  ;;  %v7851_v37 = vpack.c.bf16 %v2614_v0, %v2610_v13  ;;  %v2767_v46 = vadd.f32 %v2766_v48, %v2714_v32  ;;  %v6938_v18 = vld [vmem:[#allocation8 + $0x90] ss:$24 sps:$4 sm:$0xff]   ;;  %v6944_v48 = vld [vmem:[#allocation8 + $0x60] ss:$24 sps:$4 sm:$0xff]   ;;  %v6955_v28 = vld [vmem:[#allocation8 + $0x334] ss:$24 sps:$4 sm:$0xff]  }
 0x1c9   :  { %v2717_v22 = vpop.f32.mrf.mxu0  ;;  %3092 = vmatprep.mubr.bf16.mxu1 %v7709_v6  ;;  %v6950_v29 = vld [vmem:[#allocation8 + $0x30] ss:$24 sps:$4 sm:$0xff]   ;;  %v6956_v0 = vld [vmem:[#allocation8] ss:$24 sps:$4 sm:$0xff]  }
 0x1ca   :  { %v2718_v36 = vadd.f32 %v2717_v22, %v2665_v40  ;;  %v2770_v41 = vpop.f32.mrf.mxu1  ;;  %5458 = vmatpush1.bf16.msra.mxu0 %v6920_v51  ;;  %v2769_v4 = vadd.f32 %v2768_v34, %v2716_v39  ;;  %v6947_v51 = vld [vmem:[#allocation8 + $0x360] ss:$24 sps:$4 sm:$0xff]   ;;  %v6961_v40 = vld [vmem:[#allocation8 + $0x304] ss:$24 sps:$4 sm:$0xff]   ;;  %v6964_v34 = vld [vmem:[#allocation8 + $0x2d4] ss:$24 sps:$4 sm:$0xff]  }
 0x1cb   :  { %5511 = vmatpush1.bf16.msra.mxu1 %v6923_v2  ;;  %v2719_v23 = vpop.f32.mrf.mxu0  ;;  %5459 = vmatprep.subr.bf16.mxu0 %v6928_v25  ;;  %v6953_v2 = vld [vmem:[#allocation8 + $0x330] ss:$24 sps:$4 sm:$0xff]   ;;  %v6958_v25 = vld [vmem:[#allocation8 + $0x4] ss:$24 sps:$4 sm:$0xff]   ;;  %v6959_v32 = vld [vmem:[#allocation8 + $0x300] ss:$24 sps:$4 sm:$0xff]  }
 0x1cc   :  { %v2771_v47 = vadd.f32 %v2770_v41, %v2718_v36  ;;  %v2720_v6 = vadd.f32 %v2719_v23, %v2667_v33  ;;  %v2772_v49 = vpop.f32.mrf.mxu1  ;;  %5512 = vmatprep.subr.bf16.mxu1 %v6931_v62  ;;  %v6967_v62 = vld [vmem:[#allocation8 + $0x5d4] ss:$24 sps:$4 sm:$0xff]   ;;  %v6962_v22 = vld [vmem:[#allocation8 + $0x2d0] ss:$24 sps:$4 sm:$0xff]   ;;  %v6970_v33 = vld [vmem:[#allocation8 + $0x2a4] ss:$24 sps:$4 sm:$0xff]  }
 0x1cd   :  { %v2723_v52 = vpop.f32.mrf.mxu0  ;;  %3040 = vmatmul.mubr.bf16.gmra.mxu0 %v7699_v54  ;;  %v6965_v13 = vld [vmem:[#allocation8 + $0x5d0] ss:$24 sps:$4 sm:$0xff]   ;;  %v6973_v39 = vld [vmem:[#allocation8 + $0x5a4] ss:$24 sps:$4 sm:$0xff]   ;;  %v6968_v36 = vld [vmem:[#allocation8 + $0x2a0] ss:$24 sps:$4 sm:$0xff]  }
 0x1ce   :  { %v7856_v50 = vpack.c.bf16 %v2771_v47, %v2767_v46  ;;  %v2773_v55 = vadd.f32 %v2772_v49, %v2720_v6  ;;  %5460 = vmatpush1.bf16.msra.mxu0 %v6926_v26  ;;  %5487 = vmatprep.mubr.bf16.mxu0 %v7851_v37  ;;  %v2776_v56 = vpop.f32.mrf.mxu1  ;;  %v2724_v54 = vadd.f32 %v2723_v52, %v2671_v38  ;;  %v6971_v41 = vld [vmem:[#allocation8 + $0x5a0] ss:$24 sps:$4 sm:$0xff]   ;;  %v6976_v26 = vld [vmem:[#allocation8 + $0x274] ss:$24 sps:$4 sm:$0xff]   ;;  %v6982_v46 = vld [vmem:[#allocation8 + $0x244] ss:$24 sps:$4 sm:$0xff]  }
 0x1cf   :  { %5513 = vmatpush1.bf16.msra.mxu1 %v6929_v43  ;;  %v7859_v63 = vpop.f32.mrf.mxu0  ;;  %5461 = vmatprep.subr.bf16.mxu0 %v6934_v44  ;;  %v6979_v23 = vld [vmem:[#allocation8 + $0x574] ss:$24 sps:$4 sm:$0xff]   ;;  %v6974_v43 = vld [vmem:[#allocation8 + $0x270] ss:$24 sps:$4 sm:$0xff]   ;;  %v6985_v47 = vld [vmem:[#allocation8 + $0x544] ss:$24 sps:$4 sm:$0xff]  }
 0x1d0   :  { %v7863_v7 = vpack.c.bf16 %v2773_v55, %v2769_v4  ;;  %3093 = vmatmul.mubr.bf16.gmra.mxu1 %v7714_v19  ;;  %v7866_v9 = vpop.f32.mrf.mxu1  ;;  %5514 = vmatprep.subr.bf16.mxu1 %v6937_v8  ;;  %v2777_v10 = vadd.f32 %v2776_v56, %v2724_v54  ;;  %v6977_v44 = vld [vmem:[#allocation8 + $0x570] ss:$24 sps:$4 sm:$0xff]   ;;  %v6980_v6 = vld [vmem:[#allocation8 + $0x240] ss:$24 sps:$4 sm:$0xff]   ;;  %v6988_v8 = vld [vmem:[#allocation8 + $0x214] ss:$24 sps:$4 sm:$0xff]  }
 0x1d1   :  { %v2727_v14 = vpop.f32.mrf.mxu0  ;;  %v6983_v49 = vld [vmem:[#allocation8 + $0x540] ss:$24 sps:$4 sm:$0xff]   ;;  %v6991_v38 = vld [vmem:[#allocation8 + $0x514] ss:$24 sps:$4 sm:$0xff]   ;;  %v6986_v52 = vld [vmem:[#allocation8 + $0x210] ss:$24 sps:$4 sm:$0xff]  }
 0x1d2   :  { %v2728_v15 = vadd.f32 %v2727_v14, %v2675_v45  ;;  %5462 = vmatpush1.bf16.msra.mxu0 %v6932_v12  ;;  %5540 = vmatprep.mubr.bf16.mxu1 %v7863_v7  ;;  %v2780_v17 = vpop.f32.mrf.mxu1  ;;  %v6989_v4 = vld [vmem:[#allocation8 + $0x510] ss:$24 sps:$4 sm:$0xff]   ;;  %v6994_v55 = vld [vmem:[#allocation8 + $0x1e4] ss:$24 sps:$4 sm:$0xff]   ;;  %v6992_v12 = vld [vmem:[#allocation8 + $0x1e0] ss:$24 sps:$4 sm:$0xff]   ;;  %v2677_v14 = vadd.f32 %v7833_v35, %v7831_v31 }
 0x1d3   :  { %5515 = vmatpush1.bf16.msra.mxu1 %v6935_v3  ;;  %5463 = vmatprep.subr.bf16.mxu0 %v6940_v5  ;;  %v6997_v56 = vld [vmem:[#allocation8 + $0x4e4] ss:$24 sps:$4 sm:$0xff]   ;;  %v6995_v3 = vld [vmem:[#allocation8 + $0x4e0] ss:$24 sps:$4 sm:$0xff]   ;;  %v7000_v5 = vld [vmem:[#allocation8 + $0x1b4] ss:$24 sps:$4 sm:$0xff]   ;;  %v2729_v54 = vpop.f32.mrf.mxu0 }
 0x1d4   :  { %v2781_v20 = vadd.f32 %v2780_v17, %v2728_v15  ;;  %5516 = vmatprep.subr.bf16.mxu1 %v6943_v11  ;;  %v7003_v45 = vld [vmem:[#allocation8 + $0x4b4] ss:$24 sps:$4 sm:$0xff]   ;;  %v6998_v11 = vld [vmem:[#allocation8 + $0x1b0] ss:$24 sps:$4 sm:$0xff]   ;;  %v7006_v17 = vld [vmem:[#allocation8 + $0x184] ss:$24 sps:$4 sm:$0xff]  }
 0x1d5   :  { %v7001_v15 = vld [vmem:[#allocation8 + $0x4b0] ss:$24 sps:$4 sm:$0xff]   ;;  %v7063_v35 = vld [vmem:[#allocation8 + $0xa54] ss:$24 sps:$4 sm:$0xff]  }
 0x1d6   :  { %v7869_v19 = vpack.c.bf16 %v2781_v20, %v2777_v10  ;;  %5464 = vmatpush1.bf16.msra.mxu0 %v6938_v18  ;;  %v7009_v18 = vld [vmem:[#allocation8 + $0x484] ss:$24 sps:$4 sm:$0xff]   ;;  %v2782_v10 = vpop.f32.mrf.mxu1  ;;  %v7004_v20 = vld [vmem:[#allocation8 + $0x180] ss:$24 sps:$4 sm:$0xff]  }
 0x1d7   :  { %5517 = vmatpush1.bf16.msra.mxu1 %v6941_v21  ;;  %5465 = vmatprep.subr.bf16.mxu0 %v6946_v27  ;;  %v2673_v21 = vadd.f32 %v7813_v57, %v7831_v31  ;;  %v2730_v27 = vadd.f32 %v2729_v54, %v2677_v14  ;;  %v7015_v57 = vld [vmem:[#allocation8 + $0x724] ss:$24 sps:$4 sm:$0xff]   ;;  %v7061_v31 = vld [vmem:[#allocation8 + $0xa50] ss:$24 sps:$4 sm:$0xff]   ;;  %v7042_v14 = vld [vmem:[#allocation8 + $0x874] ss:$24 sps:$4 sm:$0xff]  }
 0x1d8   :  { %5518 = vmatprep.subr.bf16.mxu1 %v6949_v16  ;;  %v7117_v54 = vld [vmem:[#allocation8 + $0xba4] ss:$24 sps:$4 sm:$0xff]  }
 0x1d9   :  { %v2726_v16 = vadd.f32 %v7859_v63, %v2673_v21  ;;  %v7069_v63 = vld [vmem:[#allocation8 + $0xa24] ss:$24 sps:$4 sm:$0xff]   ;;  %v7040_v21 = vld [vmem:[#allocation8 + $0x870] ss:$24 sps:$4 sm:$0xff]  }
 0x1da   :  { %5466 = vmatpush1.bf16.msra.mxu0 %v6944_v48  ;;  %v7007_v48 = vld [vmem:[#allocation8 + $0x480] ss:$24 sps:$4 sm:$0xff]  }
 0x1db   :  { %5519 = vmatpush1.bf16.msra.mxu1 %v6947_v51  ;;  %5467 = vmatprep.subr.bf16.mxu0 %v6952_v24  ;;  %v7012_v51 = vld [vmem:[#allocation8 + $0x754] ss:$24 sps:$4 sm:$0xff]   ;;  %v2783_v24 = vadd.f32 %v2782_v10, %v2730_v27  ;;  %v7045_v27 = vld [vmem:[#allocation8 + $0x844] ss:$24 sps:$4 sm:$0xff]   ;;  %v7121_v10 = vld [vmem:[#allocation8 + $0xb70] ss:$24 sps:$4 sm:$0xff]  }
 0x1dc   :  { %5520 = vmatprep.subr.bf16.mxu1 %v6955_v28  ;;  %v2779_v28 = vadd.f32 %v7866_v9, %v2726_v16  ;;  %v7018_v9 = vld [vmem:[#allocation8 + $0x6f4] ss:$24 sps:$4 sm:$0xff]   ;;  %v7129_v16 = vld [vmem:[#allocation8 + $0xb44] ss:$24 sps:$4 sm:$0xff]  }
 0x1de   :  { %5468 = vmatpush1.bf16.msra.mxu0 %v6950_v29  ;;  %v7010_v29 = vld [vmem:[#allocation8 + $0x750] ss:$24 sps:$4 sm:$0xff]  }
 0x1df   :  { %5521 = vmatpush1.bf16.msra.mxu1 %v6953_v2  ;;  %5469 = vmatprep.subr.bf16.mxu0 %v6958_v25  ;;  %v7877_v2 = vpack.c.bf16 %v2783_v24, %v2779_v28  ;;  %v7013_v25 = vld [vmem:[#allocation8 + $0x720] ss:$24 sps:$4 sm:$0xff]   ;;  %v7135_v28 = vld [vmem:[#allocation8 + $0xb14] ss:$24 sps:$4 sm:$0xff]  }
 0x1e0   :  { %5522 = vmatprep.subr.bf16.mxu1 %v6961_v40  ;;  %v7067_v40 = vld [vmem:[#allocation8 + $0xa20] ss:$24 sps:$4 sm:$0xff]  }
 0x1e2   :  { %5470 = vmatpush1.bf16.msra.mxu0 %v6956_v0  ;;  %v7075_v0 = vld [vmem:[#allocation8 + $0x9f4] ss:$24 sps:$4 sm:$0xff]  }
 0x1e3   :  { %5523 = vmatpush1.bf16.msra.mxu1 %v6959_v32  ;;  %5471 = vmatprep.subr.bf16.mxu0 %v6964_v34  ;;  %v7016_v32 = vld [vmem:[#allocation8 + $0x6f0] ss:$24 sps:$4 sm:$0xff]   ;;  %v7021_v34 = vld [vmem:[#allocation8 + $0x6c4] ss:$24 sps:$4 sm:$0xff]  }
 0x1e4   :  { %5524 = vmatprep.subr.bf16.mxu1 %v6967_v62  ;;  %v7073_v62 = vld [vmem:[#allocation8 + $0x9f0] ss:$24 sps:$4 sm:$0xff]  }
 0x1e6   :  { %5472 = vmatpush2.bf16.msra.mxu0 %v6962_v22  ;;  %v7081_v22 = vld [vmem:[#allocation8 + $0x9c4] ss:$24 sps:$4 sm:$0xff]  }
 0x1e7   :  { %5525 = vmatpush2.bf16.msra.mxu1 %v6965_v13  ;;  %5473 = vmatprep.subr.bf16.mxu0 %v6970_v33  ;;  %v7019_v13 = vld [vmem:[#allocation8 + $0x6c0] ss:$24 sps:$4 sm:$0xff]   ;;  %v7024_v33 = vld [vmem:[#allocation8 + $0x694] ss:$24 sps:$4 sm:$0xff]  }
 0x1e8   :  { %5526 = vmatprep.subr.bf16.mxu1 %v6973_v39  ;;  %v7079_v39 = vld [vmem:[#allocation8 + $0x9c0] ss:$24 sps:$4 sm:$0xff]  }
 0x1ea   :  { %5474 = vmatpush2.bf16.msra.mxu0 %v6968_v36  ;;  %v7087_v36 = vld [vmem:[#allocation8 + $0x994] ss:$24 sps:$4 sm:$0xff]  }
 0x1eb   :  { %5527 = vmatpush2.bf16.msra.mxu1 %v6971_v41  ;;  %5475 = vmatprep.subr.bf16.mxu0 %v6976_v26  ;;  %v7022_v41 = vld [vmem:[#allocation8 + $0x690] ss:$24 sps:$4 sm:$0xff]   ;;  %v7027_v26 = vld [vmem:[#allocation8 + $0x664] ss:$24 sps:$4 sm:$0xff]  }
 0x1ec   :  { %5528 = vmatprep.subr.bf16.mxu1 %v6979_v23  ;;  %v7085_v23 = vld [vmem:[#allocation8 + $0x990] ss:$24 sps:$4 sm:$0xff]  }
 0x1ee   :  { %5476 = vmatpush2.bf16.msra.mxu0 %v6974_v43  ;;  %v7093_v43 = vld [vmem:[#allocation8 + $0x964] ss:$24 sps:$4 sm:$0xff]  }
 0x1ef   :  { %5529 = vmatpush2.bf16.msra.mxu1 %v6977_v44  ;;  %5477 = vmatprep.subr.bf16.mxu0 %v6982_v46  ;;  %v7025_v44 = vld [vmem:[#allocation8 + $0x660] ss:$24 sps:$4 sm:$0xff]   ;;  %v7030_v46 = vld [vmem:[#allocation8 + $0x634] ss:$24 sps:$4 sm:$0xff]  }
 0x1f0   :  { %5530 = vmatprep.subr.bf16.mxu1 %v6985_v47  ;;  %v7091_v47 = vld [vmem:[#allocation8 + $0x960] ss:$24 sps:$4 sm:$0xff]  }
 0x1f2   :  { %5478 = vmatpush2.bf16.msra.mxu0 %v6980_v6  ;;  %v7099_v6 = vld [vmem:[#allocation8 + $0x934] ss:$24 sps:$4 sm:$0xff]  }
 0x1f3   :  { %5531 = vmatpush2.bf16.msra.mxu1 %v6983_v49  ;;  %5479 = vmatprep.subr.bf16.mxu0 %v6988_v8  ;;  %v7028_v49 = vld [vmem:[#allocation8 + $0x630] ss:$24 sps:$4 sm:$0xff]   ;;  %v7033_v8 = vld [vmem:[#allocation8 + $0x604] ss:$24 sps:$4 sm:$0xff]  }
 0x1f4   :  { %5532 = vmatprep.subr.bf16.mxu1 %v6991_v38  ;;  %v7097_v38 = vld [vmem:[#allocation8 + $0x930] ss:$24 sps:$4 sm:$0xff]  }
 0x1f6   :  { %5480 = vmatpush2.bf16.msra.mxu0 %v6986_v52  ;;  %v7105_v52 = vld [vmem:[#allocation8 + $0x904] ss:$24 sps:$4 sm:$0xff]  }
 0x1f7   :  { %5533 = vmatpush2.bf16.msra.mxu1 %v6989_v4  ;;  %5481 = vmatprep.subr.bf16.mxu0 %v6994_v55  ;;  %v7031_v4 = vld [vmem:[#allocation8 + $0x600] ss:$24 sps:$4 sm:$0xff]   ;;  %v7036_v55 = vld [vmem:[#allocation8 + $0x8d4] ss:$24 sps:$4 sm:$0xff]  }
 0x1f8   :  { %5534 = vmatprep.subr.bf16.mxu1 %v6997_v56  ;;  %v7103_v56 = vld [vmem:[#allocation8 + $0x900] ss:$24 sps:$4 sm:$0xff]  }
 0x1fa   :  { %5482 = vmatpush2.bf16.msra.mxu0 %v6992_v12  ;;  %v7111_v12 = vld [vmem:[#allocation8 + $0xbd4] ss:$24 sps:$4 sm:$0xff]  }
 0x1fb   :  { %5535 = vmatpush2.bf16.msra.mxu1 %v6995_v3  ;;  %5483 = vmatprep.subr.bf16.mxu0 %v7000_v5  ;;  %v7034_v3 = vld [vmem:[#allocation8 + $0x8d0] ss:$24 sps:$4 sm:$0xff]   ;;  %v7039_v5 = vld [vmem:[#allocation8 + $0x8a4] ss:$24 sps:$4 sm:$0xff]  }
 0x1fc   :  { %5536 = vmatprep.subr.bf16.mxu1 %v7003_v45  ;;  %v7109_v45 = vld [vmem:[#allocation8 + $0xbd0] ss:$24 sps:$4 sm:$0xff]  }
 0x1fe   :  { %5484 = vmatpush2.bf16.msra.mxu0 %v6998_v11  ;;  %v7037_v11 = vld [vmem:[#allocation8 + $0x8a0] ss:$24 sps:$4 sm:$0xff]  }
 0x1ff   :  { %5537 = vmatpush2.bf16.msra.mxu1 %v7001_v15  ;;  %5485 = vmatprep.subr.bf16.mxu0 %v7006_v17  ;;  %v7115_v15 = vld [vmem:[#allocation8 + $0xba0] ss:$24 sps:$4 sm:$0xff]  }
 0x200   :  { %5538 = vmatprep.subr.bf16.mxu1 %v7009_v18  ;;  %v7123_v18 = vld [vmem:[#allocation8 + $0xb74] ss:$24 sps:$4 sm:$0xff]  }
 0x202   :  { %5486 = vmatpush2.bf16.msra.mxu0 %v7004_v20 }
 0x203   :  { %5539 = vmatpush2.bf16.msra.mxu1 %v7007_v48  ;;  %5561 = vmatprep.subr.bf16.mxu0 %v7012_v51  ;;  %v7043_v48 = vld [vmem:[#allocation8 + $0x840] ss:$24 sps:$4 sm:$0xff]   ;;  %v7048_v51 = vld [vmem:[#allocation8 + $0x814] ss:$24 sps:$4 sm:$0xff]  }
 0x204   :  { %5614 = vmatprep.subr.bf16.mxu1 %v7063_v35  ;;  %v7127_v35 = vld [vmem:[#allocation8 + $0xb40] ss:$24 sps:$4 sm:$0xff]  }
 0x205   :  { %5488 = vmatmul.mubr.bf16.vlgmr.msra.gmra.mxu0 %v7789_v58  ;;  %v7885_v17 = vpop.f32.mrf.mxu0 }
 0x206   :  { %5541 = vmatmul.mubr.bf16.vlgmr.msra.gmra.mxu1 %v7856_v50  ;;  %5497 = vmatprep.mubr.bf16.mxu0 %v7801_v61 }
 0x207   :  { %5550 = vmatprep.mubr.bf16.mxu1 %v7877_v2  ;;  %5562 = vmatpush1.bf16.msra.mxu0 %v7010_v29  ;;  %v7887_v20 = vpop.f32.mrf.mxu0  ;;  %v7046_v29 = vld [vmem:[#allocation8 + $0x810] ss:$24 sps:$4 sm:$0xff]  }
 0x208   :  { %5563 = vmatprep.subr.bf16.mxu0 %v7015_v57  ;;  %5615 = vmatpush1.bf16.msra.mxu1 %v7061_v31  ;;  %v7051_v57 = vld [vmem:[#allocation8 + $0x7e4] ss:$24 sps:$4 sm:$0xff]   ;;  %v7133_v31 = vld [vmem:[#allocation8 + $0xb10] ss:$24 sps:$4 sm:$0xff]  }
 0x209   :  { %5616 = vmatprep.subr.bf16.mxu1 %v7069_v63  ;;  %v2823_v24 = vpop.f32.mrf.mxu0  ;;  %v2872_v63 = vpop.f32.mrf.mxu1 }
 0x20b   :  { %5564 = vmatpush1.bf16.msra.mxu0 %v7013_v25  ;;  %v2825_v25 = vpop.f32.mrf.mxu0 }
 0x20c   :  { %5565 = vmatprep.subr.bf16.mxu0 %v7018_v9  ;;  %5617 = vmatpush1.bf16.msra.mxu1 %v7067_v40  ;;  %v7141_v9 = vld [vmem:[#allocation8 + $0xae4] ss:$24 sps:$4 sm:$0xff]  }
 0x20d   :  { %5498 = vmatmul.mubr.bf16.gmra.mxu0 %v7798_v59  ;;  %5618 = vmatprep.subr.bf16.mxu1 %v7075_v0  ;;  %v7889_v40 = vpop.f32.mrf.mxu0  ;;  %v7049_v0 = vld [vmem:[#allocation8 + $0x7e0] ss:$24 sps:$4 sm:$0xff]  }
 0x20e   :  { %5551 = vmatmul.mubr.bf16.gmra.mxu1 %v7869_v19 }
 0x20f   :  { %5566 = vmatpush1.bf16.msra.mxu0 %v7016_v32  ;;  %v7054_v32 = vld [vmem:[#allocation8 + $0x7b4] ss:$24 sps:$4 sm:$0xff]  }
 0x210   :  { %5567 = vmatprep.subr.bf16.mxu0 %v7021_v34  ;;  %5619 = vmatpush1.bf16.msra.mxu1 %v7073_v62  ;;  %v7139_v34 = vld [vmem:[#allocation8 + $0xae0] ss:$24 sps:$4 sm:$0xff]   ;;  %v2874_v62 = vpop.f32.mrf.mxu1 }
 0x211   :  { %5620 = vmatprep.subr.bf16.mxu1 %v7081_v22  ;;  %v7147_v22 = vld [vmem:[#allocation8 + $0xab4] ss:$24 sps:$4 sm:$0xff]  }
 0x213   :  { %5568 = vmatpush1.bf16.msra.mxu0 %v7019_v13  ;;  %v2831_v13 = vpop.f32.mrf.mxu0 }
 0x214   :  { %5569 = vmatprep.subr.bf16.mxu0 %v7024_v33  ;;  %5621 = vmatpush1.bf16.msra.mxu1 %v7079_v39  ;;  %v7052_v33 = vld [vmem:[#allocation8 + $0x7b0] ss:$24 sps:$4 sm:$0xff]   ;;  %v7057_v39 = vld [vmem:[#allocation8 + $0x784] ss:$24 sps:$4 sm:$0xff]  }
 0x215   :  { %5622 = vmatprep.subr.bf16.mxu1 %v7087_v36  ;;  %v7145_v36 = vld [vmem:[#allocation8 + $0xab0] ss:$24 sps:$4 sm:$0xff]  }
 0x217   :  { %5570 = vmatpush1.bf16.msra.mxu0 %v7022_v41  ;;  %v2876_v41 = vpop.f32.mrf.mxu1 }
 0x218   :  { %5571 = vmatprep.subr.bf16.mxu0 %v7027_v26  ;;  %5623 = vmatpush1.bf16.msra.mxu1 %v7085_v23  ;;  %v7153_v26 = vld [vmem:[#allocation8 + $0xa84] ss:$24 sps:$4 sm:$0xff]   ;;  %v529_v23 = vsub.s32 5, %v7729_v42 }
 0x219   :  { %5624 = vmatprep.subr.bf16.mxu1 %v7093_v43  ;;  %v525_v43 = vsub.s32 4, %v7729_v42 }
 0x21b   :  { %5572 = vmatpush1.bf16.msra.mxu0 %v7025_v44  ;;  %v2833_v44 = vpop.f32.mrf.mxu0 }
 0x21c   :  { %5573 = vmatprep.subr.bf16.mxu0 %v7030_v46  ;;  %5625 = vmatpush1.bf16.msra.mxu1 %v7091_v47  ;;  %v7055_v46 = vld [vmem:[#allocation8 + $0x780] ss:$24 sps:$4 sm:$0xff]   ;;  %v7060_v47 = vld [vmem:[#allocation8 + $0x15c] ss:$24 sps:$4 sm:$0xff]  }
 0x21d   :  { %5626 = vmatprep.subr.bf16.mxu1 %v7099_v6  ;;  %v7151_v6 = vld [vmem:[#allocation8 + $0xa80] ss:$24 sps:$4 sm:$0xff]  }
 0x21f   :  { %5574 = vmatpush1.bf16.msra.mxu0 %v7028_v49  ;;  %v2878_v49 = vpop.f32.mrf.mxu1 }
 0x220   :  { %5575 = vmatprep.subr.bf16.mxu0 %v7033_v8  ;;  %5627 = vmatpush1.bf16.msra.mxu1 %v7097_v38  ;;  %v7159_v8 = vld [vmem:[#allocation8 + $0x45c] ss:$24 sps:$4 sm:$0xff]  }
 0x221   :  { %5628 = vmatprep.subr.bf16.mxu1 %v7105_v52  ;;  %v7893_v38 = vld [vmem:[#allocation7] sm:$0xff] }
 0x222   :  { %v530_v52 = vrot.slane %v7893_v38, %v529_v23 }
 0x223   :  { %5576 = vmatpush1.bf16.msra.mxu0 %v7031_v4  ;;  %v526_v4 = vrot.slane %v7893_v38, %v525_v43 }
 0x224   :  { %5577 = vmatprep.subr.bf16.mxu0 %v7036_v55  ;;  %5629 = vmatpush1.bf16.msra.mxu1 %v7103_v56  ;;  %v2882_v55 = vpop.f32.mrf.mxu1  ;;  %v2835_v56 = vpop.f32.mrf.mxu0 }
 0x225   :  { %5630 = vmatprep.subr.bf16.mxu1 %v7111_v12  ;;  %v2824_v12 = vadd.f32 %v2823_v24, %v526_v4  ;;  %v2834_v24 = vadd.f32 %v2833_v44, %v526_v4 }
 0x227   :  { %5578 = vmatpush2.bf16.msra.mxu0 %v7034_v3 }
 0x228   :  { %5579 = vmatprep.subr.bf16.mxu0 %v7039_v5  ;;  %5631 = vmatpush2.bf16.msra.mxu1 %v7109_v45  ;;  %v2822_v5 = vadd.f32 %v7887_v20, %v530_v52  ;;  %v2826_v45 = vadd.f32 %v2825_v25, %v530_v52  ;;  %v2836_v20 = vadd.f32 %v2835_v56, %v530_v52  ;;  %v7082_v56 = vld [vmem:[#allocation8 + $0x98] ss:$24 sps:$4 sm:$0xff]  }
 0x229   :  { %5632 = vmatprep.subr.bf16.mxu1 %v7117_v54  ;;  %v2820_v54 = vadd.f32 %v7885_v17, %v526_v4  ;;  %v7058_v17 = vld [vmem:[#allocation8 + $0x158] ss:$24 sps:$4 sm:$0xff]  }
 0x22b   :  { %5580 = vmatpush2.bf16.msra.mxu0 %v7037_v11  ;;  %v2884_v11 = vpop.f32.mrf.mxu1 }
 0x22c   :  { %5581 = vmatprep.subr.bf16.mxu0 %v7042_v14  ;;  %5633 = vmatpush2.bf16.msra.mxu1 %v7115_v15  ;;  %v2877_v15 = vadd.f32 %v2876_v41, %v2824_v12  ;;  %v7090_v12 = vld [vmem:[#allocation8 + $0x6c] ss:$24 sps:$4 sm:$0xff]  }
 0x22d   :  { %5634 = vmatprep.subr.bf16.mxu1 %v7123_v18 }
 0x22f   :  { %5582 = vmatpush2.bf16.msra.mxu0 %v7040_v21  ;;  %v2875_v21 = vadd.f32 %v2874_v62, %v2822_v5  ;;  %v7096_v5 = vld [vmem:[#allocation8 + $0x3c] ss:$24 sps:$4 sm:$0xff]  }
 0x230   :  { %5583 = vmatprep.subr.bf16.mxu0 %v7045_v27  ;;  %5635 = vmatpush2.bf16.msra.mxu1 %v7121_v10  ;;  %v2879_v27 = vadd.f32 %v2878_v49, %v2826_v45  ;;  %v2873_v10 = vadd.f32 %v2872_v63, %v2820_v54  ;;  %v7066_v63 = vld [vmem:[#allocation8 + $0x12c] ss:$24 sps:$4 sm:$0xff]   ;;  %v7070_v49 = vld [vmem:[#allocation8 + $0xf8] ss:$24 sps:$4 sm:$0xff]  }
 0x231   :  { %5636 = vmatprep.subr.bf16.mxu1 %v7129_v16  ;;  %v2886_v16 = vpop.f32.mrf.mxu1  ;;  %v7094_v45 = vld [vmem:[#allocation8 + $0x38] ss:$24 sps:$4 sm:$0xff]   ;;  %v7102_v54 = vld [vmem:[#allocation8 + $0xc] ss:$24 sps:$4 sm:$0xff]  }
 0x232   :  { %v2887_v62 = vadd.f32 %v2886_v16, %v2834_v24  ;;  %v7112_v16 = vld [vmem:[#allocation8 + $0x2a8] ss:$24 sps:$4 sm:$0xff]  }
 0x233   :  { %5584 = vmatpush2.bf16.msra.mxu0 %v7043_v48 }
 0x234   :  { %5585 = vmatprep.subr.bf16.mxu0 %v7048_v51  ;;  %5637 = vmatpush2.bf16.msra.mxu1 %v7127_v35 }
 0x235   :  { %5638 = vmatprep.subr.bf16.mxu1 %v7135_v28 }
 0x237   :  { %5586 = vmatpush2.bf16.msra.mxu0 %v7046_v29 }
 0x238   :  { %5587 = vmatprep.subr.bf16.mxu0 %v7051_v57  ;;  %5639 = vmatpush2.bf16.msra.mxu1 %v7133_v31  ;;  %v2832_v31 = vadd.f32 %v2831_v13, %v530_v52  ;;  %v7064_v13 = vld [vmem:[#allocation8 + $0x128] ss:$24 sps:$4 sm:$0xff]   ;;  %v7078_v52 = vld [vmem:[#allocation8 + $0xcc] ss:$24 sps:$4 sm:$0xff]  }
 0x239   :  { %5640 = vmatprep.subr.bf16.mxu1 %v7141_v9  ;;  %v2830_v9 = vadd.f32 %v7889_v40, %v526_v4  ;;  %v7072_v40 = vld [vmem:[#allocation8 + $0xfc] ss:$24 sps:$4 sm:$0xff]   ;;  %v7076_v4 = vld [vmem:[#allocation8 + $0xc8] ss:$24 sps:$4 sm:$0xff]  }
 0x23b   :  { %5588 = vmatpush2.bf16.msra.mxu0 %v7049_v0  ;;  %v2888_v0 = vpop.f32.mrf.mxu1 }
 0x23c   :  { %5589 = vmatprep.subr.bf16.mxu0 %v7054_v32  ;;  %5641 = vmatpush2.bf16.msra.mxu1 %v7139_v34 }
 0x23d   :  { %5642 = vmatprep.subr.bf16.mxu1 %v7147_v22 }
 0x23f   :  { %5590 = vmatpush2.bf16.msra.mxu0 %v7052_v33  ;;  %v2885_v33 = vadd.f32 %v2884_v11, %v2832_v31 }
 0x240   :  { %5591 = vmatprep.subr.bf16.mxu0 %v7057_v39  ;;  %5643 = vmatpush2.bf16.msra.mxu1 %v7145_v36  ;;  %v2889_v39 = vadd.f32 %v2888_v0, %v2836_v20  ;;  %v2883_v36 = vadd.f32 %v2882_v55, %v2830_v9  ;;  %v7084_v55 = vld [vmem:[#allocation8 + $0x9c] ss:$24 sps:$4 sm:$0xff]   ;;  %v7130_v20 = vld [vmem:[#allocation8 + $0x218] ss:$24 sps:$4 sm:$0xff]   ;;  %v533_v9 = vsub.s32 6, %v7729_v42  ;;  %v537_v0 = vsub.s32 7, %v7729_v42 }
 0x241   :  { %5644 = vmatprep.subr.bf16.mxu1 %v7153_v26 }
 0x243   :  { %5592 = vmatpush2.bf16.msra.mxu0 %v7055_v46 }
 0x244   :  { %5667 = vmatprep.subr.bf16.mxu0 %v7060_v47  ;;  %5645 = vmatpush2.bf16.msra.mxu1 %v7151_v6 }
 0x245   :  { %v2925_v3 = vpop.f32.mrf.mxu0  ;;  %5720 = vmatprep.subr.bf16.mxu1 %v7159_v8 }
 0x246   :  { %v2926_v29 = vadd.f32 %v2925_v3, %v2873_v10  ;;  %v7088_v3 = vld [vmem:[#allocation8 + $0x68] ss:$24 sps:$4 sm:$0xff]   ;;  %v2978_v11 = vpop.f32.mrf.mxu1 }
 0x247   :  { %v2927_v14 = vpop.f32.mrf.mxu0 }
 0x248   :  { %v2928_v35 = vadd.f32 %v2927_v14, %v2875_v21  ;;  %v7100_v14 = vld [vmem:[#allocation8 + $0x8] ss:$24 sps:$4 sm:$0xff]   ;;  %v7106_v21 = vld [vmem:[#allocation8 + $0x2d8] ss:$24 sps:$4 sm:$0xff]  }
 0x249   :  { %v2929_v18 = vpop.f32.mrf.mxu0 }
 0x24a   :  { %v2930_v48 = vadd.f32 %v2929_v18, %v2877_v15  ;;  %v7108_v15 = vld [vmem:[#allocation8 + $0x2dc] ss:$24 sps:$4 sm:$0xff]   ;;  %v2980_v18 = vpop.f32.mrf.mxu1 }
 0x24b   :  { %v2931_v51 = vpop.f32.mrf.mxu0 }
 0x24c   :  { %v2932_v28 = vadd.f32 %v2931_v51, %v2879_v27  ;;  %v7906_v32 = vpack.c.bf16 %v2930_v48, %v2926_v29  ;;  %v7114_v27 = vld [vmem:[#allocation8 + $0x2ac] ss:$24 sps:$4 sm:$0xff]   ;;  %v2982_v10 = vpop.f32.mrf.mxu1  ;;  %v7120_v48 = vld [vmem:[#allocation8 + $0x27c] ss:$24 sps:$4 sm:$0xff]   ;;  %v7124_v29 = vld [vmem:[#allocation8 + $0x248] ss:$24 sps:$4 sm:$0xff]  }
 0x24d   :  { %v2935_v57 = vpop.f32.mrf.mxu0 }
 0x24e   :  { %v7903_v25 = vpack.c.bf16 %v2932_v28, %v2928_v35  ;;  %v2936_v47 = vadd.f32 %v2935_v57, %v2883_v36  ;;  %v2984_v51 = vpop.f32.mrf.mxu1  ;;  %v7118_v35 = vld [vmem:[#allocation8 + $0x278] ss:$24 sps:$4 sm:$0xff]   ;;  %v7126_v28 = vld [vmem:[#allocation8 + $0x24c] ss:$24 sps:$4 sm:$0xff]   ;;  %v7132_v57 = vld [vmem:[#allocation8 + $0x21c] ss:$24 sps:$4 sm:$0xff]  }
 0x24f   :  { %v2937_v34 = vpop.f32.mrf.mxu0 }
 0x250   :  { %5593 = vmatprep.mubr.bf16.mxu0 %v7903_v25  ;;  %v2938_v44 = vadd.f32 %v2937_v34, %v2885_v33  ;;  %v2988_v24 = vpop.f32.mrf.mxu1  ;;  %v538_v33 = vrot.slane %v7893_v38, %v537_v0 }
 0x251   :  { %v2939_v22 = vpop.f32.mrf.mxu0  ;;  %5594 = vmatmul.mubr.bf16.vlgmr.msra.gmra.mxu0 %v7906_v32 }
 0x252   :  { %5668 = vmatpush1.bf16.msra.mxu0 %v7058_v17  ;;  %v2940_v41 = vadd.f32 %v2939_v22, %v2887_v62  ;;  %v2990_v31 = vpop.f32.mrf.mxu1  ;;  %v7138_v17 = vld [vmem:[#allocation8 + $0x1ec] ss:$24 sps:$4 sm:$0xff]   ;;  %v7144_v62 = vld [vmem:[#allocation8 + $0x1bc] ss:$24 sps:$4 sm:$0xff]   ;;  %v534_v22 = vrot.slane %v7893_v38, %v533_v9 }
 0x253   :  { %v2941_v26 = vpop.f32.mrf.mxu0  ;;  %5669 = vmatprep.subr.bf16.mxu0 %v7066_v63  ;;  %v7136_v63 = vld [vmem:[#allocation8 + $0x1e8] ss:$24 sps:$4 sm:$0xff]  }
 0x254   :  { %v2942_v46 = vadd.f32 %v2941_v26, %v2889_v39  ;;  %v7912_v8 = vpack.c.bf16 %v2940_v41, %v2936_v47  ;;  %v2992_v34 = vpop.f32.mrf.mxu1  ;;  %v7142_v41 = vld [vmem:[#allocation8 + $0x1b8] ss:$24 sps:$4 sm:$0xff]  }
 0x256   :  { %v7910_v6 = vpack.c.bf16 %v2942_v46, %v2938_v44  ;;  %5670 = vmatpush1.bf16.msra.mxu0 %v7064_v13  ;;  %v2994_v39 = vpop.f32.mrf.mxu1  ;;  %v2981_v44 = vadd.f32 %v2980_v18, %v538_v33  ;;  %v2983_v46 = vadd.f32 %v2982_v10, %v534_v22  ;;  %v7154_v10 = vld [vmem:[#allocation8 + $0x758] ss:$24 sps:$4 sm:$0xff]  }
 0x257   :  { %5671 = vmatprep.subr.bf16.mxu0 %v7072_v40  ;;  %v7150_v40 = vld [vmem:[#allocation8 + $0x18c] ss:$24 sps:$4 sm:$0xff]   ;;  %v2995_v9 = vadd.f32 %v2994_v39, %v538_v33 }
 0x258   :  { %5603 = vmatprep.mubr.bf16.mxu0 %v7910_v6 }
 0x259   :  { %5604 = vmatmul.mubr.bf16.gmra.mxu0 %v7912_v8 }
 0x25a   :  { %5672 = vmatpush1.bf16.msra.mxu0 %v7070_v49  ;;  %5699 = vmatprep.mubr.bf16.mxu0 %v7851_v37 }
 0x25b   :  { %5673 = vmatprep.subr.bf16.mxu0 %v7078_v52  ;;  %v2979_v52 = vadd.f32 %v2978_v11, %v534_v22  ;;  %v7162_v11 = vld [vmem:[#allocation8 + $0x72c] ss:$24 sps:$4 sm:$0xff]  }
 0x25e   :  { %5674 = vmatpush1.bf16.msra.mxu0 %v7076_v4  ;;  %v2985_v4 = vadd.f32 %v2984_v51, %v538_v33 }
 0x25f   :  { %5675 = vmatprep.subr.bf16.mxu0 %v7084_v55 }
 0x262   :  { %5676 = vmatpush1.bf16.msra.mxu0 %v7082_v56 }
 0x263   :  { %5677 = vmatprep.subr.bf16.mxu0 %v7090_v12 }
 0x266   :  { %5678 = vmatpush1.bf16.msra.mxu0 %v7088_v3  ;;  %v7148_v3 = vld [vmem:[#allocation8 + $0x188] ss:$24 sps:$4 sm:$0xff]  }
 0x267   :  { %5679 = vmatprep.subr.bf16.mxu0 %v7096_v5  ;;  %v7156_v5 = vld [vmem:[#allocation8 + $0x75c] ss:$24 sps:$4 sm:$0xff]  }
 0x26a   :  { %5680 = vmatpush1.bf16.msra.mxu0 %v7094_v45 }
 0x26b   :  { %5681 = vmatprep.subr.bf16.mxu0 %v7102_v54 }
 0x26e   :  { %5682 = vmatpush1.bf16.msra.mxu0 %v7100_v14 }
 0x26f   :  { %5683 = vmatprep.subr.bf16.mxu0 %v7108_v15 }
 0x272   :  { %5684 = vmatpush2.bf16.msra.mxu0 %v7106_v21 }
 0x273   :  { %5685 = vmatprep.subr.bf16.mxu0 %v7114_v27 }
 0x276   :  { %5686 = vmatpush2.bf16.msra.mxu0 %v7112_v16 }
 0x277   :  { %5687 = vmatprep.subr.bf16.mxu0 %v7120_v48  ;;  %v2993_v48 = vadd.f32 %v2992_v34, %v534_v22  ;;  %v7165_v34 = vld [vmem:[#allocation8 + $0x42c] ss:$24 sps:$4 sm:$0xff]  }
 0x27a   :  { %5688 = vmatpush2.bf16.msra.mxu0 %v7118_v35 }
 0x27b   :  { %5689 = vmatprep.subr.bf16.mxu0 %v7126_v28 }
 0x27e   :  { %5690 = vmatpush2.bf16.msra.mxu0 %v7124_v29  ;;  %v2989_v29 = vadd.f32 %v2988_v24, %v534_v22  ;;  %v7168_v24 = vld [vmem:[#allocation8 + $0x6fc] ss:$24 sps:$4 sm:$0xff]  }
 0x27f   :  { %5691 = vmatprep.subr.bf16.mxu0 %v7132_v57  ;;  %v2991_v57 = vadd.f32 %v2990_v31, %v538_v33  ;;  %v7163_v33 = vld [vmem:[#allocation8 + $0x428] ss:$24 sps:$4 sm:$0xff]  }
 0x282   :  { %5692 = vmatpush2.bf16.msra.mxu0 %v7130_v20 }
 0x283   :  { %5693 = vmatprep.subr.bf16.mxu0 %v7138_v17  ;;  %v7157_v17 = vld [vmem:[#allocation8 + $0x458] ss:$24 sps:$4 sm:$0xff]  }
 0x285   :  { %v3031_v13 = vpop.f32.mrf.mxu0 }
 0x286   :  { %v3084_v36 = vpop.f32.mrf.mxu1  ;;  %5694 = vmatpush2.bf16.msra.mxu0 %v7136_v63  ;;  %v3032_v45 = vadd.f32 %v3031_v13, %v2979_v52  ;;  %v7160_v13 = vld [vmem:[#allocation8 + $0x728] ss:$24 sps:$4 sm:$0xff]  }
 0x287   :  { %v3033_v26 = vpop.f32.mrf.mxu0  ;;  %5695 = vmatprep.subr.bf16.mxu0 %v7144_v62 }
 0x288   :  { %v3086_v47 = vpop.f32.mrf.mxu1  ;;  %v3034_v55 = vadd.f32 %v3033_v26, %v2981_v44  ;;  %v3085_v51 = vadd.f32 %v3084_v36, %v3032_v45  ;;  %v7166_v44 = vld [vmem:[#allocation8 + $0x6f8] ss:$24 sps:$4 sm:$0xff]   ;;  %v7175_v45 = vld [vmem:[#allocation8 + $0x3c8] ss:$24 sps:$4 sm:$0xff]  }
 0x289   :  { %v3035_v49 = vpop.f32.mrf.mxu0 }
 0x28a   :  { %v3036_v56 = vadd.f32 %v3035_v49, %v2983_v46  ;;  %v3088_v12 = vpop.f32.mrf.mxu1  ;;  %5696 = vmatpush2.bf16.msra.mxu0 %v7142_v41  ;;  %v3087_v21 = vadd.f32 %v3086_v47, %v3034_v55  ;;  %v7171_v49 = vld [vmem:[#allocation8 + $0x3fc] ss:$24 sps:$4 sm:$0xff]  }
 0x28b   :  { %v3037_v38 = vpop.f32.mrf.mxu0  ;;  %5697 = vmatprep.subr.bf16.mxu0 %v7150_v40 }
 0x28c   :  { %v3038_v54 = vadd.f32 %v3037_v38, %v2985_v4  ;;  %v3090_v14 = vpop.f32.mrf.mxu1  ;;  %v3089_v27 = vadd.f32 %v3088_v12, %v3036_v56  ;;  %v7174_v4 = vld [vmem:[#allocation8 + $0x6cc] ss:$24 sps:$4 sm:$0xff]   ;;  %v7169_v56 = vld [vmem:[#allocation8 + $0x3f8] ss:$24 sps:$4 sm:$0xff]  }
 0x28d   :  { %v3041_v15 = vpop.f32.mrf.mxu0  ;;  %v7177_v38 = vld [vmem:[#allocation8 + $0x3cc] ss:$24 sps:$4 sm:$0xff]  }
 0x28e   :  { %v3091_v18 = vadd.f32 %v3090_v14, %v3038_v54  ;;  %5698 = vmatpush2.bf16.msra.mxu0 %v7148_v3  ;;  %v7924_v0 = vpack.c.bf16 %v3089_v27, %v3085_v51  ;;  %v3042_v31 = vadd.f32 %v3041_v15, %v2989_v29  ;;  %v7172_v3 = vld [vmem:[#allocation8 + $0x6c8] ss:$24 sps:$4 sm:$0xff]   ;;  %v7178_v54 = vld [vmem:[#allocation8 + $0x698] ss:$24 sps:$4 sm:$0xff]   ;;  %v7183_v14 = vld [vmem:[#allocation8 + $0x39c] ss:$24 sps:$4 sm:$0xff]  }
 0x28f   :  { %v3043_v16 = vpop.f32.mrf.mxu0  ;;  %5773 = vmatprep.subr.bf16.mxu0 %v7156_v5  ;;  %v7180_v5 = vld [vmem:[#allocation8 + $0x69c] ss:$24 sps:$4 sm:$0xff]   ;;  %v7186_v15 = vld [vmem:[#allocation8 + $0x66c] ss:$24 sps:$4 sm:$0xff]   ;;  %v7184_v27 = vld [vmem:[#allocation8 + $0x668] ss:$24 sps:$4 sm:$0xff]  }
 0x290   :  { %v7921_v35 = vpack.c.bf16 %v3091_v18, %v3087_v21  ;;  %v3094_v28 = vpop.f32.mrf.mxu1  ;;  %v3044_v36 = vadd.f32 %v3043_v16, %v2991_v57  ;;  %v7181_v21 = vld [vmem:[#allocation8 + $0x398] ss:$24 sps:$4 sm:$0xff]   ;;  %v7189_v18 = vld [vmem:[#allocation8 + $0x36c] ss:$24 sps:$4 sm:$0xff]   ;;  %v7187_v16 = vld [vmem:[#allocation8 + $0x368] ss:$24 sps:$4 sm:$0xff]  }
 0x291   :  { %5700 = vmatmul.mubr.bf16.vlgmr.msra.gmra.mxu0 %v7789_v58  ;;  %v3045_v20 = vpop.f32.mrf.mxu0  ;;  %v3095_v52 = vadd.f32 %v3094_v28, %v3042_v31  ;;  %v7198_v51 = vld [vmem:[#allocation8 + $0x60c] ss:$24 sps:$4 sm:$0xff]   ;;  %v7193_v28 = vld [vmem:[#allocation8 + $0x338] ss:$24 sps:$4 sm:$0xff]   ;;  %v7196_v29 = vld [vmem:[#allocation8 + $0x608] ss:$24 sps:$4 sm:$0xff]  }
 0x292   :  { %v3046_v63 = vadd.f32 %v3045_v20, %v2993_v48  ;;  %v3096_v62 = vpop.f32.mrf.mxu1  ;;  %5709 = vmatprep.mubr.bf16.mxu0 %v7801_v61  ;;  %5774 = vmatpush1.bf16.msra.mxu0 %v7154_v10  ;;  %v7192_v10 = vld [vmem:[#allocation8 + $0x63c] ss:$24 sps:$4 sm:$0xff]   ;;  %v7201_v57 = vld [vmem:[#allocation8 + $0x30c] ss:$24 sps:$4 sm:$0xff]   ;;  %v7214_v31 = vld [vmem:[#allocation8 + $0x878] ss:$24 sps:$4 sm:$0xff]  }
 0x293   :  { %5646 = vmatprep.mubr.bf16.mxu1 %v7921_v35  ;;  %v3047_v41 = vpop.f32.mrf.mxu0  ;;  %5775 = vmatprep.subr.bf16.mxu0 %v7162_v11  ;;  %v3097_v46 = vadd.f32 %v3096_v62, %v3044_v36  ;;  %v7190_v11 = vld [vmem:[#allocation8 + $0x638] ss:$24 sps:$4 sm:$0xff]   ;;  %v7195_v48 = vld [vmem:[#allocation8 + $0x33c] ss:$24 sps:$4 sm:$0xff]   ;;  %v7210_v62 = vld [vmem:[#allocation8 + $0x8ac] ss:$24 sps:$4 sm:$0xff]  }
 0x294   :  { %v3048_v22 = vadd.f32 %v3047_v41, %v2995_v9  ;;  %v3098_v26 = vpop.f32.mrf.mxu1  ;;  %5647 = vmatmul.mubr.bf16.vlgmr.msra.gmra.mxu1 %v7924_v0  ;;  %v7204_v20 = vld [vmem:[#allocation8 + $0x8dc] ss:$24 sps:$4 sm:$0xff]   ;;  %v7202_v9 = vld [vmem:[#allocation8 + $0x8d8] ss:$24 sps:$4 sm:$0xff]   ;;  %v7213_v36 = vld [vmem:[#allocation8 + $0x5ac] ss:$24 sps:$4 sm:$0xff]  }
 0x295   :  { %5721 = vmatpush1.bf16.msra.mxu1 %v7157_v17  ;;  %v3099_v39 = vadd.f32 %v3098_v26, %v3046_v63  ;;  %v7199_v17 = vld [vmem:[#allocation8 + $0x308] ss:$24 sps:$4 sm:$0xff]   ;;  %v7207_v63 = vld [vmem:[#allocation8 + $0x5dc] ss:$24 sps:$4 sm:$0xff]   ;;  %v7222_v26 = vld [vmem:[#allocation8 + $0x84c] ss:$24 sps:$4 sm:$0xff]  }
 0x296   :  { %v3100_v40 = vpop.f32.mrf.mxu1  ;;  %5776 = vmatpush1.bf16.msra.mxu0 %v7160_v13  ;;  %5722 = vmatprep.subr.bf16.mxu1 %v7165_v34  ;;  %v7205_v13 = vld [vmem:[#allocation8 + $0x5d8] ss:$24 sps:$4 sm:$0xff]   ;;  %v7208_v34 = vld [vmem:[#allocation8 + $0x8a8] ss:$24 sps:$4 sm:$0xff]   ;;  %v7216_v41 = vld [vmem:[#allocation8 + $0x87c] ss:$24 sps:$4 sm:$0xff]  }
 0x297   :  { %v3101_v47 = vadd.f32 %v3100_v40, %v3048_v22  ;;  %5777 = vmatprep.subr.bf16.mxu0 %v7168_v24  ;;  %v7932_v12 = vpack.c.bf16 %v3099_v39, %v3095_v52  ;;  %v7211_v24 = vld [vmem:[#allocation8 + $0x5a8] ss:$24 sps:$4 sm:$0xff]   ;;  %v7219_v22 = vld [vmem:[#allocation8 + $0x57c] ss:$24 sps:$4 sm:$0xff]   ;;  %v7225_v40 = vld [vmem:[#allocation8 + $0x54c] ss:$24 sps:$4 sm:$0xff]  }
 0x298   :  { %v7220_v39 = vld [vmem:[#allocation8 + $0x848] ss:$24 sps:$4 sm:$0xff]   ;;  %v7234_v52 = vld [vmem:[#allocation8 + $0x7ec] ss:$24 sps:$4 sm:$0xff]  }
 0x299   :  { %v7929_v55 = vpack.c.bf16 %v3101_v47, %v3097_v46  ;;  %5723 = vmatpush1.bf16.msra.mxu1 %v7163_v33  ;;  %5710 = vmatmul.mubr.bf16.gmra.mxu0 %v7798_v59  ;;  %v7217_v33 = vld [vmem:[#allocation8 + $0x578] ss:$24 sps:$4 sm:$0xff]   ;;  %v7223_v46 = vld [vmem:[#allocation8 + $0x548] ss:$24 sps:$4 sm:$0xff]  }
 0x29a   :  { %5778 = vmatpush1.bf16.msra.mxu0 %v7166_v44  ;;  %5805 = vmatprep.mubr.bf16.mxu0 %v7903_v25  ;;  %v7228_v44 = vld [vmem:[#allocation8 + $0x81c] ss:$24 sps:$4 sm:$0xff]   ;;  %v7226_v47 = vld [vmem:[#allocation8 + $0x818] ss:$24 sps:$4 sm:$0xff]  }
 0x29b   :  { %5656 = vmatprep.mubr.bf16.mxu1 %v7929_v55  ;;  %5724 = vmatprep.subr.bf16.mxu1 %v7171_v49  ;;  %v7231_v49 = vld [vmem:[#allocation8 + $0x51c] ss:$24 sps:$4 sm:$0xff]  }
 0x29c   :  { %5657 = vmatmul.mubr.bf16.gmra.mxu1 %v7932_v12  ;;  %5779 = vmatprep.subr.bf16.mxu0 %v7174_v4  ;;  %v7229_v4 = vld [vmem:[#allocation8 + $0x518] ss:$24 sps:$4 sm:$0xff]  }
 0x29d   :  { %5725 = vmatpush1.bf16.msra.mxu1 %v7169_v56  ;;  %5752 = vmatprep.mubr.bf16.mxu1 %v7863_v7  ;;  %v7232_v56 = vld [vmem:[#allocation8 + $0x7e8] ss:$24 sps:$4 sm:$0xff]  }
 0x29e   :  { %5780 = vmatpush1.bf16.msra.mxu0 %v7172_v3  ;;  %5726 = vmatprep.subr.bf16.mxu1 %v7177_v38  ;;  %v7237_v3 = vld [vmem:[#allocation8 + $0x4ec] ss:$24 sps:$4 sm:$0xff]   ;;  %v7240_v38 = vld [vmem:[#allocation8 + $0x7bc] ss:$24 sps:$4 sm:$0xff]  }
 0x29f   :  { %5781 = vmatprep.subr.bf16.mxu0 %v7180_v5  ;;  %v7235_v5 = vld [vmem:[#allocation8 + $0x4e8] ss:$24 sps:$4 sm:$0xff]  }
 0x2a1   :  { %5727 = vmatpush1.bf16.msra.mxu1 %v7175_v45  ;;  %v7238_v45 = vld [vmem:[#allocation8 + $0x7b8] ss:$24 sps:$4 sm:$0xff]  }
 0x2a2   :  { %5782 = vmatpush1.bf16.msra.mxu0 %v7178_v54  ;;  %5728 = vmatprep.subr.bf16.mxu1 %v7183_v14  ;;  %v7243_v54 = vld [vmem:[#allocation8 + $0x4bc] ss:$24 sps:$4 sm:$0xff]   ;;  %v7246_v14 = vld [vmem:[#allocation8 + $0x78c] ss:$24 sps:$4 sm:$0xff]  }
 0x2a3   :  { %5783 = vmatprep.subr.bf16.mxu0 %v7186_v15  ;;  %v7241_v15 = vld [vmem:[#allocation8 + $0x4b8] ss:$24 sps:$4 sm:$0xff]  }
 0x2a5   :  { %5729 = vmatpush1.bf16.msra.mxu1 %v7181_v21  ;;  %v7244_v21 = vld [vmem:[#allocation8 + $0x788] ss:$24 sps:$4 sm:$0xff]  }
 0x2a6   :  { %5784 = vmatpush1.bf16.msra.mxu0 %v7184_v27  ;;  %5730 = vmatprep.subr.bf16.mxu1 %v7189_v18  ;;  %v7249_v27 = vld [vmem:[#allocation8 + $0x48c] ss:$24 sps:$4 sm:$0xff]  }
 0x2a7   :  { %5785 = vmatprep.subr.bf16.mxu0 %v7192_v10  ;;  %v7252_v18 = vld [vmem:[#allocation8 + $0x164] ss:$24 sps:$4 sm:$0xff]   ;;  %v7247_v10 = vld [vmem:[#allocation8 + $0x488] ss:$24 sps:$4 sm:$0xff]  }
 0x2a9   :  { %5731 = vmatpush1.bf16.msra.mxu1 %v7187_v16  ;;  %v7250_v16 = vld [vmem:[#allocation8 + $0x160] ss:$24 sps:$4 sm:$0xff]  }
 0x2aa   :  { %5786 = vmatpush1.bf16.msra.mxu0 %v7190_v11  ;;  %5732 = vmatprep.subr.bf16.mxu1 %v7195_v48  ;;  %v7255_v11 = vld [vmem:[#allocation8 + $0xa5c] ss:$24 sps:$4 sm:$0xff]  }
 0x2ab   :  { %5787 = vmatprep.subr.bf16.mxu0 %v7198_v51  ;;  %v7258_v48 = vld [vmem:[#allocation8 + $0x134] ss:$24 sps:$4 sm:$0xff]   ;;  %v7253_v51 = vld [vmem:[#allocation8 + $0xa58] ss:$24 sps:$4 sm:$0xff]  }
 0x2ad   :  { %5733 = vmatpush1.bf16.msra.mxu1 %v7193_v28  ;;  %v7256_v28 = vld [vmem:[#allocation8 + $0x130] ss:$24 sps:$4 sm:$0xff]  }
 0x2ae   :  { %5788 = vmatpush1.bf16.msra.mxu0 %v7196_v29  ;;  %5734 = vmatprep.subr.bf16.mxu1 %v7201_v57  ;;  %v7261_v29 = vld [vmem:[#allocation8 + $0xa2c] ss:$24 sps:$4 sm:$0xff]  }
 0x2af   :  { %5789 = vmatprep.subr.bf16.mxu0 %v7204_v20  ;;  %v7264_v57 = vld [vmem:[#allocation8 + $0x104] ss:$24 sps:$4 sm:$0xff]   ;;  %v7259_v20 = vld [vmem:[#allocation8 + $0xa28] ss:$24 sps:$4 sm:$0xff]  }
 0x2b1   :  { %5735 = vmatpush1.bf16.msra.mxu1 %v7199_v17  ;;  %v7262_v17 = vld [vmem:[#allocation8 + $0x100] ss:$24 sps:$4 sm:$0xff]  }
 0x2b2   :  { %5790 = vmatpush2.bf16.msra.mxu0 %v7202_v9  ;;  %5736 = vmatprep.subr.bf16.mxu1 %v7207_v63  ;;  %v7267_v9 = vld [vmem:[#allocation8 + $0x9fc] ss:$24 sps:$4 sm:$0xff]  }
 0x2b3   :  { %5791 = vmatprep.subr.bf16.mxu0 %v7210_v62  ;;  %v7270_v63 = vld [vmem:[#allocation8 + $0xd4] ss:$24 sps:$4 sm:$0xff]   ;;  %v7265_v62 = vld [vmem:[#allocation8 + $0x9f8] ss:$24 sps:$4 sm:$0xff]  }
 0x2b5   :  { %5737 = vmatpush2.bf16.msra.mxu1 %v7205_v13  ;;  %v7268_v13 = vld [vmem:[#allocation8 + $0xd0] ss:$24 sps:$4 sm:$0xff]  }
 0x2b6   :  { %5792 = vmatpush2.bf16.msra.mxu0 %v7208_v34  ;;  %5738 = vmatprep.subr.bf16.mxu1 %v7213_v36  ;;  %v7273_v34 = vld [vmem:[#allocation8 + $0x9cc] ss:$24 sps:$4 sm:$0xff]  }
 0x2b7   :  { %5793 = vmatprep.subr.bf16.mxu0 %v7216_v41  ;;  %v7276_v36 = vld [vmem:[#allocation8 + $0xa4] ss:$24 sps:$4 sm:$0xff]   ;;  %v7271_v41 = vld [vmem:[#allocation8 + $0x9c8] ss:$24 sps:$4 sm:$0xff]  }
 0x2b9   :  { %5739 = vmatpush2.bf16.msra.mxu1 %v7211_v24  ;;  %v7274_v24 = vld [vmem:[#allocation8 + $0xa0] ss:$24 sps:$4 sm:$0xff]  }
 0x2ba   :  { %5794 = vmatpush2.bf16.msra.mxu0 %v7214_v31  ;;  %5740 = vmatprep.subr.bf16.mxu1 %v7219_v22  ;;  %v7279_v31 = vld [vmem:[#allocation8 + $0x99c] ss:$24 sps:$4 sm:$0xff]  }
 0x2bb   :  { %5795 = vmatprep.subr.bf16.mxu0 %v7222_v26  ;;  %v7282_v22 = vld [vmem:[#allocation8 + $0x74] ss:$24 sps:$4 sm:$0xff]   ;;  %v7277_v26 = vld [vmem:[#allocation8 + $0x998] ss:$24 sps:$4 sm:$0xff]  }
 0x2bd   :  { %5741 = vmatpush2.bf16.msra.mxu1 %v7217_v33  ;;  %v7285_v33 = vld [vmem:[#allocation8 + $0x96c] ss:$24 sps:$4 sm:$0xff]  }
 0x2be   :  { %5796 = vmatpush2.bf16.msra.mxu0 %v7220_v39  ;;  %5742 = vmatprep.subr.bf16.mxu1 %v7225_v40  ;;  %v7288_v39 = vld [vmem:[#allocation8 + $0x44] ss:$24 sps:$4 sm:$0xff]   ;;  %v7283_v40 = vld [vmem:[#allocation8 + $0x968] ss:$24 sps:$4 sm:$0xff]  }
 0x2bf   :  { %5797 = vmatprep.subr.bf16.mxu0 %v7228_v44  ;;  %v7286_v44 = vld [vmem:[#allocation8 + $0x40] ss:$24 sps:$4 sm:$0xff]  }
 0x2c1   :  { %5743 = vmatpush2.bf16.msra.mxu1 %v7223_v46  ;;  %v7291_v46 = vld [vmem:[#allocation8 + $0x93c] ss:$24 sps:$4 sm:$0xff]  }
 0x2c2   :  { %5798 = vmatpush2.bf16.msra.mxu0 %v7226_v47  ;;  %5744 = vmatprep.subr.bf16.mxu1 %v7231_v49  ;;  %v7294_v47 = vld [vmem:[#allocation8 + $0x14] ss:$24 sps:$4 sm:$0xff]   ;;  %v7289_v49 = vld [vmem:[#allocation8 + $0x938] ss:$24 sps:$4 sm:$0xff]  }
 0x2c3   :  { %5799 = vmatprep.subr.bf16.mxu0 %v7234_v52  ;;  %v7292_v52 = vld [vmem:[#allocation8 + $0x10] ss:$24 sps:$4 sm:$0xff]  }
 0x2c5   :  { %5745 = vmatpush2.bf16.msra.mxu1 %v7229_v4  ;;  %v7297_v4 = vld [vmem:[#allocation8 + $0x90c] ss:$24 sps:$4 sm:$0xff]  }
 0x2c6   :  { %5800 = vmatpush2.bf16.msra.mxu0 %v7232_v56  ;;  %5746 = vmatprep.subr.bf16.mxu1 %v7237_v3  ;;  %v7300_v56 = vld [vmem:[#allocation8 + $0x2e4] ss:$24 sps:$4 sm:$0xff]   ;;  %v7295_v3 = vld [vmem:[#allocation8 + $0x908] ss:$24 sps:$4 sm:$0xff]  }
 0x2c7   :  { %5801 = vmatprep.subr.bf16.mxu0 %v7240_v38  ;;  %v7298_v38 = vld [vmem:[#allocation8 + $0x2e0] ss:$24 sps:$4 sm:$0xff]  }
 0x2c9   :  { %5747 = vmatpush2.bf16.msra.mxu1 %v7235_v5  ;;  %v7303_v5 = vld [vmem:[#allocation8 + $0xbdc] ss:$24 sps:$4 sm:$0xff]  }
 0x2ca   :  { %5802 = vmatpush2.bf16.msra.mxu0 %v7238_v45  ;;  %5748 = vmatprep.subr.bf16.mxu1 %v7243_v54  ;;  %v7306_v45 = vld [vmem:[#allocation8 + $0x2b4] ss:$24 sps:$4 sm:$0xff]   ;;  %v7301_v54 = vld [vmem:[#allocation8 + $0xbd8] ss:$24 sps:$4 sm:$0xff]  }
 0x2cb   :  { %5803 = vmatprep.subr.bf16.mxu0 %v7246_v14  ;;  %v7304_v14 = vld [vmem:[#allocation8 + $0x2b0] ss:$24 sps:$4 sm:$0xff]  }
 0x2cd   :  { %5749 = vmatpush2.bf16.msra.mxu1 %v7241_v15  ;;  %v7309_v15 = vld [vmem:[#allocation8 + $0xbac] ss:$24 sps:$4 sm:$0xff]  }
 0x2ce   :  { %5804 = vmatpush2.bf16.msra.mxu0 %v7244_v21  ;;  %5750 = vmatprep.subr.bf16.mxu1 %v7249_v27  ;;  %v7312_v21 = vld [vmem:[#allocation8 + $0x284] ss:$24 sps:$4 sm:$0xff]   ;;  %v7307_v27 = vld [vmem:[#allocation8 + $0xba8] ss:$24 sps:$4 sm:$0xff]  }
 0x2cf   :  { %5879 = vmatprep.subr.bf16.mxu0 %v7252_v18  ;;  %v7310_v18 = vld [vmem:[#allocation8 + $0x280] ss:$24 sps:$4 sm:$0xff]  }
 0x2d1   :  { %5751 = vmatpush2.bf16.msra.mxu1 %v7247_v10  ;;  %5806 = vmatmul.mubr.bf16.vlgmr.msra.gmra.mxu0 %v7906_v32  ;;  %v7315_v10 = vld [vmem:[#allocation8 + $0xb7c] ss:$24 sps:$4 sm:$0xff]  }
 0x2d2   :  { %5815 = vmatprep.mubr.bf16.mxu0 %v7910_v6  ;;  %5880 = vmatpush1.bf16.msra.mxu0 %v7250_v16  ;;  %v7318_v16 = vld [vmem:[#allocation8 + $0x254] ss:$24 sps:$4 sm:$0xff]  }
 0x2d3   :  { %5826 = vmatprep.subr.bf16.mxu1 %v7255_v11  ;;  %5881 = vmatprep.subr.bf16.mxu0 %v7258_v48  ;;  %v7313_v11 = vld [vmem:[#allocation8 + $0xb78] ss:$24 sps:$4 sm:$0xff]  }
 0x2d4   :  { %5753 = vmatmul.mubr.bf16.vlgmr.msra.gmra.mxu1 %v7856_v50  ;;  %v7316_v48 = vld [vmem:[#allocation8 + $0x250] ss:$24 sps:$4 sm:$0xff]  }
 0x2d5   :  { %5762 = vmatprep.mubr.bf16.mxu1 %v7877_v2  ;;  %5827 = vmatpush1.bf16.msra.mxu1 %v7253_v51  ;;  %v7321_v51 = vld [vmem:[#allocation8 + $0xb4c] ss:$24 sps:$4 sm:$0xff]  }
 0x2d6   :  { %5882 = vmatpush1.bf16.msra.mxu0 %v7256_v28  ;;  %5828 = vmatprep.subr.bf16.mxu1 %v7261_v29  ;;  %v7324_v28 = vld [vmem:[#allocation8 + $0x224] ss:$24 sps:$4 sm:$0xff]   ;;  %v7319_v29 = vld [vmem:[#allocation8 + $0xb48] ss:$24 sps:$4 sm:$0xff]  }
 0x2d7   :  { %5883 = vmatprep.subr.bf16.mxu0 %v7264_v57  ;;  %v7322_v57 = vld [vmem:[#allocation8 + $0x220] ss:$24 sps:$4 sm:$0xff]  }
 0x2d9   :  { %5829 = vmatpush1.bf16.msra.mxu1 %v7259_v20  ;;  %5816 = vmatmul.mubr.bf16.gmra.mxu0 %v7912_v8  ;;  %v7327_v20 = vld [vmem:[#allocation8 + $0xb1c] ss:$24 sps:$4 sm:$0xff]  }
 0x2da   :  { %5884 = vmatpush1.bf16.msra.mxu0 %v7262_v17  ;;  %5911 = vmatprep.mubr.bf16.mxu0 %v7851_v37  ;;  %v7280_v37 = vld [vmem:[#allocation8 + $0x70] ss:$24 sps:$4 sm:$0xff]   ;;  %v7330_v17 = vld [vmem:[#allocation8 + $0x1f4] ss:$24 sps:$4 sm:$0xff]  }
 0x2db   :  { %5830 = vmatprep.subr.bf16.mxu1 %v7267_v9  ;;  %5885 = vmatprep.subr.bf16.mxu0 %v7270_v63  ;;  %v7325_v9 = vld [vmem:[#allocation8 + $0xb18] ss:$24 sps:$4 sm:$0xff]  }
 0x2dc   :  { %5763 = vmatmul.mubr.bf16.gmra.mxu1 %v7869_v19  ;;  %v7328_v63 = vld [vmem:[#allocation8 + $0x1f0] ss:$24 sps:$4 sm:$0xff]  }
 0x2dd   :  { %5831 = vmatpush1.bf16.msra.mxu1 %v7265_v62  ;;  %5858 = vmatprep.mubr.bf16.mxu1 %v7921_v35  ;;  %v7333_v62 = vld [vmem:[#allocation8 + $0xaec] ss:$24 sps:$4 sm:$0xff]  }
 0x2de   :  { %5886 = vmatpush1.bf16.msra.mxu0 %v7268_v13  ;;  %5832 = vmatprep.subr.bf16.mxu1 %v7273_v34  ;;  %v7336_v13 = vld [vmem:[#allocation8 + $0x1c4] ss:$24 sps:$4 sm:$0xff]   ;;  %v7331_v34 = vld [vmem:[#allocation8 + $0xae8] ss:$24 sps:$4 sm:$0xff]  }
 0x2df   :  { %5887 = vmatprep.subr.bf16.mxu0 %v7276_v36  ;;  %v7334_v36 = vld [vmem:[#allocation8 + $0x1c0] ss:$24 sps:$4 sm:$0xff]  }
 0x2e1   :  { %5833 = vmatpush1.bf16.msra.mxu1 %v7271_v41  ;;  %v7339_v41 = vld [vmem:[#allocation8 + $0xabc] ss:$24 sps:$4 sm:$0xff]  }
 0x2e2   :  { %5888 = vmatpush1.bf16.msra.mxu0 %v7274_v24  ;;  %5834 = vmatprep.subr.bf16.mxu1 %v7279_v31  ;;  %v7342_v24 = vld [vmem:[#allocation8 + $0x194] ss:$24 sps:$4 sm:$0xff]   ;;  %v7337_v31 = vld [vmem:[#allocation8 + $0xab8] ss:$24 sps:$4 sm:$0xff]  }
 0x2e3   :  { %5889 = vmatprep.subr.bf16.mxu0 %v7282_v22  ;;  %v7340_v22 = vld [vmem:[#allocation8 + $0x190] ss:$24 sps:$4 sm:$0xff]  }
 0x2e5   :  { %5835 = vmatpush1.bf16.msra.mxu1 %v7277_v26  ;;  %v7345_v26 = vld [vmem:[#allocation8 + $0xa8c] ss:$24 sps:$4 sm:$0xff]  }
 0x2e6   :  { %5890 = vmatpush1.bf16.msra.mxu0 %v7280_v37  ;;  %5836 = vmatprep.subr.bf16.mxu1 %v7285_v33  ;;  %v7348_v37 = vld [vmem:[#allocation8 + $0x764] ss:$24 sps:$4 sm:$0xff]   ;;  %v7343_v33 = vld [vmem:[#allocation8 + $0xa88] ss:$24 sps:$4 sm:$0xff]  }
 0x2e7   :  { %5891 = vmatprep.subr.bf16.mxu0 %v7288_v39  ;;  %v7346_v39 = vld [vmem:[#allocation8 + $0x760] ss:$24 sps:$4 sm:$0xff]  }
 0x2e9   :  { %5837 = vmatpush1.bf16.msra.mxu1 %v7283_v40  ;;  %v7351_v40 = vld [vmem:[#allocation8 + $0x464] ss:$24 sps:$4 sm:$0xff]  }
 0x2ea   :  { %5892 = vmatpush1.bf16.msra.mxu0 %v7286_v44  ;;  %5838 = vmatprep.subr.bf16.mxu1 %v7291_v46  ;;  %v7354_v44 = vld [vmem:[#allocation8 + $0x734] ss:$24 sps:$4 sm:$0xff]   ;;  %v7349_v46 = vld [vmem:[#allocation8 + $0x460] ss:$24 sps:$4 sm:$0xff]  }
 0x2eb   :  { %5893 = vmatprep.subr.bf16.mxu0 %v7294_v47  ;;  %v7352_v47 = vld [vmem:[#allocation8 + $0x730] ss:$24 sps:$4 sm:$0xff]  }
 0x2ed   :  { %5839 = vmatpush1.bf16.msra.mxu1 %v7289_v49  ;;  %v7357_v49 = vld [vmem:[#allocation8 + $0x434] ss:$24 sps:$4 sm:$0xff]  }
 0x2ee   :  { %5894 = vmatpush1.bf16.msra.mxu0 %v7292_v52  ;;  %5840 = vmatprep.subr.bf16.mxu1 %v7297_v4  ;;  %v7360_v52 = vld [vmem:[#allocation8 + $0x704] ss:$24 sps:$4 sm:$0xff]   ;;  %v7355_v4 = vld [vmem:[#allocation8 + $0x430] ss:$24 sps:$4 sm:$0xff]  }
 0x2ef   :  { %5895 = vmatprep.subr.bf16.mxu0 %v7300_v56  ;;  %v7358_v56 = vld [vmem:[#allocation8 + $0x700] ss:$24 sps:$4 sm:$0xff]  }
 0x2f1   :  { %5841 = vmatpush1.bf16.msra.mxu1 %v7295_v3  ;;  %v7366_v3 = vld [vmem:[#allocation8 + $0x6d4] ss:$24 sps:$4 sm:$0xff]  }
 0x2f2   :  { %5896 = vmatpush2.bf16.msra.mxu0 %v7298_v38  ;;  %5842 = vmatprep.subr.bf16.mxu1 %v7303_v5  ;;  %v7364_v38 = vld [vmem:[#allocation8 + $0x6d0] ss:$24 sps:$4 sm:$0xff]   ;;  %v7369_v5 = vld [vmem:[#allocation8 + $0x3d4] ss:$24 sps:$4 sm:$0xff]  }
 0x2f3   :  { %5897 = vmatprep.subr.bf16.mxu0 %v7306_v45  ;;  %v7372_v45 = vld [vmem:[#allocation8 + $0x6a4] ss:$24 sps:$4 sm:$0xff]  }
 0x2f5   :  { %5843 = vmatpush2.bf16.msra.mxu1 %v7301_v54  ;;  %v7367_v54 = vld [vmem:[#allocation8 + $0x3d0] ss:$24 sps:$4 sm:$0xff]  }
 0x2f6   :  { %5898 = vmatpush2.bf16.msra.mxu0 %v7304_v14  ;;  %5844 = vmatprep.subr.bf16.mxu1 %v7309_v15  ;;  %v7370_v14 = vld [vmem:[#allocation8 + $0x6a0] ss:$24 sps:$4 sm:$0xff]   ;;  %v7375_v15 = vld [vmem:[#allocation8 + $0x3a4] ss:$24 sps:$4 sm:$0xff]  }
 0x2f7   :  { %5899 = vmatprep.subr.bf16.mxu0 %v7312_v21  ;;  %v7373_v21 = vld [vmem:[#allocation8 + $0x3a0] ss:$24 sps:$4 sm:$0xff]  }
 0x2f9   :  { %5845 = vmatpush2.bf16.msra.mxu1 %v7307_v27  ;;  %v7381_v27 = vld [vmem:[#allocation8 + $0x374] ss:$24 sps:$4 sm:$0xff]  }
 0x2fa   :  { %5900 = vmatpush2.bf16.msra.mxu0 %v7310_v18  ;;  %5846 = vmatprep.subr.bf16.mxu1 %v7315_v10  ;;  %v7384_v18 = vld [vmem:[#allocation8 + $0x644] ss:$24 sps:$4 sm:$0xff]   ;;  %v7954_v10 = vpop.f32.mrf.mxu0 }
 0x2fb   :  { %5901 = vmatprep.subr.bf16.mxu0 %v7318_v16  ;;  %v7379_v16 = vld [vmem:[#allocation8 + $0x370] ss:$24 sps:$4 sm:$0xff]  }
 0x2fd   :  { %5847 = vmatpush2.bf16.msra.mxu1 %v7313_v11  ;;  %v7387_v11 = vld [vmem:[#allocation8 + $0x344] ss:$24 sps:$4 sm:$0xff]  }
 0x2fe   :  { %5902 = vmatpush2.bf16.msra.mxu0 %v7316_v48  ;;  %5848 = vmatprep.subr.bf16.mxu1 %v7321_v51  ;;  %v7390_v48 = vld [vmem:[#allocation8 + $0x614] ss:$24 sps:$4 sm:$0xff]   ;;  %v7956_v51 = vpop.f32.mrf.mxu0 }
 0x2ff   :  { %5903 = vmatprep.subr.bf16.mxu0 %v7324_v28  ;;  %v7385_v28 = vld [vmem:[#allocation8 + $0x340] ss:$24 sps:$4 sm:$0xff]  }
 0x301   :  { %5849 = vmatpush2.bf16.msra.mxu1 %v7319_v29  ;;  %v7388_v29 = vld [vmem:[#allocation8 + $0x610] ss:$24 sps:$4 sm:$0xff]  }
 0x302   :  { %5904 = vmatpush2.bf16.msra.mxu0 %v7322_v57  ;;  %5850 = vmatprep.subr.bf16.mxu1 %v7327_v20  ;;  %v7393_v57 = vld [vmem:[#allocation8 + $0x314] ss:$24 sps:$4 sm:$0xff]   ;;  %v7396_v20 = vld [vmem:[#allocation8 + $0x8e4] ss:$24 sps:$4 sm:$0xff]  }
 0x303   :  { %5905 = vmatprep.subr.bf16.mxu0 %v7330_v17  ;;  %v7958_v17 = vpop.f32.mrf.mxu0 }
 0x305   :  { %5851 = vmatpush2.bf16.msra.mxu1 %v7325_v9  ;;  %v7391_v9 = vld [vmem:[#allocation8 + $0x310] ss:$24 sps:$4 sm:$0xff]  }
 0x306   :  { %5906 = vmatpush2.bf16.msra.mxu0 %v7328_v63  ;;  %5852 = vmatprep.subr.bf16.mxu1 %v7333_v62  ;;  %v7394_v63 = vld [vmem:[#allocation8 + $0x8e0] ss:$24 sps:$4 sm:$0xff]   ;;  %v7399_v62 = vld [vmem:[#allocation8 + $0x5e4] ss:$24 sps:$4 sm:$0xff]  }
 0x307   :  { %5907 = vmatprep.subr.bf16.mxu0 %v7336_v13  ;;  %v7402_v13 = vld [vmem:[#allocation8 + $0x8b4] ss:$24 sps:$4 sm:$0xff]  }
 0x309   :  { %5853 = vmatpush2.bf16.msra.mxu1 %v7331_v34  ;;  %v7960_v34 = vpop.f32.mrf.mxu0 }
 0x30a   :  { %5908 = vmatpush2.bf16.msra.mxu0 %v7334_v36  ;;  %5854 = vmatprep.subr.bf16.mxu1 %v7339_v41  ;;  %v7397_v36 = vld [vmem:[#allocation8 + $0x5e0] ss:$24 sps:$4 sm:$0xff]   ;;  %v7400_v41 = vld [vmem:[#allocation8 + $0x8b0] ss:$24 sps:$4 sm:$0xff]  }
 0x30b   :  { %5909 = vmatprep.subr.bf16.mxu0 %v7342_v24  ;;  %v7405_v24 = vld [vmem:[#allocation8 + $0x5b4] ss:$24 sps:$4 sm:$0xff]  }
 0x30d   :  { %5855 = vmatpush2.bf16.msra.mxu1 %v7337_v31  ;;  %v7408_v31 = vld [vmem:[#allocation8 + $0x884] ss:$24 sps:$4 sm:$0xff]  }
 0x30e   :  { %5910 = vmatpush2.bf16.msra.mxu0 %v7340_v22  ;;  %5856 = vmatprep.subr.bf16.mxu1 %v7345_v26  ;;  %v7962_v22 = vpop.f32.mrf.mxu0  ;;  %v7403_v26 = vld [vmem:[#allocation8 + $0x5b0] ss:$24 sps:$4 sm:$0xff]  }
 0x30f   :  { %5985 = vmatprep.subr.bf16.mxu0 %v7348_v37  ;;  %v7964_v37 = vpop.f32.mrf.mxu1 }
 0x311   :  { %5857 = vmatpush2.bf16.msra.mxu1 %v7343_v33  ;;  %5912 = vmatmul.mubr.bf16.vlgmr.msra.gmra.mxu0 %v7789_v58  ;;  %v7363_v58 = vld [vmem:[#allocation8 + $0x404] ss:$24 sps:$4 sm:$0xff]   ;;  %v7406_v33 = vld [vmem:[#allocation8 + $0x880] ss:$24 sps:$4 sm:$0xff]  }
 0x312   :  { %5921 = vmatprep.mubr.bf16.mxu0 %v7801_v61  ;;  %5986 = vmatpush1.bf16.msra.mxu0 %v7346_v39  ;;  %v7361_v61 = vld [vmem:[#allocation8 + $0x400] ss:$24 sps:$4 sm:$0xff]   ;;  %v7411_v39 = vld [vmem:[#allocation8 + $0x584] ss:$24 sps:$4 sm:$0xff]  }
 0x313   :  { %5932 = vmatprep.subr.bf16.mxu1 %v7351_v40  ;;  %5987 = vmatprep.subr.bf16.mxu0 %v7354_v44  ;;  %v7414_v40 = vld [vmem:[#allocation8 + $0x854] ss:$24 sps:$4 sm:$0xff]   ;;  %v7966_v44 = vpop.f32.mrf.mxu0 }
 0x314   :  { %5859 = vmatmul.mubr.bf16.vlgmr.msra.gmra.mxu1 %v7924_v0 }
 0x315   :  { %5868 = vmatprep.mubr.bf16.mxu1 %v7929_v55  ;;  %5933 = vmatpush1.bf16.msra.mxu1 %v7349_v46  ;;  %v7409_v46 = vld [vmem:[#allocation8 + $0x580] ss:$24 sps:$4 sm:$0xff]  }
 0x316   :  { %5988 = vmatpush1.bf16.msra.mxu0 %v7352_v47  ;;  %5934 = vmatprep.subr.bf16.mxu1 %v7357_v49  ;;  %v7968_v47 = vpop.f32.mrf.mxu1  ;;  %v7412_v49 = vld [vmem:[#allocation8 + $0x850] ss:$24 sps:$4 sm:$0xff]  }
 0x317   :  { %5989 = vmatprep.subr.bf16.mxu0 %v7360_v52  ;;  %v7417_v52 = vld [vmem:[#allocation8 + $0x554] ss:$24 sps:$4 sm:$0xff]  }
 0x319   :  { %5935 = vmatpush1.bf16.msra.mxu1 %v7355_v4  ;;  %5922 = vmatmul.mubr.bf16.gmra.mxu0 %v7798_v59  ;;  %v7378_v59 = vld [vmem:[#allocation8 + $0x674] ss:$24 sps:$4 sm:$0xff]   ;;  %v7420_v4 = vld [vmem:[#allocation8 + $0x824] ss:$24 sps:$4 sm:$0xff]  }
 0x31a   :  { %5990 = vmatpush1.bf16.msra.mxu0 %v7358_v56  ;;  %6017 = vmatprep.mubr.bf16.mxu0 %v7903_v25  ;;  %v7376_v25 = vld [vmem:[#allocation8 + $0x670] ss:$24 sps:$4 sm:$0xff]   ;;  %v7970_v56 = vpop.f32.mrf.mxu0 }
 0x31b   :  { %5936 = vmatprep.subr.bf16.mxu1 %v7363_v58  ;;  %5991 = vmatprep.subr.bf16.mxu0 %v7366_v3  ;;  %v7415_v58 = vld [vmem:[#allocation8 + $0x550] ss:$24 sps:$4 sm:$0xff]   ;;  %v7972_v3 = vpop.f32.mrf.mxu1 }
 0x31c   :  { %5869 = vmatmul.mubr.bf16.gmra.mxu1 %v7932_v12 }
 0x31d   :  { %5937 = vmatpush1.bf16.msra.mxu1 %v7361_v61  ;;  %5964 = vmatprep.mubr.bf16.mxu1 %v7863_v7  ;;  %v7382_v7 = vld [vmem:[#allocation8 + $0x640] ss:$24 sps:$4 sm:$0xff]  }
 0x31e   :  { %5992 = vmatpush1.bf16.msra.mxu0 %v7364_v38  ;;  %5938 = vmatprep.subr.bf16.mxu1 %v7369_v5  ;;  %v7418_v61 = vld [vmem:[#allocation8 + $0x820] ss:$24 sps:$4 sm:$0xff]   ;;  %v7423_v38 = vld [vmem:[#allocation8 + $0x524] ss:$24 sps:$4 sm:$0xff]   ;;  %v7426_v5 = vld [vmem:[#allocation8 + $0x7f4] ss:$24 sps:$4 sm:$0xff]  }
 0x31f   :  { %5993 = vmatprep.subr.bf16.mxu0 %v7372_v45  ;;  %v7974_v45 = vpop.f32.mrf.mxu0 }
 0x321   :  { %5939 = vmatpush1.bf16.msra.mxu1 %v7367_v54  ;;  %v7421_v54 = vld [vmem:[#allocation8 + $0x520] ss:$24 sps:$4 sm:$0xff]  }
 0x322   :  { %5994 = vmatpush1.bf16.msra.mxu0 %v7370_v14  ;;  %5940 = vmatprep.subr.bf16.mxu1 %v7375_v15  ;;  %v7976_v14 = vpop.f32.mrf.mxu1  ;;  %v5595_v15 = vpop.f32.mrf.mxu0 }
 0x323   :  { %5995 = vmatprep.subr.bf16.mxu0 %v7378_v59  ;;  %v7424_v59 = vld [vmem:[#allocation8 + $0x7f0] ss:$24 sps:$4 sm:$0xff]  }
 0x325   :  { %5941 = vmatpush1.bf16.msra.mxu1 %v7373_v21  ;;  %v7429_v21 = vld [vmem:[#allocation8 + $0x4f4] ss:$24 sps:$4 sm:$0xff]  }
 0x326   :  { %5996 = vmatpush1.bf16.msra.mxu0 %v7376_v25  ;;  %5942 = vmatprep.subr.bf16.mxu1 %v7381_v27  ;;  %v7432_v25 = vld [vmem:[#allocation8 + $0x7c4] ss:$24 sps:$4 sm:$0xff]   ;;  %v7427_v27 = vld [vmem:[#allocation8 + $0x4f0] ss:$24 sps:$4 sm:$0xff]  }
 0x327   :  { %5997 = vmatprep.subr.bf16.mxu0 %v7384_v18  ;;  %v7978_v18 = vld [vmem:[#allocation10] sm:$0x3f] }
 0x329   :  { %5943 = vmatpush1.bf16.msra.mxu1 %v7379_v16  ;;  %v5552_v16 = vpop.f32.mrf.mxu1 }
 0x32a   :  { %5998 = vmatpush1.bf16.msra.mxu0 %v7382_v7  ;;  %5944 = vmatprep.subr.bf16.mxu1 %v7387_v11  ;;  %v5597_v7 = vpop.f32.mrf.mxu0  ;;  %v7430_v11 = vld [vmem:[#allocation8 + $0x7c0] ss:$24 sps:$4 sm:$0xff]  }
 0x32b   :  { %5999 = vmatprep.subr.bf16.mxu0 %v7390_v48  ;;  %v7435_v48 = vld [vmem:[#allocation8 + $0x4c4] ss:$24 sps:$4 sm:$0xff]  }
 0x32d   :  { %5945 = vmatpush1.bf16.msra.mxu1 %v7385_v28  ;;  %v7438_v28 = vld [vmem:[#allocation8 + $0x794] ss:$24 sps:$4 sm:$0xff]  }
 0x32e   :  { %6000 = vmatpush1.bf16.msra.mxu0 %v7388_v29  ;;  %5946 = vmatprep.subr.bf16.mxu1 %v7393_v57  ;;  %v3508_v29 = vrot.slane %v7978_v18, %v509_v53  ;;  %v7433_v57 = vld [vmem:[#allocation8 + $0x4c0] ss:$24 sps:$4 sm:$0xff]   ;;  %v7444_v53 = vld [vmem:[#allocation8 + $0xa64] ss:$24 sps:$4 sm:$0xff]  }
 0x32f   :  { %6001 = vmatprep.subr.bf16.mxu0 %v7396_v20  ;;  %v5554_v20 = vpop.f32.mrf.mxu1 }
 0x331   :  { %5947 = vmatpush1.bf16.msra.mxu1 %v7391_v9  ;;  %v5599_v9 = vpop.f32.mrf.mxu0 }
 0x332   :  { %6002 = vmatpush2.bf16.msra.mxu0 %v7394_v63  ;;  %5948 = vmatprep.subr.bf16.mxu1 %v7399_v62  ;;  %v7436_v63 = vld [vmem:[#allocation8 + $0x790] ss:$24 sps:$4 sm:$0xff]   ;;  %v7441_v62 = vld [vmem:[#allocation8 + $0x494] ss:$24 sps:$4 sm:$0xff]  }
 0x333   :  { %6003 = vmatprep.subr.bf16.mxu0 %v7402_v13  ;;  %v3512_v13 = vrot.slane %v7978_v18, %v513_v30  ;;  %v7442_v30 = vld [vmem:[#allocation8 + $0xa60] ss:$24 sps:$4 sm:$0xff]  }
 0x335   :  { %5949 = vmatpush2.bf16.msra.mxu1 %v7397_v36  ;;  %v5490_v36 = vadd.f32 %v7954_v10, %v3508_v29  ;;  %v7447_v10 = vld [vmem:[#allocation8 + $0xa34] ss:$24 sps:$4 sm:$0xff]  }
 0x336   :  { %6004 = vmatpush2.bf16.msra.mxu0 %v7400_v41  ;;  %5950 = vmatprep.subr.bf16.mxu1 %v7405_v24  ;;  %v7439_v41 = vld [vmem:[#allocation8 + $0x490] ss:$24 sps:$4 sm:$0xff]   ;;  %v5556_v24 = vpop.f32.mrf.mxu1 }
 0x337   :  { %6005 = vmatprep.subr.bf16.mxu0 %v7408_v31  ;;  %v5601_v31 = vpop.f32.mrf.mxu0 }
 0x339   :  { %5951 = vmatpush2.bf16.msra.mxu1 %v7403_v26  ;;  %v5492_v26 = vadd.f32 %v7956_v51, %v3512_v13  ;;  %v5500_v51 = vadd.f32 %v7962_v22, %v3508_v29 }
 0x33a   :  { %6006 = vmatpush2.bf16.msra.mxu0 %v7406_v33  ;;  %5952 = vmatprep.subr.bf16.mxu1 %v7411_v39  ;;  %v5543_v33 = vadd.f32 %v7964_v37, %v5490_v36  ;;  %v5494_v39 = vadd.f32 %v7958_v17, %v3508_v29 }
 0x33b   :  { %6007 = vmatprep.subr.bf16.mxu0 %v7414_v40  ;;  %v5558_v40 = vpop.f32.mrf.mxu1 }
 0x33c   :  { %v5547_v37 = vadd.f32 %v7972_v3, %v5494_v39  ;;  %v5504_v3 = vadd.f32 %v7970_v56, %v3508_v29  ;;  %v7465_v39 = vld [vmem:[#allocation8 + $0x914] ss:$24 sps:$4 sm:$0xff]  }
 0x33d   :  { %5953 = vmatpush2.bf16.msra.mxu1 %v7409_v46  ;;  %v5605_v46 = vpop.f32.mrf.mxu0 }
 0x33e   :  { %6008 = vmatpush2.bf16.msra.mxu0 %v7412_v49  ;;  %5954 = vmatprep.subr.bf16.mxu1 %v7417_v52  ;;  %v5545_v49 = vadd.f32 %v7968_v47, %v5492_v26  ;;  %v5496_v52 = vadd.f32 %v7960_v34, %v3512_v13  ;;  %v7450_v47 = vld [vmem:[#allocation8 + $0xa04] ss:$24 sps:$4 sm:$0xff]   ;;  %v5600_v22 = vadd.f32 %v5599_v9, %v5547_v37 }
 0x33f   :  { %6009 = vmatprep.subr.bf16.mxu0 %v7420_v4  ;;  %v5596_v4 = vadd.f32 %v5595_v15, %v5543_v33  ;;  %v7462_v26 = vld [vmem:[#allocation8 + $0x944] ss:$24 sps:$4 sm:$0xff]   ;;  %v7460_v33 = vld [vmem:[#allocation8 + $0x940] ss:$24 sps:$4 sm:$0xff]  }
 0x340   :  { %v5549_v34 = vadd.f32 %v7976_v14, %v5496_v52  ;;  %v7453_v14 = vld [vmem:[#allocation8 + $0x9d4] ss:$24 sps:$4 sm:$0xff]   ;;  %v7474_v52 = vld [vmem:[#allocation8 + $0xb84] ss:$24 sps:$4 sm:$0xff]  }
 0x341   :  { %5955 = vmatpush2.bf16.msra.mxu1 %v7415_v58  ;;  %v7480_v37 = vld [vmem:[#allocation8 + $0xb24] ss:$24 sps:$4 sm:$0xff]  }
 0x342   :  { %6010 = vmatpush2.bf16.msra.mxu0 %v7418_v61  ;;  %5956 = vmatprep.subr.bf16.mxu1 %v7423_v38  ;;  %v5607_v61 = vpop.f32.mrf.mxu0 }
 0x343   :  { %6011 = vmatprep.subr.bf16.mxu0 %v7426_v5  ;;  %v5502_v5 = vadd.f32 %v7966_v44, %v3512_v13  ;;  %v5506_v44 = vadd.f32 %v7974_v45, %v3512_v13 }
 0x345   :  { %5957 = vmatpush2.bf16.msra.mxu1 %v7421_v54  ;;  %v5553_v54 = vadd.f32 %v5552_v16, %v5500_v51  ;;  %v7477_v51 = vld [vmem:[#allocation8 + $0xb54] ss:$24 sps:$4 sm:$0xff]  }
 0x346   :  { %6012 = vmatpush2.bf16.msra.mxu0 %v7424_v59  ;;  %5958 = vmatprep.subr.bf16.mxu1 %v7429_v21  ;;  %v5602_v59 = vadd.f32 %v5601_v31, %v5549_v34  ;;  %v7448_v21 = vld [vmem:[#allocation8 + $0xa00] ss:$24 sps:$4 sm:$0xff]   ;;  %v7459_v31 = vld [vmem:[#allocation8 + $0x974] ss:$24 sps:$4 sm:$0xff]   ;;  %v7487_v34 = vld [vmem:[#allocation8 + $0xa90] ss:$24 sps:$4 sm:$0xff]  }
 0x347   :  { %6013 = vmatprep.subr.bf16.mxu0 %v7432_v25  ;;  %v5609_v25 = vpop.f32.mrf.mxu0 }
 0x349   :  { %5959 = vmatpush2.bf16.msra.mxu1 %v7427_v27 }
 0x34a   :  { %6014 = vmatpush2.bf16.msra.mxu0 %v7430_v11  ;;  %5960 = vmatprep.subr.bf16.mxu1 %v7435_v48  ;;  %v5606_v11 = vadd.f32 %v5605_v46, %v5553_v54  ;;  %v5557_v48 = vadd.f32 %v5556_v24, %v5504_v3  ;;  %v7466_v46 = vld [vmem:[#allocation8 + $0xbe0] ss:$24 sps:$4 sm:$0xff]  }
 0x34b   :  { %6015 = vmatprep.subr.bf16.mxu0 %v7438_v28 }
 0x34c   :  { %v5610_v45 = vadd.f32 %v5609_v25, %v5557_v48 }
 0x34d   :  { %5961 = vmatpush2.bf16.msra.mxu1 %v7433_v57  ;;  %v5611_v57 = vpop.f32.mrf.mxu0 }
 0x34e   :  { %6016 = vmatpush2.bf16.msra.mxu0 %v7436_v63  ;;  %5962 = vmatprep.subr.bf16.mxu1 %v7441_v62  ;;  %v5559_v63 = vadd.f32 %v5558_v40, %v5506_v44  ;;  %v7468_v40 = vld [vmem:[#allocation8 + $0xbe4] ss:$24 sps:$4 sm:$0xff]  }
 0x350   :  { %v5612_v36 = vadd.f32 %v5611_v57, %v5559_v63 }
 0x351   :  { %5963 = vmatpush2.bf16.msra.mxu1 %v7439_v41  ;;  %6018 = vmatmul.mubr.bf16.vlgmr.msra.gmra.mxu0 %v7906_v32  ;;  %v5598_v32 = vadd.f32 %v5597_v7, %v5545_v49  ;;  %v5555_v7 = vadd.f32 %v5554_v20, %v5502_v5  ;;  %v7456_v20 = vld [vmem:[#allocation8 + $0x9a4] ss:$24 sps:$4 sm:$0xff]   ;;  %v7454_v41 = vld [vmem:[#allocation8 + $0x9a0] ss:$24 sps:$4 sm:$0xff]   ;;  %v7469_v49 = vld [vmem:[#allocation8 + $0xbb0] ss:$24 sps:$4 sm:$0xff]   ;;  %v5701_v5 = vpop.f32.mrf.mxu0 }
 0x352   :  { %6027 = vmatprep.mubr.bf16.mxu0 %v7910_v6  ;;  %6038 = vmatprep.subr.bf16.mxu1 %v7444_v53  ;;  %v7445_v6 = vld [vmem:[#allocation8 + $0xa30] ss:$24 sps:$4 sm:$0xff]  }
 0x353   :  { %v5608_v28 = vadd.f32 %v5607_v61, %v5555_v7  ;;  %v7457_v53 = vld [vmem:[#allocation8 + $0x970] ss:$24 sps:$4 sm:$0xff]   ;;  %v7486_v61 = vld [vmem:[#allocation8 + $0xac4] ss:$24 sps:$4 sm:$0xff]  }
 0x354   :  { %5965 = vmatmul.mubr.bf16.vlgmr.msra.gmra.mxu1 %v7856_v50  ;;  %v5648_v17 = vpop.f32.mrf.mxu1 }
 0x355   :  { %v5649_v58 = vadd.f32 %v5648_v17, %v5596_v4  ;;  %5974 = vmatprep.mubr.bf16.mxu1 %v7877_v2  ;;  %6039 = vmatpush1.bf16.msra.mxu1 %v7442_v30  ;;  %v7463_v30 = vld [vmem:[#allocation8 + $0x910] ss:$24 sps:$4 sm:$0xff]   ;;  %v7472_v4 = vld [vmem:[#allocation8 + $0xb80] ss:$24 sps:$4 sm:$0xff]  }
 0x356   :  { %v5650_v38 = vpop.f32.mrf.mxu1  ;;  %6040 = vmatprep.subr.bf16.mxu1 %v7447_v10  ;;  %v7471_v10 = vld [vmem:[#allocation8 + $0xbb4] ss:$24 sps:$4 sm:$0xff]   ;;  %v7475_v17 = vld [vmem:[#allocation8 + $0xb50] ss:$24 sps:$4 sm:$0xff]  }
 0x357   :  { %6091 = vst [vmem:[#allocation11] sm:$0xff] %v5649_v58  ;;  %v5651_v50 = vadd.f32 %v5650_v38, %v5598_v32  ;;  %v7478_v32 = vld [vmem:[#allocation8 + $0xb20] ss:$24 sps:$4 sm:$0xff]   ;;  %v7483_v58 = vld [vmem:[#allocation8 + $0xaf4] ss:$24 sps:$4 sm:$0xff]  }
 0x358   :  { %v5652_v15 = vpop.f32.mrf.mxu1  ;;  %v7484_v38 = vld [vmem:[#allocation8 + $0xac0] ss:$24 sps:$4 sm:$0xff]  }
 0x359   :  { %6092 = vst [vmem:[#allocation11 + $0x8] sm:$0xff] %v5651_v50  ;;  %v5653_v2 = vadd.f32 %v5652_v15, %v5600_v22  ;;  %6041 = vmatpush1.bf16.msra.mxu1 %v7445_v6  ;;  %6028 = vmatmul.mubr.bf16.gmra.mxu0 %v7912_v8  ;;  %v7451_v8 = vld [vmem:[#allocation8 + $0x9d0] ss:$24 sps:$4 sm:$0xff]   ;;  %v5703_v22 = vpop.f32.mrf.mxu0 }
 0x35a   :  { %v5654_v27 = vpop.f32.mrf.mxu1  ;;  %6042 = vmatprep.subr.bf16.mxu1 %v7450_v47  ;;  %v7481_v6 = vld [vmem:[#allocation8 + $0xaf0] ss:$24 sps:$4 sm:$0xff]   ;;  %v7489_v47 = vld [vmem:[#allocation8 + $0xa94] ss:$24 sps:$4 sm:$0xff]  }
 0x35b   :  { %6097 = vst [vmem:[#allocation11 + $0x30] sm:$0xff] %v5653_v2  ;;  %v5655_v16 = vadd.f32 %v5654_v27, %v5602_v59  ;;  %v5705_v50 = vpop.f32.mrf.mxu0 }
 0x35c   :  { %5975 = vmatmul.mubr.bf16.gmra.mxu1 %v7869_v19  ;;  %v5658_v56 = vpop.f32.mrf.mxu1 }
 0x35d   :  { %6098 = vst [vmem:[#allocation11 + $0x38] sm:$0xff] %v5655_v16  ;;  %v5659_v29 = vadd.f32 %v5658_v56, %v5606_v11  ;;  %6043 = vmatpush1.bf16.msra.mxu1 %v7448_v21  ;;  %6070 = vmatprep.mubr.bf16.mxu1 %v7921_v35  ;;  %v5707_v54 = vpop.f32.mrf.mxu0 }
 0x35e   :  { %v5660_v9 = vpop.f32.mrf.mxu1  ;;  %6044 = vmatprep.subr.bf16.mxu1 %v7453_v14 }
 0x35f   :  { %6103 = vst [vmem:[#allocation11 + $0x60] sm:$0xff] %v5659_v29  ;;  %v5661_v62 = vadd.f32 %v5660_v9, %v5608_v28  ;;  %v5711_v15 = vpop.f32.mrf.mxu0 }
 0x360   :  { %v5662_v13 = vpop.f32.mrf.mxu1 }
 0x361   :  { %6104 = vst [vmem:[#allocation11 + $0x68] sm:$0xff] %v5661_v62  ;;  %v5663_v19 = vadd.f32 %v5662_v13, %v5610_v45  ;;  %6045 = vmatpush1.bf16.msra.mxu1 %v7451_v8  ;;  %v5713_v59 = vpop.f32.mrf.mxu0 }
 0x362   :  { %v5664_v24 = vpop.f32.mrf.mxu1  ;;  %6046 = vmatprep.subr.bf16.mxu1 %v7456_v20 }
 0x363   :  { %6109 = vst [vmem:[#allocation11 + $0x90] sm:$0xff] %v5663_v19  ;;  %v5665_v35 = vadd.f32 %v5664_v24, %v5612_v36  ;;  %v5715_v21 = vpop.f32.mrf.mxu0 }
 0x365   :  { %6110 = vst [vmem:[#allocation11 + $0x98] sm:$0xff] %v5665_v35  ;;  %6047 = vmatpush1.bf16.msra.mxu1 %v7454_v41  ;;  %v5717_v27 = vpop.f32.mrf.mxu0 }
 0x366   :  { %6048 = vmatprep.subr.bf16.mxu1 %v7459_v31 }
 0x369   :  { %6049 = vmatpush1.bf16.msra.mxu1 %v7457_v53 }
 0x36a   :  { %6050 = vmatprep.subr.bf16.mxu1 %v7462_v26 }
 0x36d   :  { %6051 = vmatpush1.bf16.msra.mxu1 %v7460_v33 }
 0x36e   :  { %6052 = vmatprep.subr.bf16.mxu1 %v7465_v39 }
 0x371   :  { %6053 = vmatpush1.bf16.msra.mxu1 %v7463_v30 }
 0x372   :  { %6054 = vmatprep.subr.bf16.mxu1 %v7468_v40 }
 0x375   :  { %6055 = vmatpush2.bf16.msra.mxu1 %v7466_v46 }
 0x376   :  { %6056 = vmatprep.subr.bf16.mxu1 %v7471_v10 }
 0x379   :  { %6057 = vmatpush2.bf16.msra.mxu1 %v7469_v49 }
 0x37a   :  { %6058 = vmatprep.subr.bf16.mxu1 %v7474_v52 }
 0x37d   :  { %6059 = vmatpush2.bf16.msra.mxu1 %v7472_v4 }
 0x37e   :  { %6060 = vmatprep.subr.bf16.mxu1 %v7477_v51 }
 0x381   :  { %6061 = vmatpush2.bf16.msra.mxu1 %v7475_v17 }
 0x382   :  { %6062 = vmatprep.subr.bf16.mxu1 %v7480_v37 }
 0x385   :  { %6063 = vmatpush2.bf16.msra.mxu1 %v7478_v32 }
 0x386   :  { %6064 = vmatprep.subr.bf16.mxu1 %v7483_v58 }
 0x389   :  { %6065 = vmatpush2.bf16.msra.mxu1 %v7481_v6 }
 0x38a   :  { %6066 = vmatprep.subr.bf16.mxu1 %v7486_v61 }
 0x38d   :  { %6067 = vmatpush2.bf16.msra.mxu1 %v7484_v38 }
 0x38e   :  { %6068 = vmatprep.subr.bf16.mxu1 %v7489_v47 }
 0x391   :  { %6069 = vmatpush2.bf16.msra.mxu1 %v7487_v34  ;;  %v5807_v7 = vpop.f32.mrf.mxu0 }
 0x393   :  { %v5809_v11 = vpop.f32.mrf.mxu0 }
 0x394   :  { %6071 = vmatmul.mubr.bf16.vlgmr.msra.gmra.mxu1 %v7924_v0  ;;  %v5754_v3 = vpop.f32.mrf.mxu1  ;;  %v3516_v0 = vrot.slane %v7978_v18, %v517_v60 }
 0x395   :  { %6080 = vmatprep.mubr.bf16.mxu1 %v7929_v55  ;;  %v5811_v16 = vpop.f32.mrf.mxu0 }
 0x396   :  { %v5756_v2 = vpop.f32.mrf.mxu1  ;;  %v5702_v56 = vadd.f32 %v5701_v5, %v3516_v0  ;;  %v5706_v57 = vadd.f32 %v5705_v50, %v3516_v0  ;;  %v5712_v60 = vadd.f32 %v5711_v15, %v3516_v0  ;;  %v5716_v30 = vadd.f32 %v5715_v21, %v3516_v0 }
 0x397   :  { %v5813_v8 = vpop.f32.mrf.mxu0 }
 0x398   :  { %v5758_v25 = vpop.f32.mrf.mxu1  ;;  %v5755_v29 = vadd.f32 %v5754_v3, %v5702_v56 }
 0x399   :  { %v5759_v45 = vadd.f32 %v5758_v25, %v5706_v57  ;;  %v5817_v13 = vpop.f32.mrf.mxu0 }
 0x39a   :  { %v5760_v14 = vpop.f32.mrf.mxu1  ;;  %v5808_v62 = vadd.f32 %v5807_v7, %v5755_v29 }
 0x39b   :  { %v5812_v26 = vadd.f32 %v5811_v16, %v5759_v45  ;;  %v5819_v33 = vpop.f32.mrf.mxu0 }
 0x39c   :  { %6081 = vmatmul.mubr.bf16.gmra.mxu1 %v7932_v12  ;;  %v5764_v44 = vpop.f32.mrf.mxu1  ;;  %v3520_v12 = vrot.slane %v7978_v18, %v521_v1 }
 0x39d   :  { %v5765_v35 = vadd.f32 %v5764_v44, %v5712_v60  ;;  %v5821_v37 = vpop.f32.mrf.mxu0 }
 0x39e   :  { %v5766_v55 = vpop.f32.mrf.mxu1  ;;  %v5704_v28 = vadd.f32 %v5703_v22, %v3520_v12  ;;  %v5708_v63 = vadd.f32 %v5707_v54, %v3520_v12  ;;  %v5714_v1 = vadd.f32 %v5713_v59, %v3520_v12  ;;  %v5718_v52 = vadd.f32 %v5717_v27, %v3520_v12 }
 0x39f   :  { %v5818_v17 = vadd.f32 %v5817_v13, %v5765_v35  ;;  %v5823_v5 = vpop.f32.mrf.mxu0 }
 0x3a0   :  { %v5768_v48 = vpop.f32.mrf.mxu1  ;;  %v5757_v9 = vadd.f32 %v5756_v2, %v5704_v28  ;;  %v5761_v19 = vadd.f32 %v5760_v14, %v5708_v63  ;;  %v5767_v40 = vadd.f32 %v5766_v55, %v5714_v1  ;;  %v3524_v28 = vrot.slane %v7978_v18, %v525_v43 }
 0x3a1   :  { %v5769_v4 = vadd.f32 %v5768_v48, %v5716_v30 }
 0x3a2   :  { %v5770_v20 = vpop.f32.mrf.mxu1  ;;  %v5810_v24 = vadd.f32 %v5809_v11, %v5757_v9  ;;  %v5814_v10 = vadd.f32 %v5813_v8, %v5761_v19  ;;  %v5820_v61 = vadd.f32 %v5819_v33, %v5767_v40  ;;  %v3528_v8 = vrot.slane %v7978_v18, %v529_v23 }
 0x3a3   :  { %v5771_v58 = vadd.f32 %v5770_v20, %v5718_v52  ;;  %v5822_v34 = vadd.f32 %v5821_v37, %v5769_v4 }
 0x3a5   :  { %v5824_v54 = vadd.f32 %v5823_v5, %v5771_v58 }
 0x3d1   :  { %v5913_v59 = vpop.f32.mrf.mxu0 }
 0x3d2   :  { %v5914_v9 = vadd.f32 %v5913_v59, %v3524_v28 }
 0x3d3   :  { %v5915_v2 = vpop.f32.mrf.mxu0 }
 0x3d4   :  { %v5860_v36 = vpop.f32.mrf.mxu1  ;;  %v5916_v63 = vadd.f32 %v5915_v2, %v3528_v8 }
 0x3d5   :  { %v5861_v41 = vadd.f32 %v5860_v36, %v5808_v62  ;;  %v5917_v21 = vpop.f32.mrf.mxu0 }
 0x3d6   :  { %v5862_v31 = vpop.f32.mrf.mxu1  ;;  %v5918_v13 = vadd.f32 %v5917_v21, %v3524_v28 }
 0x3d7   :  { %6093 = vst [vmem:[#allocation11 + $0x10] sm:$0xff] %v5861_v41  ;;  %v5863_v53 = vadd.f32 %v5862_v31, %v5810_v24  ;;  %v5919_v25 = vpop.f32.mrf.mxu0 }
 0x3d8   :  { %v5864_v39 = vpop.f32.mrf.mxu1  ;;  %v5920_v19 = vadd.f32 %v5919_v25, %v3528_v8 }
 0x3d9   :  { %6094 = vst [vmem:[#allocation11 + $0x18] sm:$0xff] %v5863_v53  ;;  %v5865_v46 = vadd.f32 %v5864_v39, %v5812_v26  ;;  %v5923_v27 = vpop.f32.mrf.mxu0 }
 0x3da   :  { %v5866_v49 = vpop.f32.mrf.mxu1  ;;  %v5924_v43 = vadd.f32 %v5923_v27, %v3524_v28 }
 0x3db   :  { %6099 = vst [vmem:[#allocation11 + $0x40] sm:$0xff] %v5865_v46  ;;  %v5867_v51 = vadd.f32 %v5866_v49, %v5814_v10  ;;  %v5925_v7 = vpop.f32.mrf.mxu0 }
 0x3dc   :  { %v5870_v32 = vpop.f32.mrf.mxu1  ;;  %v5926_v23 = vadd.f32 %v5925_v7, %v3528_v8 }
 0x3dd   :  { %6100 = vst [vmem:[#allocation11 + $0x48] sm:$0xff] %v5867_v51  ;;  %v5871_v6 = vadd.f32 %v5870_v32, %v5818_v17  ;;  %v5927_v11 = vpop.f32.mrf.mxu0 }
 0x3de   :  { %v5872_v38 = vpop.f32.mrf.mxu1  ;;  %v5928_v46 = vadd.f32 %v5927_v11, %v3524_v28 }
 0x3df   :  { %6105 = vst [vmem:[#allocation11 + $0x70] sm:$0xff] %v5871_v6  ;;  %v5873_v47 = vadd.f32 %v5872_v38, %v5820_v61  ;;  %v5929_v55 = vpop.f32.mrf.mxu0 }
 0x3e0   :  { %v5874_v22 = vpop.f32.mrf.mxu1  ;;  %v5930_v51 = vadd.f32 %v5929_v55, %v3528_v8 }
 0x3e1   :  { %6106 = vst [vmem:[#allocation11 + $0x78] sm:$0xff] %v5873_v47  ;;  %v5875_v50 = vadd.f32 %v5874_v22, %v5822_v34 }
 0x3e2   :  { %v5876_v15 = vpop.f32.mrf.mxu1 }
 0x3e3   :  { %6111 = vst [vmem:[#allocation11 + $0xa0] sm:$0xff] %v5875_v50  ;;  %v5877_v3 = vadd.f32 %v5876_v15, %v5824_v54 }
 0x3e5   :  { %6112 = vst [vmem:[#allocation11 + $0xa8] sm:$0xff] %v5877_v3 }
 0x411   :  { %v6019_v16 = vpop.f32.mrf.mxu0 }
 0x413   :  { %v6021_v48 = vpop.f32.mrf.mxu0 }
 0x414   :  { %v5966_v14 = vpop.f32.mrf.mxu1 }
 0x415   :  { %v6023_v57 = vpop.f32.mrf.mxu0  ;;  %v5967_v45 = vadd.f32 %v5966_v14, %v5914_v9 }
 0x416   :  { %v5968_v44 = vpop.f32.mrf.mxu1 }
 0x417   :  { %v6025_v62 = vpop.f32.mrf.mxu0  ;;  %v5969_v36 = vadd.f32 %v5968_v44, %v5916_v63  ;;  %v6020_v24 = vadd.f32 %v6019_v16, %v5967_v45 }
 0x418   :  { %v5970_v0 = vpop.f32.mrf.mxu1 }
 0x419   :  { %v5971_v41 = vadd.f32 %v5970_v0, %v5918_v13  ;;  %v6029_v31 = vpop.f32.mrf.mxu0  ;;  %v6022_v42 = vadd.f32 %v6021_v48, %v5969_v36 }
 0x41a   :  { %v5972_v12 = vpop.f32.mrf.mxu1 }
 0x41b   :  { %v5973_v35 = vadd.f32 %v5972_v12, %v5920_v19  ;;  %v6024_v39 = vadd.f32 %v6023_v57, %v5971_v41  ;;  %v6031_v30 = vpop.f32.mrf.mxu0 }
 0x41c   :  { %v5976_v56 = vpop.f32.mrf.mxu1 }
 0x41d   :  { %v5977_v18 = vadd.f32 %v5976_v56, %v5924_v43  ;;  %v6026_v52 = vadd.f32 %v6025_v62, %v5973_v35  ;;  %v6033_v58 = vpop.f32.mrf.mxu0 }
 0x41e   :  { %v5978_v29 = vpop.f32.mrf.mxu1 }
 0x41f   :  { %v5979_v10 = vadd.f32 %v5978_v29, %v5926_v23  ;;  %v6030_v32 = vadd.f32 %v6029_v31, %v5977_v18  ;;  %v6035_v50 = vpop.f32.mrf.mxu0 }
 0x420   :  { %v5980_v20 = vpop.f32.mrf.mxu1 }
 0x421   :  { %v5981_v17 = vadd.f32 %v5980_v20, %v5928_v46  ;;  %v6032_v47 = vadd.f32 %v6031_v30, %v5979_v10 }
 0x422   :  { %v5982_v60 = vpop.f32.mrf.mxu1 }
 0x423   :  { %v5983_v61 = vadd.f32 %v5982_v60, %v5930_v51  ;;  %v6034_v22 = vadd.f32 %v6033_v58, %v5981_v17 }
 0x425   :  { %v6036_v3 = vadd.f32 %v6035_v50, %v5983_v61 }
 0x454   :  { %v6072_v1 = vpop.f32.mrf.mxu1 }
 0x455   :  { %v6073_v53 = vadd.f32 %v6072_v1, %v6020_v24 }
 0x456   :  { %v6074_v26 = vpop.f32.mrf.mxu1 }
 0x457   :  { %6095 = vst [vmem:[#allocation11 + $0x20] sm:$0xff] %v6073_v53  ;;  %v6075_v33 = vadd.f32 %v6074_v26, %v6022_v42 }
 0x458   :  { %v6076_v40 = vpop.f32.mrf.mxu1 }
 0x459   :  { %6096 = vst [vmem:[#allocation11 + $0x28] sm:$0xff] %v6075_v33  ;;  %v6077_v49 = vadd.f32 %v6076_v40, %v6024_v39 }
 0x45a   :  { %v6078_v4 = vpop.f32.mrf.mxu1 }
 0x45b   :  { %6101 = vst [vmem:[#allocation11 + $0x50] sm:$0xff] %v6077_v49  ;;  %v6079_v37 = vadd.f32 %v6078_v4, %v6026_v52 }
 0x45c   :  { %v6082_v6 = vpop.f32.mrf.mxu1 }
 0x45d   :  { %6102 = vst [vmem:[#allocation11 + $0x58] sm:$0xff] %v6079_v37  ;;  %v6083_v38 = vadd.f32 %v6082_v6, %v6030_v32 }
 0x45e   :  { %v6084_v34 = vpop.f32.mrf.mxu1 }
 0x45f   :  { %6107 = vst [vmem:[#allocation11 + $0x80] sm:$0xff] %v6083_v38  ;;  %v6085_v5 = vadd.f32 %v6084_v34, %v6032_v47 }
 0x460   :  { %v6086_v54 = vpop.f32.mrf.mxu1 }
 0x461   :  { %6108 = vst [vmem:[#allocation11 + $0x88] sm:$0xff] %v6085_v5  ;;  %v6087_v15 = vadd.f32 %v6086_v54, %v6034_v22 }
 0x462   :  { %v6088_v59 = vpop.f32.mrf.mxu1 }
 0x463   :  { %6113 = vst [vmem:[#allocation11 + $0xb0] sm:$0xff] %v6087_v15  ;;  %v6089_v2 = vadd.f32 %v6088_v59, %v6036_v3 }
 0x465   :  { %6114 = vst [vmem:[#allocation11 + $0xb8] sm:$0xff] %v6089_v2 }
 0x466   :  { %7602 = shalt.err (!%p7599_p1)
}
 0x467   :  { %6126 = dma.vmem_to_hbm [thread:$0]  %s6121_s4, 3072, %s8031_s5, [#allocation4], %s7626_s9, %s7626_s9, %s7627_s10  }
 0x468   :  { %7617 = dma.done.wait [#allocation4], 3072  }
 0x469   :  { %7618 = vsyncadd [#allocation4], 4294964224 }
 0x46a   :  { %6130 = vsyncpa [#allocation3], 1 }
 0x46b   :  { %6131 = vsyncpa [#allocation6], 1 }
 0x46c   :  { %6132 = vsyncpa [#allocation9], 1 }
 0x46d   :  { %6133 = vsyncpa [#allocation4], 1 }

</bundles_post_ra>
